<compile_context>
chip_gen: v7x
topology: tpu7x:2x2x1
jax: 0.10.0
libtpu: 0.0.40
codegen_flags: <defaults>
</compile_context>

<pallas_src>
import functools

import jax
import jax.numpy as jnp
from jax.experimental import pallas as pl
from jax.experimental.pallas import tpu as pltpu

LANE = 128
TM = 256  # adjacency row-tile size


def _round_up(x, m):
    return ((x + m - 1) // m) * m


def _gcn_kernel(x_ref, adj_ref, *args, nlayers, d_pads, tm):
    """grid = (nlayers, N_pad // tm); layer axis outermost ("arbitrary").

    x_ref:   (N_pad, d_pads[0])  bf16, VMEM-resident (constant index map)
    adj_ref: (tm, N_pad)         bf16 adjacency row tile, streamed per step
    args:    w_0..w_{L-1}        bf16 (d_pads[l], d_pads[l+1]), resident
             b_0..b_{L-1}        f32  (1, d_pads[l+1]), resident
             o_ref               f32  (tm, d_pads[-1]) output row tile
             h_buf  (scratch)    bf16 (N_pad, hidden_pad): H_l for l >= 1
             xw_buf (scratch)    bf16 (N_pad, max out pad): current X@W + b
    """
    w_refs = args[:nlayers]
    b_refs = args[nlayers:2 * nlayers]
    o_ref = args[2 * nlayers]
    h_buf = args[2 * nlayers + 1]
    xw_buf = args[2 * nlayers + 2]

    layer = pl.program_id(0)
    tile = pl.program_id(1)

    for l in range(nlayers):  # static unroll; nlayers is small (see TODO below)
        dout = d_pads[l + 1]

        @pl.when(layer == l)
        def _(l=l, dout=dout):
            # Build XW_l = H_l @ W_l + b_l once per layer (at row-tile 0);
            # later row tiles of this layer reuse it from VMEM scratch.
            @pl.when(tile == 0)
            def _():
                h = x_ref[...] if l == 0 else h_buf[...]
                xw = jnp.dot(h, w_refs[l][...],
                             preferred_element_type=jnp.float32)
                xw = xw + b_refs[l][...]                      # f32 bias add
                xw_buf[:, :dout] = xw.astype(xw_buf.dtype)

            # Row tile of A @ XW_l: adjacency streams through, XW stays put.
            out = jnp.dot(adj_ref[...], xw_buf[:, :dout],
                          preferred_element_type=jnp.float32)
            if l < nlayers - 1:
                row0 = pl.multiple_of(tile * tm, tm)
                # ReLU in f32; F.dropout(training=False) -> identity.
                h_buf[pl.ds(row0, tm), :] = (
                    jnp.maximum(out, 0.0).astype(h_buf.dtype))
            else:
                o_ref[...] = out.astype(o_ref.dtype)
    # TODO(synk): if nlayers grows beyond ~4, replace the static layer unroll
    # with uniform per-layer shapes + lax.fori_loop / dynamic weight indexing.


def prepare_adj(adj, tm=TM):
    """Cast the dense adjacency to bf16 and pad N to a TM multiple ONCE.

    For a fixed graph, call this once and reuse the result across forwards --
    the cast alone moves O(N^2) HBM bytes.
    """
    n = adj.shape[0]
    n_pad = _round_up(n, tm)
    return jnp.pad(adj.astype(jnp.bfloat16),
                   ((0, n_pad - n), (0, n_pad - n)))


def gcn_r_forward(params, x, adj, adj_prepared=None, *, tm=TM):
    """GCN_R.forward in eval mode: returns (logits, Adj_).

    params: list of (W, b); W stored as (in_dim, out_dim), b as (1, out_dim).
    adj_prepared: optional output of prepare_adj(adj); pass it when the graph
      is fixed across calls to avoid re-casting/padding the N^2 operand.
    """
    n, in_dim = x.shape
    nlayers = len(params)
    assert nlayers >= 2
    dims = [in_dim] + [w.shape[1] for w, _ in params]
    # All intermediate activations share hidden_dim (matches the PyTorch module).
    assert all(d == dims[1] for d in dims[1:-1])

    d_pads = [_round_up(d, LANE) for d in dims]
    hidden_pad = d_pads[1]
    xw_pad = max(d_pads[1:])

    if adj_prepared is None:
        adj_prepared = prepare_adj(adj, tm)
    n_pad = adj_prepared.shape[0]
    assert adj_prepared.shape == (n_pad, n_pad) and n_pad == _round_up(n, tm)

    x_pad = jnp.pad(x, ((0, n_pad - n),
                        (0, d_pads[0] - in_dim))).astype(jnp.bfloat16)
    # Per-layer padding: each weight only grows to its own 128-aligned shape.
    # Zero rows/cols contribute exact zeros through the f32-accumulated
    # matmuls, bias add and ReLU, so sliced results are unchanged.
    w_pads = [jnp.pad(w, ((0, d_pads[l] - w.shape[0]),
                          (0, d_pads[l + 1] - w.shape[1]))).astype(jnp.bfloat16)
              for l, (w, _) in enumerate(params)]
    b_pads = [jnp.pad(b, ((0, 0),
                          (0, d_pads[l + 1] - b.shape[1]))).astype(jnp.float32)
              for l, (_, b) in enumerate(params)]

    kernel = functools.partial(_gcn_kernel, nlayers=nlayers,
                               d_pads=tuple(d_pads), tm=tm)
    in_specs = (
        [pl.BlockSpec((n_pad, d_pads[0]), lambda l, i: (0, 0)),   # X resident
         pl.BlockSpec((tm, n_pad), lambda l, i: (i, 0))]          # adj row tiles
        + [pl.BlockSpec(w.shape, lambda l, i: (0, 0)) for w in w_pads]
        + [pl.BlockSpec(b.shape, lambda l, i: (0, 0)) for b in b_pads]
    )
    out_pad = pl.pallas_call(
        kernel,
        grid=(nlayers, n_pad // tm),
        in_specs=in_specs,
        out_specs=pl.BlockSpec((tm, d_pads[-1]), lambda l, i: (i, 0)),
        out_shape=jax.ShapeDtypeStruct((n_pad, d_pads[-1]), jnp.float32),
        scratch_shapes=[
            pltpu.VMEM((n_pad, hidden_pad), jnp.bfloat16),  # H_l (l >= 1)
            pltpu.VMEM((n_pad, xw_pad), jnp.bfloat16),      # current X@W + b
        ],
        compiler_params=pltpu.CompilerParams(
            # Layer axis carries H; row-tile 0 of each layer builds the shared
            # XW product -> both axes must run in order on a single core.
            dimension_semantics=("arbitrary", "arbitrary")),
    )(x_pad, adj_prepared, *w_pads, *b_pads)

    nclasses = params[-1][0].shape[1]
    # dropout_adj is identity in eval mode; module returns the original Adj_.
    return out_pad[:n, :nclasses], adj


def init_gcn_r_params(key, nlayers, in_dim, hidden_dim, nclasses):
    """Deterministic param init mirroring nn.Linear shapes (stored as (in, out))."""
    dims = [in_dim] + [hidden_dim] * (nlayers - 1) + [nclasses]
    params = []
    for i in range(nlayers):
        key, kw, kb = jax.random.split(key, 3)
        bound = 1.0 / jnp.sqrt(jnp.float32(dims[i]))
        w = jax.random.uniform(kw, (dims[i], dims[i + 1]), jnp.float32, -bound, bound)
        b = jax.random.uniform(kb, (1, dims[i + 1]), jnp.float32, -bound, bound)
        params.append((w, b))
    return params


def _reference(params, x, adj):
    """Pure-JAX reference with the SAME precision policy (bf16 MXU in, f32 acc)."""
    adj_b = adj.astype(jnp.bfloat16)
    h = x.astype(jnp.bfloat16)
    out = None
    for i, (w, b) in enumerate(params):
        xw = jnp.dot(h, w.astype(jnp.bfloat16),
                     preferred_element_type=jnp.float32) + b
        out = jnp.dot(adj_b, xw.astype(jnp.bfloat16),
                      preferred_element_type=jnp.float32)
        if i < len(params) - 1:
            h = jnp.maximum(out, 0.0).astype(jnp.bfloat16)
    return out


if __name__ == "__main__":
    # Small, module-consistent shapes; in_dim != hidden exercises per-layer
    # padding, n_nodes=300 exercises row padding + a 2-tile adjacency grid.
    nlayers, in_dim, hidden_dim, nclasses = 3, 200, 32, 7
    n_nodes = 300

    key = jax.random.PRNGKey(0)
    key, kx, ka = jax.random.split(key, 3)
    x = jax.random.normal(kx, (n_nodes, in_dim), jnp.float32)
    adj_raw = jax.random.uniform(ka, (n_nodes, n_nodes), jnp.float32)
    # symmetric, row-normalized dense adjacency (typical dense-GCN input)
    adj = 0.5 * (adj_raw + adj_raw.T)
    adj = adj / jnp.sum(adj, axis=-1, keepdims=True)

    params = init_gcn_r_params(key, nlayers, in_dim, hidden_dim, nclasses)

    adj_prepared = prepare_adj(adj)        # cast + pad the N^2 operand once
    logits, adj_out = gcn_r_forward(params, x, adj, adj_prepared)
    jax.block_until_ready((logits, adj_out))

    # Correctness check against a precision-matched pure-JAX reference.
    ref = _reference(params, x, adj)
    assert logits.shape == (n_nodes, nclasses)
    assert jnp.allclose(logits, ref, atol=2e-3, rtol=2e-3), \
        float(jnp.max(jnp.abs(logits - ref)))
    assert jnp.array_equal(adj_out, adj)

    print("KERNEL_OK")
</pallas_src>

<mosaic_0001>
module attributes {stable_mosaic.version = 11 : i64} {
  func.func @_gcn_kernel(%arg0: i32, %arg1: i32, %arg2: memref<512x256xbf16, #tpu.memory_space<vmem>>, %arg3: memref<256x512xbf16, #tpu.memory_space<vmem>>, %arg4: memref<256x128xbf16, #tpu.memory_space<vmem>>, %arg5: memref<128x128xbf16, #tpu.memory_space<vmem>>, %arg6: memref<128x128xbf16, #tpu.memory_space<vmem>>, %arg7: memref<1x128xf32, #tpu.memory_space<vmem>>, %arg8: memref<1x128xf32, #tpu.memory_space<vmem>>, %arg9: memref<1x128xf32, #tpu.memory_space<vmem>>, %arg10: memref<256x128xf32, #tpu.memory_space<vmem>>, %arg11: memref<512x128xbf16, #tpu.memory_space<vmem>>, %arg12: memref<512x128xbf16, #tpu.memory_space<vmem>>) attributes {dimension_semantics = [#tpu.dimension_semantics<arbitrary>, #tpu.dimension_semantics<arbitrary>], iteration_bounds = array<i64: 3, 2>, scalar_prefetch = 0 : i64, scratch_operands = 2 : i64, tpu.core_type = #tpu.core_type<tc>, window_params = [{pipeline_mode = #tpu.pipeline_mode<synchronous>, transform_indices = @transform_0, window_bounds = array<i64: 512, 256>}, {transform_indices = @transform_1, window_bounds = array<i64: 256, 512>}, {pipeline_mode = #tpu.pipeline_mode<synchronous>, transform_indices = @transform_2, window_bounds = array<i64: 256, 128>}, {pipeline_mode = #tpu.pipeline_mode<synchronous>, transform_indices = @transform_3, window_bounds = array<i64: 128, 128>}, {pipeline_mode = #tpu.pipeline_mode<synchronous>, transform_indices = @transform_4, window_bounds = array<i64: 128, 128>}, {pipeline_mode = #tpu.pipeline_mode<synchronous>, transform_indices = @transform_5, window_bounds = array<i64: 1, 128>}, {pipeline_mode = #tpu.pipeline_mode<synchronous>, transform_indices = @transform_6, window_bounds = array<i64: 1, 128>}, {pipeline_mode = #tpu.pipeline_mode<synchronous>, transform_indices = @transform_7, window_bounds = array<i64: 1, 128>}, {transform_indices = @transform_8, window_bounds = array<i64: 256, 128>}]} {
    %c0_i32 = arith.constant 0 : i32
    %0 = arith.cmpi eq, %arg0, %c0_i32 : i32
    %1 = arith.extui %0 : i1 to i32
    %c0_i32_0 = arith.constant 0 : i32
    %2 = arith.cmpi ne, %1, %c0_i32_0 : i32
    scf.if %2 {
      %c0_i32_3 = arith.constant 0 : i32
      %9 = arith.cmpi eq, %arg1, %c0_i32_3 : i32
      %10 = arith.extui %9 : i1 to i32
      %c0_i32_4 = arith.constant 0 : i32
      %11 = arith.cmpi ne, %10, %c0_i32_4 : i32
      scf.if %11 {
        %c0_10 = arith.constant 0 : index
        %c0_11 = arith.constant 0 : index
        %22 = vector.load %arg2[%c0_10, %c0_11] : memref<512x256xbf16, #tpu.memory_space<vmem>>, vector<512x256xbf16>
        %c0_12 = arith.constant 0 : index
        %c0_13 = arith.constant 0 : index
        %23 = vector.load %arg4[%c0_12, %c0_13] : memref<256x128xbf16, #tpu.memory_space<vmem>>, vector<256x128xbf16>
        %cst_14 = arith.constant dense<0.000000e+00> : vector<512x128xf32>
        %24 = tpu.matmul %22, %23, %cst_14 {dimension_numbers = #tpu.dot_dimension_numbers<[1], [0], [0], [1], [0, 0, 1, 1], [], []>} : vector<512x256xbf16>, vector<256x128xbf16>, vector<512x128xf32> -> vector<512x128xf32>
        %c0_15 = arith.constant 0 : index
        %c0_16 = arith.constant 0 : index
        %25 = vector.load %arg7[%c0_15, %c0_16] : memref<1x128xf32, #tpu.memory_space<vmem>>, vector<1x128xf32>
        %26 = vector.broadcast %25 : vector<1x128xf32> to vector<512x128xf32>
        %27 = arith.addf %24, %26 : vector<512x128xf32>
        %28 = arith.truncf %27 : vector<512x128xf32> to vector<512x128xbf16>
        %c0_17 = arith.constant 0 : index
        %c0_18 = arith.constant 0 : index
        %29 = vector.load %arg12[%c0_17, %c0_18] : memref<512x128xbf16, #tpu.memory_space<vmem>>, vector<512x128xbf16>
        tpu.vector_store %arg12[%c0_17, %c0_18], %28 {strides = array<i32>} : memref<512x128xbf16, #tpu.memory_space<vmem>>, vector<512x128xbf16>,
      } else {
      }
      %c0 = arith.constant 0 : index
      %c0_5 = arith.constant 0 : index
      %12 = vector.load %arg3[%c0, %c0_5] : memref<256x512xbf16, #tpu.memory_space<vmem>>, vector<256x512xbf16>
      %c0_6 = arith.constant 0 : index
      %c0_7 = arith.constant 0 : index
      %13 = vector.load %arg12[%c0_6, %c0_7] : memref<512x128xbf16, #tpu.memory_space<vmem>>, vector<512x128xbf16>
      %cst = arith.constant dense<0.000000e+00> : vector<256x128xf32>
      %14 = tpu.matmul %12, %13, %cst {dimension_numbers = #tpu.dot_dimension_numbers<[1], [0], [0], [1], [0, 0, 1, 1], [], []>} : vector<256x512xbf16>, vector<512x128xbf16>, vector<256x128xf32> -> vector<256x128xf32>
      %c256_i32 = arith.constant 256 : i32
      %15 = arith.muli %arg1, %c256_i32 : i32
      %16 = tpu.assume_multiple %15, 256 : i32
      %cst_8 = arith.constant 0.000000e+00 : f32
      %17 = vector.broadcast %cst_8 : f32 to vector<256x128xf32>
      %18 = arith.maximumf %14, %17 : vector<256x128xf32>
      %19 = arith.truncf %18 : vector<256x128xf32> to vector<256x128xbf16>
      %20 = arith.index_cast %16 : i32 to index
      %c0_9 = arith.constant 0 : index
      %21 = vector.load %arg11[%20, %c0_9] : memref<512x128xbf16, #tpu.memory_space<vmem>>, vector<256x128xbf16>
      tpu.vector_store %arg11[%20, %c0_9], %19 {strides = array<i32>} : memref<512x128xbf16, #tpu.memory_space<vmem>>, vector<256x128xbf16>,
    } else {
    }
    %c1_i32 = arith.constant 1 : i32
    %3 = arith.cmpi eq, %arg0, %c1_i32 : i32
    %4 = arith.extui %3 : i1 to i32
    %c0_i32_1 = arith.constant 0 : i32
    %5 = arith.cmpi ne, %4, %c0_i32_1 : i32
    scf.if %5 {
      %c0_i32_3 = arith.constant 0 : i32
      %9 = arith.cmpi eq, %arg1, %c0_i32_3 : i32
      %10 = arith.extui %9 : i1 to i32
      %c0_i32_4 = arith.constant 0 : i32
      %11 = arith.cmpi ne, %10, %c0_i32_4 : i32
      scf.if %11 {
        %c0_10 = arith.constant 0 : index
        %c0_11 = arith.constant 0 : index
        %22 = vector.load %arg11[%c0_10, %c0_11] : memref<512x128xbf16, #tpu.memory_space<vmem>>, vector<512x128xbf16>
        %c0_12 = arith.constant 0 : index
        %c0_13 = arith.constant 0 : index
        %23 = vector.load %arg5[%c0_12, %c0_13] : memref<128x128xbf16, #tpu.memory_space<vmem>>, vector<128x128xbf16>
        %cst_14 = arith.constant dense<0.000000e+00> : vector<512x128xf32>
        %24 = tpu.matmul %22, %23, %cst_14 {dimension_numbers = #tpu.dot_dimension_numbers<[1], [0], [0], [1], [0, 0, 1, 1], [], []>} : vector<512x128xbf16>, vector<128x128xbf16>, vector<512x128xf32> -> vector<512x128xf32>
        %c0_15 = arith.constant 0 : index
        %c0_16 = arith.constant 0 : index
        %25 = vector.load %arg8[%c0_15, %c0_16] : memref<1x128xf32, #tpu.memory_space<vmem>>, vector<1x128xf32>
        %26 = vector.broadcast %25 : vector<1x128xf32> to vector<512x128xf32>
        %27 = arith.addf %24, %26 : vector<512x128xf32>
        %28 = arith.truncf %27 : vector<512x128xf32> to vector<512x128xbf16>
        %c0_17 = arith.constant 0 : index
        %c0_18 = arith.constant 0 : index
        %29 = vector.load %arg12[%c0_17, %c0_18] : memref<512x128xbf16, #tpu.memory_space<vmem>>, vector<512x128xbf16>
        tpu.vector_store %arg12[%c0_17, %c0_18], %28 {strides = array<i32>} : memref<512x128xbf16, #tpu.memory_space<vmem>>, vector<512x128xbf16>,
      } else {
      }
      %c0 = arith.constant 0 : index
      %c0_5 = arith.constant 0 : index
      %12 = vector.load %arg3[%c0, %c0_5] : memref<256x512xbf16, #tpu.memory_space<vmem>>, vector<256x512xbf16>
      %c0_6 = arith.constant 0 : index
      %c0_7 = arith.constant 0 : index
      %13 = vector.load %arg12[%c0_6, %c0_7] : memref<512x128xbf16, #tpu.memory_space<vmem>>, vector<512x128xbf16>
      %cst = arith.constant dense<0.000000e+00> : vector<256x128xf32>
      %14 = tpu.matmul %12, %13, %cst {dimension_numbers = #tpu.dot_dimension_numbers<[1], [0], [0], [1], [0, 0, 1, 1], [], []>} : vector<256x512xbf16>, vector<512x128xbf16>, vector<256x128xf32> -> vector<256x128xf32>
      %c256_i32 = arith.constant 256 : i32
      %15 = arith.muli %arg1, %c256_i32 : i32
      %16 = tpu.assume_multiple %15, 256 : i32
      %cst_8 = arith.constant 0.000000e+00 : f32
      %17 = vector.broadcast %cst_8 : f32 to vector<256x128xf32>
      %18 = arith.maximumf %14, %17 : vector<256x128xf32>
      %19 = arith.truncf %18 : vector<256x128xf32> to vector<256x128xbf16>
      %20 = arith.index_cast %16 : i32 to index
      %c0_9 = arith.constant 0 : index
      %21 = vector.load %arg11[%20, %c0_9] : memref<512x128xbf16, #tpu.memory_space<vmem>>, vector<256x128xbf16>
      tpu.vector_store %arg11[%20, %c0_9], %19 {strides = array<i32>} : memref<512x128xbf16, #tpu.memory_space<vmem>>, vector<256x128xbf16>,
    } else {
    }
    %c2_i32 = arith.constant 2 : i32
    %6 = arith.cmpi eq, %arg0, %c2_i32 : i32
    %7 = arith.extui %6 : i1 to i32
    %c0_i32_2 = arith.constant 0 : i32
    %8 = arith.cmpi ne, %7, %c0_i32_2 : i32
    scf.if %8 {
      %c0_i32_3 = arith.constant 0 : i32
      %9 = arith.cmpi eq, %arg1, %c0_i32_3 : i32
      %10 = arith.extui %9 : i1 to i32
      %c0_i32_4 = arith.constant 0 : i32
      %11 = arith.cmpi ne, %10, %c0_i32_4 : i32
      scf.if %11 {
        %c0_10 = arith.constant 0 : index
        %c0_11 = arith.constant 0 : index
        %16 = vector.load %arg11[%c0_10, %c0_11] : memref<512x128xbf16, #tpu.memory_space<vmem>>, vector<512x128xbf16>
        %c0_12 = arith.constant 0 : index
        %c0_13 = arith.constant 0 : index
        %17 = vector.load %arg6[%c0_12, %c0_13] : memref<128x128xbf16, #tpu.memory_space<vmem>>, vector<128x128xbf16>
        %cst_14 = arith.constant dense<0.000000e+00> : vector<512x128xf32>
        %18 = tpu.matmul %16, %17, %cst_14 {dimension_numbers = #tpu.dot_dimension_numbers<[1], [0], [0], [1], [0, 0, 1, 1], [], []>} : vector<512x128xbf16>, vector<128x128xbf16>, vector<512x128xf32> -> vector<512x128xf32>
        %c0_15 = arith.constant 0 : index
        %c0_16 = arith.constant 0 : index
        %19 = vector.load %arg9[%c0_15, %c0_16] : memref<1x128xf32, #tpu.memory_space<vmem>>, vector<1x128xf32>
        %20 = vector.broadcast %19 : vector<1x128xf32> to vector<512x128xf32>
        %21 = arith.addf %18, %20 : vector<512x128xf32>
        %22 = arith.truncf %21 : vector<512x128xf32> to vector<512x128xbf16>
        %c0_17 = arith.constant 0 : index
        %c0_18 = arith.constant 0 : index
        %23 = vector.load %arg12[%c0_17, %c0_18] : memref<512x128xbf16, #tpu.memory_space<vmem>>, vector<512x128xbf16>
        tpu.vector_store %arg12[%c0_17, %c0_18], %22 {strides = array<i32>} : memref<512x128xbf16, #tpu.memory_space<vmem>>, vector<512x128xbf16>,
      } else {
      }
      %c0 = arith.constant 0 : index
      %c0_5 = arith.constant 0 : index
      %12 = vector.load %arg3[%c0, %c0_5] : memref<256x512xbf16, #tpu.memory_space<vmem>>, vector<256x512xbf16>
      %c0_6 = arith.constant 0 : index
      %c0_7 = arith.constant 0 : index
      %13 = vector.load %arg12[%c0_6, %c0_7] : memref<512x128xbf16, #tpu.memory_space<vmem>>, vector<512x128xbf16>
      %cst = arith.constant dense<0.000000e+00> : vector<256x128xf32>
      %14 = tpu.matmul %12, %13, %cst {dimension_numbers = #tpu.dot_dimension_numbers<[1], [0], [0], [1], [0, 0, 1, 1], [], []>} : vector<256x512xbf16>, vector<512x128xbf16>, vector<256x128xf32> -> vector<256x128xf32>
      %c0_8 = arith.constant 0 : index
      %c0_9 = arith.constant 0 : index
      %15 = vector.load %arg10[%c0_8, %c0_9] : memref<256x128xf32, #tpu.memory_space<vmem>>, vector<256x128xf32>
      tpu.vector_store %arg10[%c0_8, %c0_9], %14 {strides = array<i32>} : memref<256x128xf32, #tpu.memory_space<vmem>>, vector<256x128xf32>,
    } else {
    }
    return
  }
  func.func @transform_0(%arg0: i32, %arg1: i32) -> (i32, i32) {
    %c0_i32 = arith.constant 0 : i32
    %c0_i32_0 = arith.constant 0 : i32
    %c0_i32_1 = arith.constant 0 : i32
    return %c0_i32, %c0_i32_0 : i32, i32
  }
  func.func @transform_1(%arg0: i32, %arg1: i32) -> (i32, i32) {
    %c0_i32 = arith.constant 0 : i32
    %c0_i32_0 = arith.constant 0 : i32
    return %arg1, %c0_i32 : i32, i32
  }
  func.func @transform_2(%arg0: i32, %arg1: i32) -> (i32, i32) {
    %c0_i32 = arith.constant 0 : i32
    %c0_i32_0 = arith.constant 0 : i32
    %c0_i32_1 = arith.constant 0 : i32
    return %c0_i32, %c0_i32_0 : i32, i32
  }
  func.func @transform_3(%arg0: i32, %arg1: i32) -> (i32, i32) {
    %c0_i32 = arith.constant 0 : i32
    %c0_i32_0 = arith.constant 0 : i32
    %c0_i32_1 = arith.constant 0 : i32
    return %c0_i32, %c0_i32_0 : i32, i32
  }
  func.func @transform_4(%arg0: i32, %arg1: i32) -> (i32, i32) {
    %c0_i32 = arith.constant 0 : i32
    %c0_i32_0 = arith.constant 0 : i32
    %c0_i32_1 = arith.constant 0 : i32
    return %c0_i32, %c0_i32_0 : i32, i32
  }
  func.func @transform_5(%arg0: i32, %arg1: i32) -> (i32, i32) {
    %c0_i32 = arith.constant 0 : i32
    %c0_i32_0 = arith.constant 0 : i32
    %c0_i32_1 = arith.constant 0 : i32
    return %c0_i32, %c0_i32_0 : i32, i32
  }
  func.func @transform_6(%arg0: i32, %arg1: i32) -> (i32, i32) {
    %c0_i32 = arith.constant 0 : i32
    %c0_i32_0 = arith.constant 0 : i32
    %c0_i32_1 = arith.constant 0 : i32
    return %c0_i32, %c0_i32_0 : i32, i32
  }
  func.func @transform_7(%arg0: i32, %arg1: i32) -> (i32, i32) {
    %c0_i32 = arith.constant 0 : i32
    %c0_i32_0 = arith.constant 0 : i32
    %c0_i32_1 = arith.constant 0 : i32
    return %c0_i32, %c0_i32_0 : i32, i32
  }
  func.func @transform_8(%arg0: i32, %arg1: i32) -> (i32, i32) {
    %c0_i32 = arith.constant 0 : i32
    %c0_i32_0 = arith.constant 0 : i32
    return %arg1, %c0_i32 : i32, i32
  }
}

</mosaic_0001>

<bundles_post_ra>
// kernel: tpu_custom_call.1
= control target key start
LH: loop header
LB: loop body
LE: loop exit
PB: predicated region body
PF: predicated region fallthrough
CT: control target
= control target key end

     0   :  { %s7727_s0 = inlined_call_operand.hbm [shape: bf16[512,256], index: 0, kind: input, shape index: {}]   ;;  %s7728_s1 = inlined_call_operand.hbm [shape: bf16[512,512], index: 1, kind: input, shape index: {}]   ;;  %s7729_s2 = inlined_call_operand.hbm [shape: bf16[256,128], index: 2, kind: input, shape index: {}]   ;;  %s7730_s3 = inlined_call_operand.hbm [shape: bf16[128,128], index: 3, kind: input, shape index: {}]   ;;  %s7731_s4 = inlined_call_operand.hbm [shape: bf16[128,128], index: 4, kind: input, shape index: {}]   ;;  %s7732_s5 = inlined_call_operand.vmem [shape: f32[1,128], index: 5, kind: input, shape index: {}]   ;;  %s7733_s6 = inlined_call_operand.vmem [shape: f32[1,128], index: 6, kind: input, shape index: {}]   ;;  %s7734_s7 = inlined_call_operand.vmem [shape: f32[1,128], index: 7, kind: input, shape index: {}]   ;;  %s7735_s8 = inlined_call_operand.hbm [shape: f32[512,128], index: 8, kind: output, shape index: {}]  }
   0x1   :  { %7744 = sst [smem:[#allocation21_spill]] %s7729_s2 }
   0x2   :  { %7745 = sst [smem:[#allocation22_spill]] %s7733_s6 }
   0x3   :  { %7746 = sst [smem:[#allocation23_spill]] %s7734_s7 }
   0x4   :  { %7747 = sst [smem:[#allocation24_spill]] %s7735_s8 }
   0x5   :  { %13 = vsyncpa [#allocation5], 0 }
   0x6   :  { %14 = vsyncpa [#allocation8], 0 }
   0x7   :  { %16 = vsyncpa [#allocation8 + $0x1], 0 }
   0x8   :  { %17 = vsyncpa [#allocation11], 0 }
   0x9   :  { %18 = vsyncpa [#allocation6], 0 }
   0xa   :  { %20 = vsyncpa [#allocation6 + $0x1], 0  ;;  %s6894_s27 = smov 0   ;;  %s6896_s28 = smov 0  }
   0xb   :  { %s6898_s29 = smov 0   ;;  %s6900_s30 = smov 0  }
   0xc   :  { %s6902_s9 = smov 0   ;;  %s6904_s10 = smov 0  }
   0xd   :  { %s6906_s11 = smov 0   ;;  %s6908_s12 = smov 0  }
   0xe LB: > { %7748 = sst [smem:[#allocation19_spill]] %s6804_s27  ;;  %s6935_s13 = sadd.s32 4294967295, %s6832_s12   ;;  %s6832_s12 = sphi %s6908_s12, %s26_s12   ;;  %s6828_s11 = sphi %s6906_s11, %s7782_s11   ;;  %s6824_s10 = sphi %s6904_s10, %s7781_s10   ;;  %s6820_s9 = sphi %s6902_s9, %s7780_s9   ;;  %s6816_s30 = sphi %s6900_s30, %s7779_s30   ;;  %s6812_s29 = sphi %s6898_s29, %s7778_s29   ;;  %s6808_s28 = sphi %s6896_s28, %s7777_s28   ;;  %s6804_s27 = sphi %s6894_s27, %s7776_s27  }
   0xf   : > { %s4733_s14 = sadd.s32 4294967294, %s6832_s12   ;;  %p79_p0 = scmp.ne.s32.totalorder %s6808_s28, %s6804_s27 }
  0x10   : > { %p7737_p1 = scmp.eq.s32.totalorder %s6935_s13, 0  ;;  %p235_p3 = scmp.eq.s32.totalorder %s4733_s14, 5 }
  0x11   : > { %p4734_p5 = scmp.ge.s32.totalorder %s6832_s12, 1  ;;  %p242_p7 = scmp.lt.s32.totalorder %s6832_s12, 7 }
  0x12   : > { %p6944_p4 = por %p7737_p1, %p79_p0  ;;  %p6949_p6 = por %p235_p3, %p79_p0 }
  0x13   : > { %p6954_p8 = pnand %p4734_p5, %p242_p7  ;;  %s6834_s18 = smov [#allocation9]  }
  0x14   : > { %s7749_s15 = scalar_select %p6944_p4, 1, 0 }
  0x15   : > { %s7750_s16 = scalar_select %p6949_p6, 1, 0 }
  0x16   : > { %s7752_s17 = scalar_select %p6954_p8, 1, 0 }
  0x17   : > { %7751 = sst [smem:[#allocation20_spill]] %s7750_s16  ;;  %s267_s19 = sshll.u32 %s6834_s18, 4  ;;  %s268_s19 = int_to_ptr.vmem [resolvable:$true] %s267_s19 }
  0x18   : > { %p6056_p9 = pneg %p6954_p8  ;;  %s6835_s21 = smov [#allocation10]  }
  0x19   : > { %s280_s22 = sshll.u32 %s6835_s21, 4  ;;  %s7754_s2 = sld [smem:[#allocation21_spill]]  ;;  %s6966_s22 = int_to_ptr.vmem [resolvable:$true] %s280_s22 }
  0x1a   : > { %p6962_p10 = pnand %p6056_p9, %p7737_p1 }
  0x1c   : > { %p6976_p12 = pneg %p6962_p10 }
  0x1f   : > { %s6580_s25 = scalar_lea.hbm %s7754_s2, 2048 }
  0x20   : > { %p6581_p11 = scmp.ne.s32.totalorder %s7754_s2, %s6580_s25  ;;  %p6587_p3 = scmp.lt.u32.totalorder %s6580_s25, %s7754_s2 }
  0x22   : > { %p6583_p13 = pnand %p6976_p12, %p6581_p11 }
  0x24   : > { %p6584_p0 = pneg %p6583_p13 }
  0x26   : > { %p6589_p5 = pnand %p6587_p3, %p6584_p0 }
  0x28   : > { %6592 = shalt.err (!%p6589_p5)
}
  0x29   : > { %s6593_s23 = scalar_lea.vmem %s268_s19, 2048  ;;  %p6601_p2 = scmp.lt.s32.totalorder %s268_s19, %s268_s19 }
  0x2a   : > { %p6594_p7 = scmp.ne.s32.totalorder %s268_s19, %s6593_s23  ;;  %p6602_p6 = scmp.lt.s32.totalorder %s6593_s23, %s6593_s23 }
  0x2c   : > { %p6596_p9 = pnand %p6594_p7, %p6976_p12  ;;  %p6603_p4 = por %p6602_p6, %p6601_p2 }
  0x2e   : > { %p6597_p1 = pneg %p6596_p9 }
  0x30   : > { %p6604_p8 = pnand %p6603_p4, %p6597_p1 }
  0x32   : > { %6607 = shalt.err (!%p6604_p8)
}
  0x33   : > { %s7742_s24 = smov 64   ;;  %s7743_s26 = smov 4  }
  0x34   : > { %6062 = dma.hbm_to_vmem [thread:$0]  (!%p6962_p10), %s7754_s2, 2048, %s268_s19, [#allocation8], %s7742_s24, %s7742_s24, %s7743_s26  }
  0x35   : > { %s6608_s27 = scalar_lea.hbm %s7730_s3, 1024 }
  0x36   : > { %p6609_p1 = scmp.ne.s32.totalorder %s7730_s3, %s6608_s27  ;;  %p6615_p6 = scmp.lt.u32.totalorder %s6608_s27, %s7730_s3 }
  0x38   : > { %p6611_p2 = pnand %p6609_p1, %p6976_p12 }
  0x3a   : > { %p6612_p4 = pneg %p6611_p2 }
  0x3c   : > { %p6617_p8 = pnand %p6615_p6, %p6612_p4 }
  0x3e   : > { %6620 = shalt.err (!%p6617_p8)
}
  0x3f   : > { %s6621_s19 = scalar_lea.vmem %s6966_s22, 1024  ;;  %p6629_p3 = scmp.lt.s32.totalorder %s6966_s22, %s6966_s22 }
  0x40   : > { %p6622_p11 = scmp.ne.s32.totalorder %s6966_s22, %s6621_s19  ;;  %p6630_p5 = scmp.lt.s32.totalorder %s6621_s19, %s6621_s19 }
  0x42   : > { %p6624_p13 = pnand %p6622_p11, %p6976_p12  ;;  %p6631_p7 = por %p6630_p5, %p6629_p3 }
  0x44   : > { %p6625_p0 = pneg %p6624_p13 }
  0x46   : > { %p6632_p9 = pnand %p6631_p7, %p6625_p0 }
  0x48   : > { %6635 = shalt.err (!%p6632_p9)
}
  0x49   : > { %6065 = dma.hbm_to_vmem [thread:$0]  (!%p6962_p10), %s7730_s3, 1024, %s6966_s22, [#allocation11], %s7742_s24, %s7742_s24, %s7743_s26  }
  0x4a   : > { %s6838_s8 = smov [#allocation4]   ;;  %s6636_s14 = scalar_lea.hbm %s7727_s0, 8192 }
  0x4b   : > { %s254_s27 = sshll.u32 %s6838_s8, 4  ;;  %p6637_p1 = scmp.ne.s32.totalorder %s7727_s0, %s6636_s14  ;;  %s255_s27 = int_to_ptr.vmem [resolvable:$true] %s254_s27 }
  0x4c   : > { %p6643_p6 = scmp.lt.u32.totalorder %s6636_s14, %s7727_s0 }
  0x4d   : > { %p6639_p2 = pnand %p6637_p1, %p6976_p12 }
  0x4f   : > { %p6640_p4 = pneg %p6639_p2 }
  0x51   : > { %p6645_p8 = pnand %p6643_p6, %p6640_p4 }
  0x53   : > { %6648 = shalt.err (!%p6645_p8)
}
  0x54   : > { %s6649_s22 = scalar_lea.vmem %s255_s27, 8192  ;;  %p6657_p3 = scmp.lt.s32.totalorder %s255_s27, %s255_s27 }
  0x55   : > { %p6650_p11 = scmp.ne.s32.totalorder %s255_s27, %s6649_s22  ;;  %p6658_p5 = scmp.lt.s32.totalorder %s6649_s22, %s6649_s22 }
  0x57   : > { %p6652_p13 = pnand %p6650_p11, %p6976_p12  ;;  %p6659_p7 = por %p6658_p5, %p6657_p3 }
  0x59   : > { %p6653_p0 = pneg %p6652_p13 }
  0x5b   : > { %p6660_p9 = pnand %p6659_p7, %p6653_p0 }
  0x5d   : > { %6663 = shalt.err (!%p6660_p9)
}
  0x5e   : > { %s6839_s6 = smov 128   ;;  %s6840_s7 = smov 8  }
  0x5f   : > { %6059 = dma.hbm_to_vmem [thread:$0]  (!%p6962_p10), %s7727_s0, 8192, %s255_s27, [#allocation5], %s6839_s6, %s6839_s6, %s6840_s7  }
  0x60   : > { %s6841_s16 = smov [#allocation12]   ;;  %s6664_s23 = scalar_lea.hbm %s7731_s4, 1024 }
  0x61   : > { %s293_s25 = sshll.u32 %s6841_s16, 4  ;;  %p6665_p1 = scmp.ne.s32.totalorder %s7731_s4, %s6664_s23  ;;  %s294_s25 = int_to_ptr.vmem [resolvable:$true] %s293_s25 }
  0x62   : > { %p6671_p6 = scmp.lt.u32.totalorder %s6664_s23, %s7731_s4 }
  0x63   : > { %p6667_p2 = pnand %p6665_p1, %p6976_p12 }
  0x65   : > { %p6668_p4 = pneg %p6667_p2 }
  0x67   : > { %p6673_p8 = pnand %p6671_p6, %p6668_p4 }
  0x69   : > { %6676 = shalt.err (!%p6673_p8)
}
  0x6a   : > { %s6677_s27 = scalar_lea.vmem %s294_s25, 1024  ;;  %p6685_p3 = scmp.lt.s32.totalorder %s294_s25, %s294_s25 }
  0x6b   : > { %p6678_p11 = scmp.ne.s32.totalorder %s294_s25, %s6677_s27  ;;  %p6686_p5 = scmp.lt.s32.totalorder %s6677_s27, %s6677_s27 }
  0x6d   : > { %p6680_p13 = pnand %p6678_p11, %p6976_p12  ;;  %p6687_p7 = por %p6686_p5, %p6685_p3 }
  0x6f   : > { %p6681_p0 = pneg %p6680_p13 }
  0x71   : > { %p6688_p9 = pnand %p6687_p7, %p6681_p0 }
  0x73   : > { %6691 = shalt.err (!%p6688_p9)
}
  0x74   : > { %s7756_s6 = smov 4   ;;  %s7757_s7 = smov 64  }
  0x75   : > { %6068 = dma.hbm_to_vmem [thread:$0]  (!%p6962_p10), %s7731_s4, 1024, %s294_s25, [#allocation11], %s7757_s7, %s7757_s7, %s7756_s6  }
  0x76   : > { %s35_s18 = sadd.s32 1, %s6824_s10  ;;  %s38_s20 = sadd.s32 1, %s6828_s11 }
  0x77   : > { %p36_p12 = scmp.ge.s32.totalorder %s35_s18, 2  ;;  %s66_s2 = sadd.s32 1, %s6812_s29 }
  0x78   : > { %p73_p1 = scmp.ne.s32.totalorder %s6812_s29, %s6808_s28  ;;  %p74_p2 = scmp.eq.s32.totalorder %s6832_s12, 0 }
  0x79   : > { %s7784_s18 = smov (%p36_p12, %s35_s18), 0  ;;  %s7786_s20 = smov (!%p36_p12, %s38_s20), %s6828_s11 }
  0x7a   : > { %s63_s8 = ssub.s32 %s6824_s10, %s7784_s18  ;;  %p7071_p4 = por %p74_p2, %p73_p1 }
  0x7b   : > { %p40_p10 = scmp.ge.s32.totalorder %s7786_s20, 3  ;;  %p64_p6 = scmp.eq.s32.totalorder %s63_s8, 0 }
  0x7c   : > { %p7759_p8 = scmp.eq.s32.totalorder %s6935_s13, 5  ;;  %p6081_p13 = scmp.lt.s32.totalorder %s6832_s12, 6 }
  0x7d   : > { %s7788_s20 = smov (%p40_p10, %s7786_s20), 0  ;;  %s316_s21 = sand.u32 1, %s6832_s12  }
  0x7e   : > { %p7077_p11 = por %p7759_p8, %p73_p1  ;;  %s318_s23 = sand.u32 1, %s6812_s29  }
  0x7f   : > { %s7085_s14 = scalar_select %p64_p6, %s6812_s29, %s66_s2  }
  0x80   : > { %s4740_s19 = sshll.u32 %s318_s23, 9  ;;  %s5058_s22 = sshll.u32 %s6824_s10, 13 }
  0x81   : > { %s7093_s7 = scalar_lea.hbm %s7728_s1, %s5058_s22  ;;  %s320_s24 = scalar_lea.vmem [#allocation7], %s4740_s19 }
  0x82   : > { %s328_s26 = sshll.u32 %s320_s24, 4  ;;  %p7099_p0 = pnand %p6081_p13, %p7071_p4  ;;  %s7095_s26 = int_to_ptr.vmem [resolvable:$true] %s328_s26 }
  0x83   : > { %s7103_s8 = scalar_lea.sflag [#allocation8], %s316_s21  ;;  %s6692_s23 = scalar_lea.hbm %s7093_s7, 8192 }
  0x84   : > { %p6693_p3 = scmp.ne.s32.totalorder %s7093_s7, %s6692_s23  ;;  %p6694_p5 = pneg %p7099_p0 }
  0x85   : > { %s6697_s16 = scalar_lea.hbm %s7728_s1, 16384  ;;  %p6698_p12 = scmp.lt.u32.totalorder %s7093_s7, %s7728_s1 }
  0x86   : > { %p6695_p7 = pnand %p6694_p5, %p6693_p3  ;;  %p6699_p1 = scmp.lt.u32.totalorder %s6697_s16, %s6692_s23 }
  0x87   : > { %p6701_p4 = scmp.lt.u32.totalorder %s6692_s23, %s7093_s7 }
  0x88   : > { %p6696_p9 = pneg %p6695_p7  ;;  %p6700_p2 = por %p6699_p1, %p6698_p12 }
  0x8a   : > { %p6702_p10 = por %p6701_p4, %p6700_p2 }
  0x8c   : > { %p6703_p6 = pnand %p6702_p10, %p6696_p9 }
  0x8e   : > { %6706 = shalt.err (!%p6703_p6)
}
  0x8f   : > { %s6707_s21 = scalar_lea.vmem %s7095_s26, 8192  ;;  %s6842_s24 = smov [#allocation7]  }
  0x90   : > { %p6708_p8 = scmp.ne.s32.totalorder %s7095_s26, %s6707_s21  ;;  %s6712_s19 = sshll.u32 %s6842_s24, 4  ;;  %s6713_s19 = int_to_ptr.vmem [resolvable:$false] %s6712_s19 }
  0x91   : > { %s6714_s22 = scalar_lea.vmem %s6713_s19, 16384  ;;  %p6715_p7 = scmp.lt.s32.totalorder %s7095_s26, %s6713_s19 }
  0x92   : > { %p6710_p13 = pnand %p6708_p8, %p6694_p5  ;;  %p6716_p12 = scmp.lt.s32.totalorder %s6714_s22, %s6707_s21 }
  0x94   : > { %p6711_p3 = pneg %p6710_p13  ;;  %p6717_p1 = por %p6716_p12, %p6715_p7 }
  0x96   : > { %p6718_p2 = pnand %p6717_p1, %p6711_p3 }
  0x98   : > { %6721 = shalt.err (!%p6718_p2)
}
  0x99   : > { %s6843_s23 = smov 256   ;;  %s6844_s16 = smov 16  }
  0x9a   : > { %6072 = dma.hbm_to_vmem [thread:$0]  (!%p7099_p0), %s7093_s7, 8192, %s7095_s26, %s7103_s8, %s6843_s23, %s6843_s23, %s6844_s16  }
  0x9b   : > { %p7762_p5 = scmp.ne.s32.totalorder %s7752_s17, 0 }
  0x9c   : > { %p7763_p9 = scmp.eq.s32.totalorder (!%p7762_p5), %s6935_s13, 0 }
  0x9d   : > { %340 = sbr.rel (%p7762_p5) target bundleno = 2383 (0x94f), region = 52 }
  0xa4   : > { %6783 = dma.done.wait (%p7763_p9), [#allocation5], 8192   ;;  %p7764_p4 = pmov %p7763_p9 }
  0xa5   : > { %s346_s27 = sand.u32 1, %s6935_s13   ;;  %s7139_s6 = sand.u32 1, %s6808_s28  }
  0xa6   : > { %6785 = vsyncadd (%p7764_p4), [#allocation5], 4294959104  ;;  %s4746_s21 = sshll.u32 %s7139_s6, 9  ;;  %s347_s24 = scalar_lea.sflag [#allocation8], %s346_s27 }
  0xa7   : > { %s7142_s2 = scalar_lea.vmem [#allocation7], %s4746_s21  ;;  %p7765_p0 = scmp.ne.s32.totalorder %s7749_s15, 0 }
  0xa9   : > { %6787 = dma.done.wait (%p7765_p0), %s347_s24, 8192  }
  0xaa   : > { %6789 = vsyncadd (%p7765_p0), %s347_s24, 4294959104  ;;  %p7766_p10 = pmov %p7764_p4 }
  0xab   : > { %p7767_p6 = pmov %p7764_p4 }
  0xac   : > { %6791 = dma.done.wait (%p7766_p10), [#allocation8], 2048  }
  0xad   : > { %6793 = vsyncadd (%p7767_p6), [#allocation8], 4294965248  ;;  %p7768_p8 = pmov %p7764_p4 }
  0xae   : > { %p7769_p13 = pmov %p7764_p4 }
  0xaf   : > { %6795 = dma.done.wait (%p7768_p8), [#allocation11], 2048  }
  0xb0   : > { %6797 = vsyncadd (%p7769_p13), [#allocation11], 4294965248  ;;  %s4750_s17 = sshll.u32 %s7139_s6, 8  ;;  %p4751_p3 = scmp.ne.s32.totalorder %s6820_s9, 0 }
  0xb1   : > { %s7157_s7 = scalar_lea.vmem [#allocation13], %s4750_s17  ;;  %p4752_p7 = scmp.ne.s32.totalorder (!%p4751_p3), %s6816_s30, 0 }
  0xb2   : > { %401 = sbr.rel (%p4751_p3) target bundleno = 968 (0x3c8), region = 76 }
  0xb9   : > { %405 = sbr.rel (%p4752_p7) target bundleno = 589 (0x24d), region = 80  ;;  %v6164_v0 = vld [vmem:[#allocation9] sm:$0xff] (!%p4752_p7)   ;;  %v6845_v1 = vmov (!%p4752_p7), 0   ;;  %v6165_v2 = vld [vmem:[#allocation9 + $0x8] sm:$0xff] (!%p4752_p7)   ;;  %v6166_v3 = vld [vmem:[#allocation9 + $0x10] sm:$0xff] (!%p4752_p7)  }
  0xba   : > { %925 = vmatprep.subr.bf16.mxu0 (!%p4752_p7), %v6845_v1  ;;  %5972 = vmatprep.subr.bf16.mxu1 (!%p4752_p7), %v6845_v1  ;;  %v6167_v4 = vld [vmem:[#allocation9 + $0x18] sm:$0xff] (!%p4752_p7)   ;;  %v6168_v5 = vld [vmem:[#allocation9 + $0x20] sm:$0xff] (!%p4752_p7)   ;;  %v6169_v7 = vld [vmem:[#allocation9 + $0x28] sm:$0xff] (!%p4752_p7)  }
  0xbb   : > { %926 = vmatpush1.bf16.msra.mxu0 (!%p4752_p7), %v6164_v0  ;;  %5988 = vmatpush1.bf16.msra.mxu1 (!%p4752_p7), %v6164_v0  ;;  %v6182_v6 = vld [vmem:[#allocation4 + $0x4] ss:$8 sps:$4 sm:$0xff] (!%p4752_p7)   ;;  %v6170_v9 = vld [vmem:[#allocation9 + $0x30] sm:$0xff] (!%p4752_p7)   ;;  %v6171_v10 = vld [vmem:[#allocation9 + $0x38] sm:$0xff] (!%p4752_p7)  }
  0xbc   : > { %927 = vmatprep.subr.bf16.mxu0 (!%p4752_p7), %v6845_v1  ;;  %5973 = vmatprep.subr.bf16.mxu1 (!%p4752_p7), %v6845_v1  ;;  %v6185_v8 = vld [vmem:[#allocation4 + $0x104] ss:$8 sps:$4 sm:$0xff] (!%p4752_p7)   ;;  %v6174_v13 = vld [vmem:[#allocation9 + $0x50] sm:$0xff] (!%p4752_p7)   ;;  %v6175_v14 = vld [vmem:[#allocation9 + $0x58] sm:$0xff] (!%p4752_p7)  }
  0xbd   : > { %957 = vmatprep.mubr.bf16.mxu0 (!%p4752_p7), %v6182_v6  ;;  %1085 = vmatprep.mubr.bf16.mxu1 (!%p4752_p7), %v6185_v8  ;;  %v6172_v11 = vld [vmem:[#allocation9 + $0x40] sm:$0xff] (!%p4752_p7)   ;;  %v6173_v12 = vld [vmem:[#allocation9 + $0x48] sm:$0xff] (!%p4752_p7)   ;;  %v6178_v17 = vld [vmem:[#allocation9 + $0x70] sm:$0xff] (!%p4752_p7)  }
  0xbe   : > { %v6176_v15 = vld [vmem:[#allocation9 + $0x60] sm:$0xff] (!%p4752_p7)   ;;  %v6177_v16 = vld [vmem:[#allocation9 + $0x68] sm:$0xff] (!%p4752_p7)   ;;  %v6179_v18 = vld [vmem:[#allocation9 + $0x78] sm:$0xff] (!%p4752_p7)  }
  0xbf   : > { %928 = vmatpush1.bf16.msra.mxu0 (!%p4752_p7), %v6165_v2  ;;  %5989 = vmatpush1.bf16.msra.mxu1 (!%p4752_p7), %v6165_v2  ;;  %v6180_v19 = vld [vmem:[#allocation4] ss:$8 sps:$4 sm:$0xff] (!%p4752_p7)   ;;  %v6186_v21 = vld [vmem:[#allocation4 + $0x14] ss:$8 sps:$4 sm:$0xff] (!%p4752_p7)   ;;  %v6190_v23 = vld [vmem:[#allocation4 + $0x10] ss:$8 sps:$4 sm:$0xff] (!%p4752_p7)  }
  0xc0   : > { %929 = vmatprep.subr.bf16.mxu0 %v6845_v1  ;;  %5974 = vmatprep.subr.bf16.mxu1 %v6845_v1  ;;  %v6183_v20 = vld [vmem:[#allocation4 + $0x100] ss:$8 sps:$4 sm:$0xff]   ;;  %v6188_v22 = vld [vmem:[#allocation4 + $0x114] ss:$8 sps:$4 sm:$0xff]   ;;  %v6191_v24 = vld [vmem:[#allocation4 + $0x110] ss:$8 sps:$4 sm:$0xff]  }
  0xc1   : > { %v6192_v25 = vld [vmem:[#allocation4 + $0x24] ss:$8 sps:$4 sm:$0xff]   ;;  %v6196_v27 = vld [vmem:[#allocation4 + $0x20] ss:$8 sps:$4 sm:$0xff]   ;;  %v6198_v29 = vld [vmem:[#allocation4 + $0x34] ss:$8 sps:$4 sm:$0xff]  }
  0xc2   : > { %v6194_v26 = vld [vmem:[#allocation4 + $0x124] ss:$8 sps:$4 sm:$0xff]   ;;  %v6197_v28 = vld [vmem:[#allocation4 + $0x120] ss:$8 sps:$4 sm:$0xff]   ;;  %v6200_v30 = vld [vmem:[#allocation4 + $0x134] ss:$8 sps:$4 sm:$0xff]  }
  0xc3   : > { %930 = vmatpush1.bf16.msra.mxu0 %v6166_v3  ;;  %5990 = vmatpush1.bf16.msra.mxu1 %v6166_v3  ;;  %v6202_v31 = vld [vmem:[#allocation4 + $0x30] ss:$8 sps:$4 sm:$0xff]   ;;  %v6204_v33 = vld [vmem:[#allocation4 + $0x44] ss:$8 sps:$4 sm:$0xff]   ;;  %v6208_v35 = vld [vmem:[#allocation4 + $0x40] ss:$8 sps:$4 sm:$0xff]  }
  0xc4   : > { %931 = vmatprep.subr.bf16.mxu0 %v6845_v1  ;;  %5975 = vmatprep.subr.bf16.mxu1 %v6845_v1  ;;  %v6203_v32 = vld [vmem:[#allocation4 + $0x130] ss:$8 sps:$4 sm:$0xff]   ;;  %v6206_v34 = vld [vmem:[#allocation4 + $0x144] ss:$8 sps:$4 sm:$0xff]   ;;  %v6209_v36 = vld [vmem:[#allocation4 + $0x140] ss:$8 sps:$4 sm:$0xff]  }
  0xc5   : > { %v6210_v37 = vld [vmem:[#allocation4 + $0x54] ss:$8 sps:$4 sm:$0xff]   ;;  %v6214_v39 = vld [vmem:[#allocation4 + $0x50] ss:$8 sps:$4 sm:$0xff]   ;;  %v6216_v41 = vld [vmem:[#allocation4 + $0x64] ss:$8 sps:$4 sm:$0xff]  }
  0xc6   : > { %v6212_v38 = vld [vmem:[#allocation4 + $0x154] ss:$8 sps:$4 sm:$0xff]   ;;  %v6215_v40 = vld [vmem:[#allocation4 + $0x150] ss:$8 sps:$4 sm:$0xff]   ;;  %v6218_v42 = vld [vmem:[#allocation4 + $0x164] ss:$8 sps:$4 sm:$0xff]  }
  0xc7   : > { %932 = vmatpush1.bf16.msra.mxu0 %v6167_v4  ;;  %5991 = vmatpush1.bf16.msra.mxu1 %v6167_v4  ;;  %v6220_v43 = vld [vmem:[#allocation4 + $0x60] ss:$8 sps:$4 sm:$0xff]   ;;  %v6222_v45 = vld [vmem:[#allocation4 + $0x74] ss:$8 sps:$4 sm:$0xff]   ;;  %v6226_v47 = vld [vmem:[#allocation4 + $0x70] ss:$8 sps:$4 sm:$0xff]  }
  0xc8   : > { %933 = vmatprep.subr.bf16.mxu0 %v6845_v1  ;;  %5976 = vmatprep.subr.bf16.mxu1 %v6845_v1  ;;  %v6221_v44 = vld [vmem:[#allocation4 + $0x160] ss:$8 sps:$4 sm:$0xff]   ;;  %v6224_v46 = vld [vmem:[#allocation4 + $0x174] ss:$8 sps:$4 sm:$0xff]   ;;  %v6227_v48 = vld [vmem:[#allocation4 + $0x170] ss:$8 sps:$4 sm:$0xff]  }
  0xc9   : > { %v6228_v49 = vld [vmem:[#allocation4 + $0x84] ss:$8 sps:$4 sm:$0xff]   ;;  %v6232_v51 = vld [vmem:[#allocation4 + $0x80] ss:$8 sps:$4 sm:$0xff]   ;;  %v6234_v53 = vld [vmem:[#allocation4 + $0x94] ss:$8 sps:$4 sm:$0xff]  }
  0xca   : > { %v6230_v50 = vld [vmem:[#allocation4 + $0x184] ss:$8 sps:$4 sm:$0xff]   ;;  %v6233_v52 = vld [vmem:[#allocation4 + $0x180] ss:$8 sps:$4 sm:$0xff]   ;;  %v6236_v54 = vld [vmem:[#allocation4 + $0x194] ss:$8 sps:$4 sm:$0xff]  }
  0xcb   : > { %934 = vmatpush1.bf16.msra.mxu0 %v6168_v5  ;;  %5992 = vmatpush1.bf16.msra.mxu1 %v6168_v5  ;;  %v6238_v55 = vld [vmem:[#allocation4 + $0x90] ss:$8 sps:$4 sm:$0xff]   ;;  %v6240_v57 = vld [vmem:[#allocation4 + $0xa4] ss:$8 sps:$4 sm:$0xff]   ;;  %v6244_v59 = vld [vmem:[#allocation4 + $0xa0] ss:$8 sps:$4 sm:$0xff]  }
  0xcc   : > { %935 = vmatprep.subr.bf16.mxu0 %v6845_v1  ;;  %5977 = vmatprep.subr.bf16.mxu1 %v6845_v1  ;;  %v6239_v56 = vld [vmem:[#allocation4 + $0x190] ss:$8 sps:$4 sm:$0xff]   ;;  %v6242_v58 = vld [vmem:[#allocation4 + $0x1a4] ss:$8 sps:$4 sm:$0xff]   ;;  %v6245_v60 = vld [vmem:[#allocation4 + $0x1a0] ss:$8 sps:$4 sm:$0xff]  }
  0xcd   : > { %v6246_v61 = vld [vmem:[#allocation4 + $0xb4] ss:$8 sps:$4 sm:$0xff]   ;;  %v6250_v63 = vld [vmem:[#allocation4 + $0xb0] ss:$8 sps:$4 sm:$0xff]   ;;  %v6254_v2 = vld [vmem:[#allocation4 + $0x1c4] ss:$8 sps:$4 sm:$0xff]  }
  0xce   : > { %v6248_v62 = vld [vmem:[#allocation4 + $0x1b4] ss:$8 sps:$4 sm:$0xff]   ;;  %v6251_v0 = vld [vmem:[#allocation4 + $0x1b0] ss:$8 sps:$4 sm:$0xff]   ;;  %v6256_v3 = vld [vmem:[#allocation4 + $0xc0] ss:$8 sps:$4 sm:$0xff]  }
  0xcf   : > { %936 = vmatpush1.bf16.msra.mxu0 %v6169_v7  ;;  %5993 = vmatpush1.bf16.msra.mxu1 %v6169_v7  ;;  %v6257_v4 = vld [vmem:[#allocation4 + $0x1c0] ss:$8 sps:$4 sm:$0xff]   ;;  %v6258_v5 = vld [vmem:[#allocation4 + $0xd4] ss:$8 sps:$4 sm:$0xff]   ;;  %v6262_v7 = vld [vmem:[#allocation4 + $0xd0] ss:$8 sps:$4 sm:$0xff]  }
  0xd0   : > { %937 = vmatprep.subr.bf16.mxu0 %v6845_v1  ;;  %5978 = vmatprep.subr.bf16.mxu1 %v6845_v1  ;;  %v6260_v6 = vld [vmem:[#allocation4 + $0x1d4] ss:$8 sps:$4 sm:$0xff]   ;;  %v6263_v8 = vld [vmem:[#allocation4 + $0x1d0] ss:$8 sps:$4 sm:$0xff]  }
  0xd3   : > { %938 = vmatpush1.bf16.msra.mxu0 %v6170_v9  ;;  %5994 = vmatpush1.bf16.msra.mxu1 %v6170_v9  ;;  %v6264_v9 = vld [vmem:[#allocation4 + $0xe4] ss:$8 sps:$4 sm:$0xff]  }
  0xd4   : > { %939 = vmatprep.subr.bf16.mxu0 %v6845_v1  ;;  %5979 = vmatprep.subr.bf16.mxu1 %v6845_v1 }
  0xd7   : > { %940 = vmatpush1.bf16.msra.mxu0 %v6171_v10  ;;  %5995 = vmatpush1.bf16.msra.mxu1 %v6171_v10  ;;  %v6266_v10 = vld [vmem:[#allocation4 + $0x1e4] ss:$8 sps:$4 sm:$0xff]  }
  0xd8   : > { %941 = vmatprep.subr.bf16.mxu0 %v6845_v1  ;;  %5980 = vmatprep.subr.bf16.mxu1 %v6845_v1 }
  0xdb   : > { %942 = vmatpush1.bf16.msra.mxu0 %v6172_v11  ;;  %5996 = vmatpush1.bf16.msra.mxu1 %v6172_v11  ;;  %v6268_v11 = vld [vmem:[#allocation4 + $0xe0] ss:$8 sps:$4 sm:$0xff]  }
  0xdc   : > { %943 = vmatprep.subr.bf16.mxu0 %v6845_v1  ;;  %5981 = vmatprep.subr.bf16.mxu1 %v6845_v1 }
  0xdf   : > { %944 = vmatpush1.bf16.msra.mxu0 %v6173_v12  ;;  %5997 = vmatpush1.bf16.msra.mxu1 %v6173_v12  ;;  %v6269_v12 = vld [vmem:[#allocation4 + $0x1e0] ss:$8 sps:$4 sm:$0xff]  }
  0xe0   : > { %945 = vmatprep.subr.bf16.mxu0 %v6845_v1  ;;  %5982 = vmatprep.subr.bf16.mxu1 %v6845_v1 }
  0xe3   : > { %946 = vmatpush1.bf16.msra.mxu0 %v6174_v13  ;;  %5998 = vmatpush1.bf16.msra.mxu1 %v6174_v13  ;;  %v6270_v13 = vld [vmem:[#allocation4 + $0xf4] ss:$8 sps:$4 sm:$0xff]  }
  0xe4   : > { %947 = vmatprep.subr.bf16.mxu0 %v6845_v1  ;;  %5983 = vmatprep.subr.bf16.mxu1 %v6845_v1 }
  0xe7   : > { %948 = vmatpush1.bf16.msra.mxu0 %v6175_v14  ;;  %5999 = vmatpush1.bf16.msra.mxu1 %v6175_v14  ;;  %v6272_v14 = vld [vmem:[#allocation4 + $0x1f4] ss:$8 sps:$4 sm:$0xff]  }
  0xe8   : > { %949 = vmatprep.subr.bf16.mxu0 %v6845_v1  ;;  %5984 = vmatprep.subr.bf16.mxu1 %v6845_v1 }
  0xeb   : > { %950 = vmatpush1.bf16.msra.mxu0 %v6176_v15  ;;  %6000 = vmatpush1.bf16.msra.mxu1 %v6176_v15  ;;  %v6274_v15 = vld [vmem:[#allocation4 + $0xf0] ss:$8 sps:$4 sm:$0xff]  }
  0xec   : > { %951 = vmatprep.subr.bf16.mxu0 %v6845_v1  ;;  %5985 = vmatprep.subr.bf16.mxu1 %v6845_v1 }
  0xef   : > { %952 = vmatpush1.bf16.msra.mxu0 %v6177_v16  ;;  %6001 = vmatpush1.bf16.msra.mxu1 %v6177_v16  ;;  %v6275_v16 = vld [vmem:[#allocation4 + $0x1f0] ss:$8 sps:$4 sm:$0xff]  }
  0xf0   : > { %953 = vmatprep.subr.bf16.mxu0 %v6845_v1  ;;  %5986 = vmatprep.subr.bf16.mxu1 %v6845_v1 }
  0xf3   : > { %954 = vmatpush1.bf16.msra.mxu0 %v6178_v17  ;;  %6002 = vmatpush1.bf16.msra.mxu1 %v6178_v17  ;;  %v7196_v17 = vld [vmem:[%s7732_s5] ss:$0 sm:$0xff] }
  0xf4   : > { %955 = vmatprep.subr.bf16.mxu0 %v6845_v1  ;;  %5987 = vmatprep.subr.bf16.mxu1 %v6845_v1  ;;  %v6252_v1 = vld [vmem:[#allocation4 + $0xc4] ss:$8 sps:$4 sm:$0xff]  }
  0xf7   : > { %956 = vmatpush1.bf16.msra.mxu0 %v6179_v18  ;;  %6003 = vmatpush1.bf16.msra.mxu1 %v6179_v18 }
  0xfa   : > { %958 = vmatmul.mubr.bf16.vlgmr.msra.gmra.mrb[0].mxu0 %v6180_v19  ;;  %1086 = vmatmul.mubr.bf16.vlgmr.msra.gmra.mrb[0].mxu1 %v6183_v20 }
  0xfb   : > { %965 = vmatprep.mubr.bf16.mxu0 %v6186_v21  ;;  %1093 = vmatprep.mubr.bf16.mxu1 %v6188_v22 }
 0x102   : > { %966 = vmatmul.mubr.bf16.gmra.mrb[4].mxu0 %v6190_v23  ;;  %1094 = vmatmul.mubr.bf16.gmra.mrb[4].mxu1 %v6191_v24 }
 0x103   : > { %973 = vmatprep.mubr.bf16.mxu0 %v6192_v25  ;;  %1101 = vmatprep.mubr.bf16.mxu1 %v6194_v26 }
 0x10a   : > { %974 = vmatmul.mubr.bf16.gmra.mrb[8].mxu0 %v6196_v27  ;;  %1102 = vmatmul.mubr.bf16.gmra.mrb[8].mxu1 %v6197_v28 }
 0x10b   : > { %981 = vmatprep.mubr.bf16.mxu0 %v6198_v29  ;;  %1109 = vmatprep.mubr.bf16.mxu1 %v6200_v30 }
 0x112   : > { %982 = vmatmul.mubr.bf16.gmra.mrb[12].mxu0 %v6202_v31  ;;  %1110 = vmatmul.mubr.bf16.gmra.mrb[12].mxu1 %v6203_v32 }
 0x113   : > { %989 = vmatprep.mubr.bf16.mxu0 %v6204_v33  ;;  %1117 = vmatprep.mubr.bf16.mxu1 %v6206_v34 }
 0x11a   : > { %990 = vmatmul.mubr.bf16.gmra.mrb[16].mxu0 %v6208_v35  ;;  %1118 = vmatmul.mubr.bf16.gmra.mrb[16].mxu1 %v6209_v36 }
 0x11b   : > { %997 = vmatprep.mubr.bf16.mxu0 %v6210_v37  ;;  %1125 = vmatprep.mubr.bf16.mxu1 %v6212_v38 }
 0x122   : > { %998 = vmatmul.mubr.bf16.gmra.mrb[20].mxu0 %v6214_v39  ;;  %1126 = vmatmul.mubr.bf16.gmra.mrb[20].mxu1 %v6215_v40 }
 0x123   : > { %1005 = vmatprep.mubr.bf16.mxu0 %v6216_v41  ;;  %1133 = vmatprep.mubr.bf16.mxu1 %v6218_v42 }
 0x12a   : > { %1006 = vmatmul.mubr.bf16.gmra.mrb[24].mxu0 %v6220_v43  ;;  %1134 = vmatmul.mubr.bf16.gmra.mrb[24].mxu1 %v6221_v44 }
 0x12b   : > { %1013 = vmatprep.mubr.bf16.mxu0 %v6222_v45  ;;  %1141 = vmatprep.mubr.bf16.mxu1 %v6224_v46 }
 0x132   : > { %1014 = vmatmul.mubr.bf16.gmra.mrb[28].mxu0 %v6226_v47  ;;  %1142 = vmatmul.mubr.bf16.gmra.mrb[28].mxu1 %v6227_v48 }
 0x133   : > { %1021 = vmatprep.mubr.bf16.mxu0 %v6228_v49  ;;  %1149 = vmatprep.mubr.bf16.mxu1 %v6230_v50 }
 0x13a   : > { %1022 = vmatmul.mubr.bf16.gmra.mrb[32].mxu0 %v6232_v51  ;;  %1150 = vmatmul.mubr.bf16.gmra.mrb[32].mxu1 %v6233_v52 }
 0x13b   : > { %1029 = vmatprep.mubr.bf16.mxu0 %v6234_v53  ;;  %1157 = vmatprep.mubr.bf16.mxu1 %v6236_v54 }
 0x142   : > { %1030 = vmatmul.mubr.bf16.gmra.mrb[36].mxu0 %v6238_v55  ;;  %1158 = vmatmul.mubr.bf16.gmra.mrb[36].mxu1 %v6239_v56 }
 0x143   : > { %1037 = vmatprep.mubr.bf16.mxu0 %v6240_v57  ;;  %1165 = vmatprep.mubr.bf16.mxu1 %v6242_v58 }
 0x14a   : > { %1038 = vmatmul.mubr.bf16.gmra.mrb[40].mxu0 %v6244_v59  ;;  %1166 = vmatmul.mubr.bf16.gmra.mrb[40].mxu1 %v6245_v60 }
 0x14b   : > { %1045 = vmatprep.mubr.bf16.mxu0 %v6246_v61  ;;  %1173 = vmatprep.mubr.bf16.mxu1 %v6248_v62 }
 0x152   : > { %1046 = vmatmul.mubr.bf16.gmra.mrb[44].mxu0 %v6250_v63  ;;  %1174 = vmatmul.mubr.bf16.gmra.mrb[44].mxu1 %v6251_v0 }
 0x153   : > { %1053 = vmatprep.mubr.bf16.mxu0 %v6252_v1  ;;  %1181 = vmatprep.mubr.bf16.mxu1 %v6254_v2 }
 0x15a   : > { %1054 = vmatmul.mubr.bf16.gmra.mrb[48].mxu0 %v6256_v3  ;;  %1182 = vmatmul.mubr.bf16.gmra.mrb[48].mxu1 %v6257_v4 }
 0x15b   : > { %1061 = vmatprep.mubr.bf16.mxu0 %v6258_v5  ;;  %1189 = vmatprep.mubr.bf16.mxu1 %v6260_v6 }
 0x162   : > { %1062 = vmatmul.mubr.bf16.gmra.mrb[52].mxu0 %v6262_v7  ;;  %1190 = vmatmul.mubr.bf16.gmra.mrb[52].mxu1 %v6263_v8 }
 0x163   : > { %1069 = vmatprep.mubr.bf16.mxu0 %v6264_v9  ;;  %1197 = vmatprep.mubr.bf16.mxu1 %v6266_v10 }
 0x16a   : > { %1070 = vmatmul.mubr.bf16.gmra.mrb[56].mxu0 %v6268_v11  ;;  %1198 = vmatmul.mubr.bf16.gmra.mrb[56].mxu1 %v6269_v12 }
 0x16b   : > { %1077 = vmatprep.mubr.bf16.mxu0 %v6270_v13  ;;  %1205 = vmatprep.mubr.bf16.mxu1 %v6272_v14 }
 0x172   : > { %1078 = vmatmul.mubr.bf16.gmra.mrb[60].mxu0 %v6274_v15  ;;  %1206 = vmatmul.mubr.bf16.gmra.mrb[60].mxu1 %v6275_v16 }
 0x1cd   : > { %v959_v18 = vpop.f32.mrb[0].mxu0  ;;  %v1087_v19 = vpop.f32.mrb[0].mxu1 }
 0x1ce   : > { %v961_v20 = vpop.f32.mrb[1].mxu0  ;;  %v1089_v21 = vpop.f32.mrb[1].mxu1  ;;  %v960_v24 = vadd.f32 %v7196_v17, %v959_v18  ;;  %v1088_v25 = vadd.f32 %v7196_v17, %v1087_v19 }
 0x1cf   : > { %v962_v22 = vpop.f32.mrb[2].mxu0  ;;  %v1090_v23 = vpop.f32.mrb[2].mxu1 }
 0x1d0   : > { %v963_v26 = vadd.f32 %v7196_v17, %v962_v22  ;;  %v1091_v27 = vadd.f32 %v7196_v17, %v1090_v23  ;;  %v964_v28 = vpop.f32.mrb[3].mxu0  ;;  %v1092_v29 = vpop.f32.mrb[3].mxu1 }
 0x1d2   : > { %v1214_v30 = vpack.c.bf16 %v963_v26, %v960_v24  ;;  %v1230_v31 = vpack.c.bf16 %v1091_v27, %v1088_v25 }
 0x1d4   : > { %1246 = vst [vmem:[#allocation3] sm:$0xff] %v1214_v30  ;;  %1262 = vst [vmem:[#allocation3 + $0x80] sm:$0xff] %v1230_v31 }
 0x1d5   : > { %v967_v32 = vpop.f32.mrb[4].mxu0  ;;  %v1095_v33 = vpop.f32.mrb[4].mxu1 }
 0x1d6   : > { %v969_v34 = vpop.f32.mrb[5].mxu0  ;;  %v1097_v35 = vpop.f32.mrb[5].mxu1  ;;  %v968_v38 = vadd.f32 %v7196_v17, %v967_v32  ;;  %v1096_v39 = vadd.f32 %v7196_v17, %v1095_v33 }
 0x1d7   : > { %v970_v36 = vpop.f32.mrb[6].mxu0  ;;  %v1098_v37 = vpop.f32.mrb[6].mxu1 }
 0x1d8   : > { %v971_v40 = vadd.f32 %v7196_v17, %v970_v36  ;;  %v1099_v41 = vadd.f32 %v7196_v17, %v1098_v37  ;;  %v972_v42 = vpop.f32.mrb[7].mxu0  ;;  %v1100_v43 = vpop.f32.mrb[7].mxu1 }
 0x1da   : > { %v1215_v44 = vpack.c.bf16 %v971_v40, %v968_v38  ;;  %v1231_v45 = vpack.c.bf16 %v1099_v41, %v1096_v39 }
 0x1dc   : > { %1247 = vst [vmem:[#allocation3 + $0x8] sm:$0xff] %v1215_v44  ;;  %1263 = vst [vmem:[#allocation3 + $0x88] sm:$0xff] %v1231_v45 }
 0x1dd   : > { %v975_v46 = vpop.f32.mrb[8].mxu0  ;;  %v1103_v47 = vpop.f32.mrb[8].mxu1 }
 0x1de   : > { %v977_v48 = vpop.f32.mrb[9].mxu0  ;;  %v1105_v49 = vpop.f32.mrb[9].mxu1  ;;  %v976_v52 = vadd.f32 %v7196_v17, %v975_v46  ;;  %v1104_v53 = vadd.f32 %v7196_v17, %v1103_v47 }
 0x1df   : > { %v978_v50 = vpop.f32.mrb[10].mxu0  ;;  %v1106_v51 = vpop.f32.mrb[10].mxu1 }
 0x1e0   : > { %v979_v54 = vadd.f32 %v7196_v17, %v978_v50  ;;  %v1107_v55 = vadd.f32 %v7196_v17, %v1106_v51  ;;  %v980_v56 = vpop.f32.mrb[11].mxu0  ;;  %v1108_v57 = vpop.f32.mrb[11].mxu1 }
 0x1e2   : > { %v1216_v58 = vpack.c.bf16 %v979_v54, %v976_v52  ;;  %v1232_v59 = vpack.c.bf16 %v1107_v55, %v1104_v53 }
 0x1e4   : > { %1248 = vst [vmem:[#allocation3 + $0x10] sm:$0xff] %v1216_v58  ;;  %1264 = vst [vmem:[#allocation3 + $0x90] sm:$0xff] %v1232_v59 }
 0x1e5   : > { %v983_v60 = vpop.f32.mrb[12].mxu0  ;;  %v1111_v61 = vpop.f32.mrb[12].mxu1 }
 0x1e6   : > { %v985_v62 = vpop.f32.mrb[13].mxu0  ;;  %v1113_v63 = vpop.f32.mrb[13].mxu1  ;;  %v984_v2 = vadd.f32 %v7196_v17, %v983_v60  ;;  %v1112_v3 = vadd.f32 %v7196_v17, %v1111_v61 }
 0x1e7   : > { %v986_v0 = vpop.f32.mrb[14].mxu0  ;;  %v1114_v1 = vpop.f32.mrb[14].mxu1 }
 0x1e8   : > { %v987_v4 = vadd.f32 %v7196_v17, %v986_v0  ;;  %v1115_v5 = vadd.f32 %v7196_v17, %v1114_v1  ;;  %v988_v6 = vpop.f32.mrb[15].mxu0  ;;  %v1116_v7 = vpop.f32.mrb[15].mxu1 }
 0x1ea   : > { %v1217_v8 = vpack.c.bf16 %v987_v4, %v984_v2  ;;  %v1233_v9 = vpack.c.bf16 %v1115_v5, %v1112_v3 }
 0x1ec   : > { %1249 = vst [vmem:[#allocation3 + $0x18] sm:$0xff] %v1217_v8  ;;  %1265 = vst [vmem:[#allocation3 + $0x98] sm:$0xff] %v1233_v9 }
 0x1ed   : > { %v991_v10 = vpop.f32.mrb[16].mxu0  ;;  %v1119_v11 = vpop.f32.mrb[16].mxu1 }
 0x1ee   : > { %v993_v12 = vpop.f32.mrb[17].mxu0  ;;  %v1121_v13 = vpop.f32.mrb[17].mxu1  ;;  %v992_v16 = vadd.f32 %v7196_v17, %v991_v10  ;;  %v1120_v18 = vadd.f32 %v7196_v17, %v1119_v11 }
 0x1ef   : > { %v994_v14 = vpop.f32.mrb[18].mxu0  ;;  %v1122_v15 = vpop.f32.mrb[18].mxu1 }
 0x1f0   : > { %v995_v19 = vadd.f32 %v7196_v17, %v994_v14  ;;  %v1123_v20 = vadd.f32 %v7196_v17, %v1122_v15  ;;  %v996_v21 = vpop.f32.mrb[19].mxu0  ;;  %v1124_v22 = vpop.f32.mrb[19].mxu1 }
 0x1f2   : > { %v1218_v23 = vpack.c.bf16 %v995_v19, %v992_v16  ;;  %v1234_v24 = vpack.c.bf16 %v1123_v20, %v1120_v18 }
 0x1f4   : > { %1250 = vst [vmem:[#allocation3 + $0x20] sm:$0xff] %v1218_v23  ;;  %1266 = vst [vmem:[#allocation3 + $0xa0] sm:$0xff] %v1234_v24 }
 0x1f5   : > { %v999_v25 = vpop.f32.mrb[20].mxu0  ;;  %v1127_v26 = vpop.f32.mrb[20].mxu1 }
 0x1f6   : > { %v1001_v27 = vpop.f32.mrb[21].mxu0  ;;  %v1129_v28 = vpop.f32.mrb[21].mxu1  ;;  %v1000_v31 = vadd.f32 %v7196_v17, %v999_v25  ;;  %v1128_v32 = vadd.f32 %v7196_v17, %v1127_v26 }
 0x1f7   : > { %v1002_v29 = vpop.f32.mrb[22].mxu0  ;;  %v1130_v30 = vpop.f32.mrb[22].mxu1 }
 0x1f8   : > { %v1003_v33 = vadd.f32 %v7196_v17, %v1002_v29  ;;  %v1131_v34 = vadd.f32 %v7196_v17, %v1130_v30  ;;  %v1004_v35 = vpop.f32.mrb[23].mxu0  ;;  %v1132_v36 = vpop.f32.mrb[23].mxu1 }
 0x1fa   : > { %v1219_v37 = vpack.c.bf16 %v1003_v33, %v1000_v31  ;;  %v1235_v38 = vpack.c.bf16 %v1131_v34, %v1128_v32 }
 0x1fc   : > { %1251 = vst [vmem:[#allocation3 + $0x28] sm:$0xff] %v1219_v37  ;;  %1267 = vst [vmem:[#allocation3 + $0xa8] sm:$0xff] %v1235_v38 }
 0x1fd   : > { %v1007_v39 = vpop.f32.mrb[24].mxu0  ;;  %v1135_v40 = vpop.f32.mrb[24].mxu1 }
 0x1fe   : > { %v1009_v41 = vpop.f32.mrb[25].mxu0  ;;  %v1137_v42 = vpop.f32.mrb[25].mxu1  ;;  %v1008_v45 = vadd.f32 %v7196_v17, %v1007_v39  ;;  %v1136_v46 = vadd.f32 %v7196_v17, %v1135_v40 }
 0x1ff   : > { %v1010_v43 = vpop.f32.mrb[26].mxu0  ;;  %v1138_v44 = vpop.f32.mrb[26].mxu1 }
 0x200   : > { %v1011_v47 = vadd.f32 %v7196_v17, %v1010_v43  ;;  %v1139_v48 = vadd.f32 %v7196_v17, %v1138_v44  ;;  %v1012_v49 = vpop.f32.mrb[27].mxu0  ;;  %v1140_v50 = vpop.f32.mrb[27].mxu1 }
 0x202   : > { %v1220_v51 = vpack.c.bf16 %v1011_v47, %v1008_v45  ;;  %v1236_v52 = vpack.c.bf16 %v1139_v48, %v1136_v46 }
 0x204   : > { %1252 = vst [vmem:[#allocation3 + $0x30] sm:$0xff] %v1220_v51  ;;  %1268 = vst [vmem:[#allocation3 + $0xb0] sm:$0xff] %v1236_v52 }
 0x205   : > { %v1015_v53 = vpop.f32.mrb[28].mxu0  ;;  %v1143_v54 = vpop.f32.mrb[28].mxu1 }
 0x206   : > { %v1017_v55 = vpop.f32.mrb[29].mxu0  ;;  %v1145_v56 = vpop.f32.mrb[29].mxu1  ;;  %v1016_v59 = vadd.f32 %v7196_v17, %v1015_v53  ;;  %v1144_v60 = vadd.f32 %v7196_v17, %v1143_v54 }
 0x207   : > { %v1018_v57 = vpop.f32.mrb[30].mxu0  ;;  %v1146_v58 = vpop.f32.mrb[30].mxu1 }
 0x208   : > { %v1019_v61 = vadd.f32 %v7196_v17, %v1018_v57  ;;  %v1147_v62 = vadd.f32 %v7196_v17, %v1146_v58  ;;  %v1020_v63 = vpop.f32.mrb[31].mxu0  ;;  %v1148_v0 = vpop.f32.mrb[31].mxu1 }
 0x20a   : > { %v1221_v1 = vpack.c.bf16 %v1019_v61, %v1016_v59  ;;  %v1237_v2 = vpack.c.bf16 %v1147_v62, %v1144_v60 }
 0x20c   : > { %1253 = vst [vmem:[#allocation3 + $0x38] sm:$0xff] %v1221_v1  ;;  %1269 = vst [vmem:[#allocation3 + $0xb8] sm:$0xff] %v1237_v2 }
 0x20d   : > { %v1023_v3 = vpop.f32.mrb[32].mxu0  ;;  %v1151_v4 = vpop.f32.mrb[32].mxu1 }
 0x20e   : > { %v1025_v5 = vpop.f32.mrb[33].mxu0  ;;  %v1153_v6 = vpop.f32.mrb[33].mxu1  ;;  %v1024_v9 = vadd.f32 %v7196_v17, %v1023_v3  ;;  %v1152_v10 = vadd.f32 %v7196_v17, %v1151_v4 }
 0x20f   : > { %v1026_v7 = vpop.f32.mrb[34].mxu0  ;;  %v1154_v8 = vpop.f32.mrb[34].mxu1 }
 0x210   : > { %v1027_v11 = vadd.f32 %v7196_v17, %v1026_v7  ;;  %v1155_v12 = vadd.f32 %v7196_v17, %v1154_v8  ;;  %v1028_v13 = vpop.f32.mrb[35].mxu0  ;;  %v1156_v14 = vpop.f32.mrb[35].mxu1 }
 0x212   : > { %v1222_v15 = vpack.c.bf16 %v1027_v11, %v1024_v9  ;;  %v1238_v16 = vpack.c.bf16 %v1155_v12, %v1152_v10 }
 0x214   : > { %1254 = vst [vmem:[#allocation3 + $0x40] sm:$0xff] %v1222_v15  ;;  %1270 = vst [vmem:[#allocation3 + $0xc0] sm:$0xff] %v1238_v16 }
 0x215   : > { %v1031_v18 = vpop.f32.mrb[36].mxu0  ;;  %v1159_v19 = vpop.f32.mrb[36].mxu1 }
 0x216   : > { %v1033_v20 = vpop.f32.mrb[37].mxu0  ;;  %v1161_v21 = vpop.f32.mrb[37].mxu1  ;;  %v1032_v24 = vadd.f32 %v7196_v17, %v1031_v18  ;;  %v1160_v25 = vadd.f32 %v7196_v17, %v1159_v19 }
 0x217   : > { %v1034_v22 = vpop.f32.mrb[38].mxu0  ;;  %v1162_v23 = vpop.f32.mrb[38].mxu1 }
 0x218   : > { %v1035_v26 = vadd.f32 %v7196_v17, %v1034_v22  ;;  %v1163_v27 = vadd.f32 %v7196_v17, %v1162_v23  ;;  %v1036_v28 = vpop.f32.mrb[39].mxu0  ;;  %v1164_v29 = vpop.f32.mrb[39].mxu1 }
 0x21a   : > { %v1223_v30 = vpack.c.bf16 %v1035_v26, %v1032_v24  ;;  %v1239_v31 = vpack.c.bf16 %v1163_v27, %v1160_v25 }
 0x21c   : > { %1255 = vst [vmem:[#allocation3 + $0x48] sm:$0xff] %v1223_v30  ;;  %1271 = vst [vmem:[#allocation3 + $0xc8] sm:$0xff] %v1239_v31 }
 0x21d   : > { %v1039_v32 = vpop.f32.mrb[40].mxu0  ;;  %v1167_v33 = vpop.f32.mrb[40].mxu1 }
 0x21e   : > { %v1041_v34 = vpop.f32.mrb[41].mxu0  ;;  %v1169_v35 = vpop.f32.mrb[41].mxu1  ;;  %v1040_v38 = vadd.f32 %v7196_v17, %v1039_v32  ;;  %v1168_v39 = vadd.f32 %v7196_v17, %v1167_v33 }
 0x21f   : > { %v1042_v36 = vpop.f32.mrb[42].mxu0  ;;  %v1170_v37 = vpop.f32.mrb[42].mxu1 }
 0x220   : > { %v1043_v40 = vadd.f32 %v7196_v17, %v1042_v36  ;;  %v1171_v41 = vadd.f32 %v7196_v17, %v1170_v37  ;;  %v1044_v42 = vpop.f32.mrb[43].mxu0  ;;  %v1172_v43 = vpop.f32.mrb[43].mxu1 }
 0x222   : > { %v1224_v44 = vpack.c.bf16 %v1043_v40, %v1040_v38  ;;  %v1240_v45 = vpack.c.bf16 %v1171_v41, %v1168_v39 }
 0x224   : > { %1256 = vst [vmem:[#allocation3 + $0x50] sm:$0xff] %v1224_v44  ;;  %1272 = vst [vmem:[#allocation3 + $0xd0] sm:$0xff] %v1240_v45 }
 0x225   : > { %v1047_v46 = vpop.f32.mrb[44].mxu0  ;;  %v1175_v47 = vpop.f32.mrb[44].mxu1 }
 0x226   : > { %v1049_v48 = vpop.f32.mrb[45].mxu0  ;;  %v1177_v49 = vpop.f32.mrb[45].mxu1  ;;  %v1048_v52 = vadd.f32 %v7196_v17, %v1047_v46  ;;  %v1176_v53 = vadd.f32 %v7196_v17, %v1175_v47 }
 0x227   : > { %v1050_v50 = vpop.f32.mrb[46].mxu0  ;;  %v1178_v51 = vpop.f32.mrb[46].mxu1 }
 0x228   : > { %v1051_v54 = vadd.f32 %v7196_v17, %v1050_v50  ;;  %v1179_v55 = vadd.f32 %v7196_v17, %v1178_v51  ;;  %v1052_v56 = vpop.f32.mrb[47].mxu0  ;;  %v1180_v57 = vpop.f32.mrb[47].mxu1 }
 0x22a   : > { %v1225_v58 = vpack.c.bf16 %v1051_v54, %v1048_v52  ;;  %v1241_v59 = vpack.c.bf16 %v1179_v55, %v1176_v53 }
 0x22c   : > { %1257 = vst [vmem:[#allocation3 + $0x58] sm:$0xff] %v1225_v58  ;;  %1273 = vst [vmem:[#allocation3 + $0xd8] sm:$0xff] %v1241_v59 }
 0x22d   : > { %v1055_v60 = vpop.f32.mrb[48].mxu0  ;;  %v1183_v61 = vpop.f32.mrb[48].mxu1 }
 0x22e   : > { %v1057_v62 = vpop.f32.mrb[49].mxu0  ;;  %v1185_v63 = vpop.f32.mrb[49].mxu1  ;;  %v1056_v2 = vadd.f32 %v7196_v17, %v1055_v60  ;;  %v1184_v3 = vadd.f32 %v7196_v17, %v1183_v61 }
 0x22f   : > { %v1058_v0 = vpop.f32.mrb[50].mxu0  ;;  %v1186_v1 = vpop.f32.mrb[50].mxu1 }
 0x230   : > { %v1059_v4 = vadd.f32 %v7196_v17, %v1058_v0  ;;  %v1187_v5 = vadd.f32 %v7196_v17, %v1186_v1  ;;  %v1060_v6 = vpop.f32.mrb[51].mxu0  ;;  %v1188_v7 = vpop.f32.mrb[51].mxu1 }
 0x232   : > { %v1226_v8 = vpack.c.bf16 %v1059_v4, %v1056_v2  ;;  %v1242_v9 = vpack.c.bf16 %v1187_v5, %v1184_v3 }
 0x234   : > { %1258 = vst [vmem:[#allocation3 + $0x60] sm:$0xff] %v1226_v8  ;;  %1274 = vst [vmem:[#allocation3 + $0xe0] sm:$0xff] %v1242_v9 }
 0x235   : > { %v1063_v10 = vpop.f32.mrb[52].mxu0  ;;  %v1191_v11 = vpop.f32.mrb[52].mxu1 }
 0x236   : > { %v1065_v12 = vpop.f32.mrb[53].mxu0  ;;  %v1193_v13 = vpop.f32.mrb[53].mxu1  ;;  %v1064_v16 = vadd.f32 %v7196_v17, %v1063_v10  ;;  %v1192_v18 = vadd.f32 %v7196_v17, %v1191_v11 }
 0x237   : > { %v1066_v14 = vpop.f32.mrb[54].mxu0  ;;  %v1194_v15 = vpop.f32.mrb[54].mxu1 }
 0x238   : > { %v1067_v19 = vadd.f32 %v7196_v17, %v1066_v14  ;;  %v1195_v20 = vadd.f32 %v7196_v17, %v1194_v15  ;;  %v1068_v21 = vpop.f32.mrb[55].mxu0  ;;  %v1196_v22 = vpop.f32.mrb[55].mxu1 }
 0x23a   : > { %v1227_v23 = vpack.c.bf16 %v1067_v19, %v1064_v16  ;;  %v1243_v24 = vpack.c.bf16 %v1195_v20, %v1192_v18 }
 0x23c   : > { %1259 = vst [vmem:[#allocation3 + $0x68] sm:$0xff] %v1227_v23  ;;  %1275 = vst [vmem:[#allocation3 + $0xe8] sm:$0xff] %v1243_v24 }
 0x23d   : > { %v1071_v25 = vpop.f32.mrb[56].mxu0  ;;  %v1199_v26 = vpop.f32.mrb[56].mxu1 }
 0x23e   : > { %v1073_v27 = vpop.f32.mrb[57].mxu0  ;;  %v1201_v28 = vpop.f32.mrb[57].mxu1  ;;  %v1072_v31 = vadd.f32 %v7196_v17, %v1071_v25  ;;  %v1200_v32 = vadd.f32 %v7196_v17, %v1199_v26 }
 0x23f   : > { %v1074_v29 = vpop.f32.mrb[58].mxu0  ;;  %v1202_v30 = vpop.f32.mrb[58].mxu1 }
 0x240   : > { %v1075_v33 = vadd.f32 %v7196_v17, %v1074_v29  ;;  %v1203_v34 = vadd.f32 %v7196_v17, %v1202_v30  ;;  %v1076_v35 = vpop.f32.mrb[59].mxu0  ;;  %v1204_v36 = vpop.f32.mrb[59].mxu1 }
 0x242   : > { %v1228_v37 = vpack.c.bf16 %v1075_v33, %v1072_v31  ;;  %v1244_v38 = vpack.c.bf16 %v1203_v34, %v1200_v32 }
 0x244   : > { %1260 = vst [vmem:[#allocation3 + $0x70] sm:$0xff] %v1228_v37  ;;  %1276 = vst [vmem:[#allocation3 + $0xf0] sm:$0xff] %v1244_v38 }
 0x245   : > { %v1079_v39 = vpop.f32.mrb[60].mxu0  ;;  %v1207_v40 = vpop.f32.mrb[60].mxu1 }
 0x246   : > { %v1081_v41 = vpop.f32.mrb[61].mxu0  ;;  %v1209_v42 = vpop.f32.mrb[61].mxu1  ;;  %v1080_v45 = vadd.f32 %v7196_v17, %v1079_v39  ;;  %v1208_v46 = vadd.f32 %v7196_v17, %v1207_v40 }
 0x247   : > { %v1082_v43 = vpop.f32.mrb[62].mxu0  ;;  %v1210_v44 = vpop.f32.mrb[62].mxu1 }
 0x248   : > { %v1083_v47 = vadd.f32 %v7196_v17, %v1082_v43  ;;  %v1211_v48 = vadd.f32 %v7196_v17, %v1210_v44  ;;  %v1084_v49 = vpop.f32.mrb[63].mxu0  ;;  %v1212_v50 = vpop.f32.mrb[63].mxu1 }
 0x24a   : > { %v1229_v51 = vpack.c.bf16 %v1083_v47, %v1080_v45  ;;  %v1245_v52 = vpack.c.bf16 %v1211_v48, %v1208_v46 }
 0x24c   : > { %1261 = vst [vmem:[#allocation3 + $0x78] sm:$0xff] %v1229_v51  ;;  %1277 = vst [vmem:[#allocation3 + $0xf8] sm:$0xff] %v1245_v52 }
 0x24d PF: > { %v1350_v53 = vld [vmem:[#allocation3 + $0x40] sm:$0xff]  ;;  %v1351_v57 = vld [vmem:[#allocation3 + $0x48] sm:$0xff]  ;;  %v1352_v60 = vld [vmem:[#allocation3 + $0x50] sm:$0xff]  ;;  %s4898_s26 = sshll.u32 %s6816_s30, 8 }
 0x24e   : > { %v1366_v54 = vld [vmem:[#allocation3 + $0xc0] sm:$0xff]  ;;  %5060 = vmatprep.subr.bf16.mxu0 %v1350_v53  ;;  %v1367_v58 = vld [vmem:[#allocation3 + $0xc8] sm:$0xff]  ;;  %v1368_v61 = vld [vmem:[#allocation3 + $0xd0] sm:$0xff]  ;;  %s2065_s8 = sshra.s32 %s4898_s26, 4 }
 0x24f   : > { %v1342_v55 = vld [vmem:[#allocation3] sm:$0xff]  ;;  %5172 = vmatprep.subr.bf16.mxu1 %v1366_v54  ;;  %v1343_v17 = vld [vmem:[#allocation3 + $0x8] sm:$0xff]  ;;  %v1344_v62 = vld [vmem:[#allocation3 + $0x10] sm:$0xff]  ;;  %s4899_s19 = sshll.u32 %s2065_s8, 3 }
 0x250   : > { %v1358_v56 = vld [vmem:[#allocation3 + $0x80] sm:$0xff]  ;;  %5061 = vmatpush3.bf16.msra.mxu0 %v1342_v55  ;;  %v1359_v59 = vld [vmem:[#allocation3 + $0x88] sm:$0xff]  ;;  %v1360_v63 = vld [vmem:[#allocation3 + $0x90] sm:$0xff]  ;;  %s7327_s22 = scalar_lea.vmem [#allocation2], %s4899_s19 }
 0x251   : > { %5173 = vmatpush3.bf16.msra.mxu1 %v1358_v56  ;;  %5062 = vmatprep.subr.bf16.mxu0 %v1351_v57  ;;  %v1353_v0 = vld [vmem:[#allocation3 + $0x58] sm:$0xff]  ;;  %v1354_v4 = vld [vmem:[#allocation3 + $0x60] sm:$0xff]  ;;  %v1355_v10 = vld [vmem:[#allocation3 + $0x68] sm:$0xff] }
 0x252   : > { %5174 = vmatprep.subr.bf16.mxu1 %v1367_v58  ;;  %v1369_v1 = vld [vmem:[#allocation3 + $0xd8] sm:$0xff]  ;;  %v6278_v5 = vld [vmem:[%s7142_s2 + $0x4] ss:$16 sps:$4 sm:$0xff]   ;;  %v1371_v11 = vld [vmem:[#allocation3 + $0xe8] sm:$0xff] }
 0x253   : > { %v1345_v2 = vld [vmem:[#allocation3 + $0x18] sm:$0xff]  ;;  %v1370_v6 = vld [vmem:[#allocation3 + $0xe0] sm:$0xff]  ;;  %1726 = vmatprep.mubr.bf16.mxu0 %v6278_v5  ;;  %v1347_v12 = vld [vmem:[#allocation3 + $0x28] sm:$0xff] }
 0x254   : > { %5063 = vmatpush3.bf16.msra.mxu0 %v1343_v17  ;;  %v1361_v3 = vld [vmem:[#allocation3 + $0x98] sm:$0xff]  ;;  %v1346_v8 = vld [vmem:[#allocation3 + $0x20] sm:$0xff]  ;;  %v1363_v13 = vld [vmem:[#allocation3 + $0xa8] sm:$0xff] }
 0x255   : > { %5175 = vmatpush3.bf16.msra.mxu1 %v1359_v59  ;;  %5064 = vmatprep.subr.bf16.mxu0 %v1352_v60  ;;  %v6281_v7 = vld [vmem:[%s7142_s2 + $0xc] ss:$16 sps:$4 sm:$0xff]   ;;  %v1362_v9 = vld [vmem:[#allocation3 + $0xa0] sm:$0xff]  ;;  %v1356_v14 = vld [vmem:[#allocation3 + $0x70] sm:$0xff] }
 0x256   : > { %5176 = vmatprep.subr.bf16.mxu1 %v1368_v61  ;;  %1887 = vmatprep.mubr.bf16.mxu1 %v6281_v7  ;;  %v1372_v15 = vld [vmem:[#allocation3 + $0xf0] sm:$0xff]  ;;  %v1357_v19 = vld [vmem:[#allocation3 + $0x78] sm:$0xff] }
 0x257   : > { %v1348_v16 = vld [vmem:[#allocation3 + $0x30] sm:$0xff]  ;;  %v1373_v20 = vld [vmem:[#allocation3 + $0xf8] sm:$0xff] }
 0x258   : > { %5065 = vmatpush3.bf16.msra.mxu0 %v1344_v62  ;;  %v1364_v18 = vld [vmem:[#allocation3 + $0xb0] sm:$0xff]  ;;  %v1349_v21 = vld [vmem:[#allocation3 + $0x38] sm:$0xff] }
 0x259   : > { %5177 = vmatpush3.bf16.msra.mxu1 %v1360_v63  ;;  %5066 = vmatprep.subr.bf16.mxu0 %v1353_v0  ;;  %v1365_v22 = vld [vmem:[#allocation3 + $0xb8] sm:$0xff]  ;;  %v6276_v23 = vld [vmem:[%s7142_s2] ss:$16 sps:$4 sm:$0xff]   ;;  %v6282_v25 = vld [vmem:[%s7142_s2 + $0x24] ss:$16 sps:$4 sm:$0xff]  }
 0x25a   : > { %5178 = vmatprep.subr.bf16.mxu1 %v1369_v1  ;;  %v6279_v24 = vld [vmem:[%s7142_s2 + $0x8] ss:$16 sps:$4 sm:$0xff]   ;;  %v6284_v26 = vld [vmem:[%s7142_s2 + $0x2c] ss:$16 sps:$4 sm:$0xff]   ;;  %v6286_v27 = vld [vmem:[%s7142_s2 + $0x20] ss:$16 sps:$4 sm:$0xff]  }
 0x25b   : > { %v6287_v28 = vld [vmem:[%s7142_s2 + $0x28] ss:$16 sps:$4 sm:$0xff]   ;;  %v6288_v29 = vld [vmem:[%s7142_s2 + $0x44] ss:$16 sps:$4 sm:$0xff]   ;;  %v6290_v30 = vld [vmem:[%s7142_s2 + $0x4c] ss:$16 sps:$4 sm:$0xff]  }
 0x25c   : > { %5067 = vmatpush3.bf16.msra.mxu0 %v1345_v2  ;;  %v6292_v31 = vld [vmem:[%s7142_s2 + $0x40] ss:$16 sps:$4 sm:$0xff]   ;;  %v6293_v32 = vld [vmem:[%s7142_s2 + $0x48] ss:$16 sps:$4 sm:$0xff]   ;;  %v6294_v33 = vld [vmem:[%s7142_s2 + $0x64] ss:$16 sps:$4 sm:$0xff]  }
 0x25d   : > { %5179 = vmatpush3.bf16.msra.mxu1 %v1361_v3  ;;  %5068 = vmatprep.subr.bf16.mxu0 %v1354_v4  ;;  %v6296_v34 = vld [vmem:[%s7142_s2 + $0x6c] ss:$16 sps:$4 sm:$0xff]   ;;  %v6298_v35 = vld [vmem:[%s7142_s2 + $0x60] ss:$16 sps:$4 sm:$0xff]   ;;  %v6299_v36 = vld [vmem:[%s7142_s2 + $0x68] ss:$16 sps:$4 sm:$0xff]  }
 0x25e   : > { %5180 = vmatprep.subr.bf16.mxu1 %v1370_v6  ;;  %v6300_v37 = vld [vmem:[%s7142_s2 + $0x84] ss:$16 sps:$4 sm:$0xff]   ;;  %v6302_v38 = vld [vmem:[%s7142_s2 + $0x8c] ss:$16 sps:$4 sm:$0xff]   ;;  %v6304_v39 = vld [vmem:[%s7142_s2 + $0x80] ss:$16 sps:$4 sm:$0xff]  }
 0x25f   : > { %v6305_v40 = vld [vmem:[%s7142_s2 + $0x88] ss:$16 sps:$4 sm:$0xff]   ;;  %v6306_v41 = vld [vmem:[%s7142_s2 + $0xa4] ss:$16 sps:$4 sm:$0xff]   ;;  %v6308_v42 = vld [vmem:[%s7142_s2 + $0xac] ss:$16 sps:$4 sm:$0xff]  }
 0x260   : > { %5069 = vmatpush3.bf16.msra.mxu0 %v1346_v8  ;;  %v6310_v43 = vld [vmem:[%s7142_s2 + $0xa0] ss:$16 sps:$4 sm:$0xff]   ;;  %v6311_v44 = vld [vmem:[%s7142_s2 + $0xa8] ss:$16 sps:$4 sm:$0xff]   ;;  %v6312_v45 = vld [vmem:[%s7142_s2 + $0xc4] ss:$16 sps:$4 sm:$0xff]  }
 0x261   : > { %5181 = vmatpush3.bf16.msra.mxu1 %v1362_v9  ;;  %5070 = vmatprep.subr.bf16.mxu0 %v1355_v10  ;;  %v6314_v46 = vld [vmem:[%s7142_s2 + $0xcc] ss:$16 sps:$4 sm:$0xff]   ;;  %v6316_v47 = vld [vmem:[%s7142_s2 + $0xc0] ss:$16 sps:$4 sm:$0xff]   ;;  %v6317_v48 = vld [vmem:[%s7142_s2 + $0xc8] ss:$16 sps:$4 sm:$0xff]  }
 0x262   : > { %5182 = vmatprep.subr.bf16.mxu1 %v1371_v11  ;;  %v6318_v49 = vld [vmem:[%s7142_s2 + $0xe4] ss:$16 sps:$4 sm:$0xff]   ;;  %v6320_v50 = vld [vmem:[%s7142_s2 + $0xec] ss:$16 sps:$4 sm:$0xff]   ;;  %v6322_v51 = vld [vmem:[%s7142_s2 + $0xe0] ss:$16 sps:$4 sm:$0xff]  }
 0x263   : > { %v6323_v52 = vld [vmem:[%s7142_s2 + $0xe8] ss:$16 sps:$4 sm:$0xff]   ;;  %v6324_v53 = vld [vmem:[%s7142_s2 + $0x104] ss:$16 sps:$4 sm:$0xff]   ;;  %v6326_v54 = vld [vmem:[%s7142_s2 + $0x10c] ss:$16 sps:$4 sm:$0xff]  }
 0x264   : > { %5071 = vmatpush3.bf16.msra.mxu0 %v1347_v12  ;;  %v6328_v55 = vld [vmem:[%s7142_s2 + $0x100] ss:$16 sps:$4 sm:$0xff]   ;;  %v6329_v56 = vld [vmem:[%s7142_s2 + $0x108] ss:$16 sps:$4 sm:$0xff]   ;;  %v6330_v57 = vld [vmem:[%s7142_s2 + $0x124] ss:$16 sps:$4 sm:$0xff]  }
 0x265   : > { %5183 = vmatpush3.bf16.msra.mxu1 %v1363_v13  ;;  %5072 = vmatprep.subr.bf16.mxu0 %v1356_v14  ;;  %v6332_v58 = vld [vmem:[%s7142_s2 + $0x12c] ss:$16 sps:$4 sm:$0xff]   ;;  %v6334_v17 = vld [vmem:[%s7142_s2 + $0x120] ss:$16 sps:$4 sm:$0xff]   ;;  %v6335_v59 = vld [vmem:[%s7142_s2 + $0x128] ss:$16 sps:$4 sm:$0xff]  }
 0x266   : > { %5184 = vmatprep.subr.bf16.mxu1 %v1372_v15  ;;  %v6336_v60 = vld [vmem:[%s7142_s2 + $0x144] ss:$16 sps:$4 sm:$0xff]   ;;  %v6338_v61 = vld [vmem:[%s7142_s2 + $0x14c] ss:$16 sps:$4 sm:$0xff]   ;;  %v6340_v62 = vld [vmem:[%s7142_s2 + $0x140] ss:$16 sps:$4 sm:$0xff]  }
 0x267   : > { %v6341_v63 = vld [vmem:[%s7142_s2 + $0x148] ss:$16 sps:$4 sm:$0xff]   ;;  %v6342_v0 = vld [vmem:[%s7142_s2 + $0x164] ss:$16 sps:$4 sm:$0xff]   ;;  %v6344_v1 = vld [vmem:[%s7142_s2 + $0x16c] ss:$16 sps:$4 sm:$0xff]  }
 0x268   : > { %5073 = vmatpush3.bf16.msra.mxu0 %v1348_v16  ;;  %v6346_v2 = vld [vmem:[%s7142_s2 + $0x160] ss:$16 sps:$4 sm:$0xff]   ;;  %v6347_v3 = vld [vmem:[%s7142_s2 + $0x168] ss:$16 sps:$4 sm:$0xff]   ;;  %v6348_v4 = vld [vmem:[%s7142_s2 + $0x184] ss:$16 sps:$4 sm:$0xff]  }
 0x269   : > { %5185 = vmatpush3.bf16.msra.mxu1 %v1364_v18  ;;  %5074 = vmatprep.subr.bf16.mxu0 %v1357_v19  ;;  %v6350_v5 = vld [vmem:[%s7142_s2 + $0x18c] ss:$16 sps:$4 sm:$0xff]   ;;  %v6352_v6 = vld [vmem:[%s7142_s2 + $0x180] ss:$16 sps:$4 sm:$0xff]   ;;  %v6353_v7 = vld [vmem:[%s7142_s2 + $0x188] ss:$16 sps:$4 sm:$0xff]  }
 0x26a   : > { %5186 = vmatprep.subr.bf16.mxu1 %v1373_v20  ;;  %v6354_v8 = vld [vmem:[%s7142_s2 + $0x1a4] ss:$16 sps:$4 sm:$0xff]   ;;  %v6356_v9 = vld [vmem:[%s7142_s2 + $0x1ac] ss:$16 sps:$4 sm:$0xff]   ;;  %v6358_v10 = vld [vmem:[%s7142_s2 + $0x1a0] ss:$16 sps:$4 sm:$0xff]  }
 0x26b   : > { %v6359_v11 = vld [vmem:[%s7142_s2 + $0x1a8] ss:$16 sps:$4 sm:$0xff]   ;;  %v6360_v12 = vld [vmem:[%s7142_s2 + $0x1c4] ss:$16 sps:$4 sm:$0xff]   ;;  %v6362_v13 = vld [vmem:[%s7142_s2 + $0x1cc] ss:$16 sps:$4 sm:$0xff]  }
 0x26c   : > { %5075 = vmatpush3.bf16.msra.mxu0 %v1349_v21  ;;  %v6364_v14 = vld [vmem:[%s7142_s2 + $0x1c0] ss:$16 sps:$4 sm:$0xff]   ;;  %v6365_v15 = vld [vmem:[%s7142_s2 + $0x1c8] ss:$16 sps:$4 sm:$0xff]   ;;  %v6366_v16 = vld [vmem:[%s7142_s2 + $0x1e4] ss:$16 sps:$4 sm:$0xff]  }
 0x26d   : > { %5187 = vmatpush3.bf16.msra.mxu1 %v1365_v22  ;;  %v6368_v18 = vld [vmem:[%s7142_s2 + $0x1ec] ss:$16 sps:$4 sm:$0xff]   ;;  %v6370_v19 = vld [vmem:[%s7142_s2 + $0x1e0] ss:$16 sps:$4 sm:$0xff]   ;;  %v6371_v20 = vld [vmem:[%s7142_s2 + $0x1e8] ss:$16 sps:$4 sm:$0xff]  }
 0x26f   : > { %1727 = vmatmul.mubr.bf16.vlgmr.msra.gmra.mrb[0].mxu0 %v6276_v23 }
 0x270   : > { %1888 = vmatmul.mubr.bf16.vlgmr.msra.gmra.mrb[0].mxu1 %v6279_v24  ;;  %1734 = vmatprep.mubr.bf16.mxu0 %v6282_v25 }
 0x271   : > { %1895 = vmatprep.mubr.bf16.mxu1 %v6284_v26 }
 0x277   : > { %1735 = vmatmul.mubr.bf16.gmra.mrb[4].mxu0 %v6286_v27 }
 0x278   : > { %1896 = vmatmul.mubr.bf16.gmra.mrb[4].mxu1 %v6287_v28  ;;  %1742 = vmatprep.mubr.bf16.mxu0 %v6288_v29 }
 0x279   : > { %1903 = vmatprep.mubr.bf16.mxu1 %v6290_v30 }
 0x27f   : > { %1743 = vmatmul.mubr.bf16.gmra.mrb[8].mxu0 %v6292_v31 }
 0x280   : > { %1904 = vmatmul.mubr.bf16.gmra.mrb[8].mxu1 %v6293_v32  ;;  %1750 = vmatprep.mubr.bf16.mxu0 %v6294_v33 }
 0x281   : > { %1911 = vmatprep.mubr.bf16.mxu1 %v6296_v34 }
 0x287   : > { %1751 = vmatmul.mubr.bf16.gmra.mrb[12].mxu0 %v6298_v35 }
 0x288   : > { %1912 = vmatmul.mubr.bf16.gmra.mrb[12].mxu1 %v6299_v36  ;;  %1758 = vmatprep.mubr.bf16.mxu0 %v6300_v37 }
 0x289   : > { %1919 = vmatprep.mubr.bf16.mxu1 %v6302_v38 }
 0x28f   : > { %1759 = vmatmul.mubr.bf16.gmra.mrb[16].mxu0 %v6304_v39 }
 0x290   : > { %1920 = vmatmul.mubr.bf16.gmra.mrb[16].mxu1 %v6305_v40  ;;  %1766 = vmatprep.mubr.bf16.mxu0 %v6306_v41 }
 0x291   : > { %1927 = vmatprep.mubr.bf16.mxu1 %v6308_v42 }
 0x297   : > { %1767 = vmatmul.mubr.bf16.gmra.mrb[20].mxu0 %v6310_v43 }
 0x298   : > { %1928 = vmatmul.mubr.bf16.gmra.mrb[20].mxu1 %v6311_v44  ;;  %1774 = vmatprep.mubr.bf16.mxu0 %v6312_v45 }
 0x299   : > { %1935 = vmatprep.mubr.bf16.mxu1 %v6314_v46 }
 0x29f   : > { %1775 = vmatmul.mubr.bf16.gmra.mrb[24].mxu0 %v6316_v47 }
 0x2a0   : > { %1936 = vmatmul.mubr.bf16.gmra.mrb[24].mxu1 %v6317_v48  ;;  %1782 = vmatprep.mubr.bf16.mxu0 %v6318_v49 }
 0x2a1   : > { %1943 = vmatprep.mubr.bf16.mxu1 %v6320_v50 }
 0x2a7   : > { %1783 = vmatmul.mubr.bf16.gmra.mrb[28].mxu0 %v6322_v51 }
 0x2a8   : > { %1944 = vmatmul.mubr.bf16.gmra.mrb[28].mxu1 %v6323_v52  ;;  %1790 = vmatprep.mubr.bf16.mxu0 %v6324_v53 }
 0x2a9   : > { %1951 = vmatprep.mubr.bf16.mxu1 %v6326_v54 }
 0x2af   : > { %1791 = vmatmul.mubr.bf16.gmra.mrb[32].mxu0 %v6328_v55 }
 0x2b0   : > { %1952 = vmatmul.mubr.bf16.gmra.mrb[32].mxu1 %v6329_v56  ;;  %1798 = vmatprep.mubr.bf16.mxu0 %v6330_v57 }
 0x2b1   : > { %1959 = vmatprep.mubr.bf16.mxu1 %v6332_v58 }
 0x2b7   : > { %1799 = vmatmul.mubr.bf16.gmra.mrb[36].mxu0 %v6334_v17 }
 0x2b8   : > { %1960 = vmatmul.mubr.bf16.gmra.mrb[36].mxu1 %v6335_v59  ;;  %1806 = vmatprep.mubr.bf16.mxu0 %v6336_v60 }
 0x2b9   : > { %1967 = vmatprep.mubr.bf16.mxu1 %v6338_v61 }
 0x2bf   : > { %1807 = vmatmul.mubr.bf16.gmra.mrb[40].mxu0 %v6340_v62 }
 0x2c0   : > { %1968 = vmatmul.mubr.bf16.gmra.mrb[40].mxu1 %v6341_v63  ;;  %1814 = vmatprep.mubr.bf16.mxu0 %v6342_v0 }
 0x2c1   : > { %1975 = vmatprep.mubr.bf16.mxu1 %v6344_v1 }
 0x2c7   : > { %1815 = vmatmul.mubr.bf16.gmra.mrb[44].mxu0 %v6346_v2 }
 0x2c8   : > { %1976 = vmatmul.mubr.bf16.gmra.mrb[44].mxu1 %v6347_v3  ;;  %1822 = vmatprep.mubr.bf16.mxu0 %v6348_v4 }
 0x2c9   : > { %1983 = vmatprep.mubr.bf16.mxu1 %v6350_v5 }
 0x2cf   : > { %1823 = vmatmul.mubr.bf16.gmra.mrb[48].mxu0 %v6352_v6 }
 0x2d0   : > { %1984 = vmatmul.mubr.bf16.gmra.mrb[48].mxu1 %v6353_v7  ;;  %1830 = vmatprep.mubr.bf16.mxu0 %v6354_v8 }
 0x2d1   : > { %1991 = vmatprep.mubr.bf16.mxu1 %v6356_v9 }
 0x2d7   : > { %1831 = vmatmul.mubr.bf16.gmra.mrb[52].mxu0 %v6358_v10 }
 0x2d8   : > { %1992 = vmatmul.mubr.bf16.gmra.mrb[52].mxu1 %v6359_v11  ;;  %1838 = vmatprep.mubr.bf16.mxu0 %v6360_v12 }
 0x2d9   : > { %1999 = vmatprep.mubr.bf16.mxu1 %v6362_v13 }
 0x2df   : > { %1839 = vmatmul.mubr.bf16.gmra.mrb[56].mxu0 %v6364_v14 }
 0x2e0   : > { %2000 = vmatmul.mubr.bf16.gmra.mrb[56].mxu1 %v6365_v15  ;;  %1846 = vmatprep.mubr.bf16.mxu0 %v6366_v16 }
 0x2e1   : > { %2007 = vmatprep.mubr.bf16.mxu1 %v6368_v18 }
 0x2e7   : > { %1847 = vmatmul.mubr.bf16.gmra.mrb[60].mxu0 %v6370_v19 }
 0x2e8   : > { %2008 = vmatmul.mubr.bf16.gmra.mrb[60].mxu1 %v6371_v20 }
 0x342   : > { %v5076_v21 = vpop.f32.mrb[0].mxu0 }
 0x343   : > { %v5188_v22 = vpop.f32.mrb[0].mxu1  ;;  %v5077_v23 = vpop.f32.mrb[1].mxu0 }
 0x344   : > { %v5189_v24 = vpop.f32.mrb[1].mxu1  ;;  %v5078_v25 = vadd.f32 %v5077_v23, %v5076_v21  ;;  %v5079_v27 = vpop.f32.mrb[2].mxu0 }
 0x345   : > { %v5190_v26 = vadd.f32 %v5189_v24, %v5188_v22  ;;  %v5191_v28 = vpop.f32.mrb[2].mxu1  ;;  %v5080_v29 = vpop.f32.mrb[3].mxu0 }
 0x346   : > { %v5192_v30 = vpop.f32.mrb[3].mxu1  ;;  %v5081_v32 = vadd.f32 %v5080_v29, %v5079_v27 }
 0x347   : > { %v1890_v31 = vadd.f32 %v5190_v26, %v5078_v25  ;;  %v5193_v33 = vadd.f32 %v5192_v30, %v5191_v28 }
 0x349   : > { %v1893_v34 = vadd.f32 %v5193_v33, %v5081_v32  ;;  %v2017_v35 = vmax.f32 %v1890_v31, 0.0 }
 0x34a   : > { %v5082_v37 = vpop.f32.mrb[4].mxu0 }
 0x34b   : > { %v2018_v36 = vmax.f32 %v1893_v34, 0.0  ;;  %v5194_v38 = vpop.f32.mrb[4].mxu1  ;;  %v5083_v39 = vpop.f32.mrb[5].mxu0 }
 0x34c   : > { %v5195_v40 = vpop.f32.mrb[5].mxu1  ;;  %v5084_v42 = vadd.f32 %v5083_v39, %v5082_v37  ;;  %v5085_v44 = vpop.f32.mrb[6].mxu0 }
 0x34d   : > { %v2049_v41 = vpack.c.bf16 %v2018_v36, %v2017_v35  ;;  %v5196_v43 = vadd.f32 %v5195_v40, %v5194_v38  ;;  %v5197_v45 = vpop.f32.mrb[6].mxu1  ;;  %v5086_v46 = vpop.f32.mrb[7].mxu0 }
 0x34e   : > { %v5198_v47 = vpop.f32.mrb[7].mxu1  ;;  %v5087_v49 = vadd.f32 %v5086_v46, %v5085_v44 }
 0x34f   : > { %2069 = vst [vmem:[%s7327_s22] sm:$0xff] %v2049_v41  ;;  %v1898_v48 = vadd.f32 %v5196_v43, %v5084_v42  ;;  %v5199_v50 = vadd.f32 %v5198_v47, %v5197_v45 }
 0x351   : > { %v1901_v51 = vadd.f32 %v5199_v50, %v5087_v49  ;;  %v2019_v52 = vmax.f32 %v1898_v48, 0.0 }
 0x352   : > { %v5088_v54 = vpop.f32.mrb[8].mxu0 }
 0x353   : > { %v2020_v53 = vmax.f32 %v1901_v51, 0.0  ;;  %v5200_v55 = vpop.f32.mrb[8].mxu1  ;;  %v5089_v56 = vpop.f32.mrb[9].mxu0 }
 0x354   : > { %v5201_v57 = vpop.f32.mrb[9].mxu1  ;;  %v5090_v17 = vadd.f32 %v5089_v56, %v5088_v54  ;;  %v5091_v60 = vpop.f32.mrb[10].mxu0 }
 0x355   : > { %v2050_v58 = vpack.c.bf16 %v2020_v53, %v2019_v52  ;;  %v5202_v59 = vadd.f32 %v5201_v57, %v5200_v55  ;;  %v5203_v61 = vpop.f32.mrb[10].mxu1  ;;  %v5092_v62 = vpop.f32.mrb[11].mxu0 }
 0x356   : > { %v5204_v63 = vpop.f32.mrb[11].mxu1  ;;  %v5093_v1 = vadd.f32 %v5092_v62, %v5091_v60 }
 0x357   : > { %2070 = vst [vmem:[%s7327_s22 + $0x8] sm:$0xff] %v2050_v58  ;;  %v1906_v0 = vadd.f32 %v5202_v59, %v5090_v17  ;;  %v5205_v2 = vadd.f32 %v5204_v63, %v5203_v61 }
 0x359   : > { %v1909_v3 = vadd.f32 %v5205_v2, %v5093_v1  ;;  %v2021_v4 = vmax.f32 %v1906_v0, 0.0 }
 0x35a   : > { %v5094_v6 = vpop.f32.mrb[12].mxu0 }
 0x35b   : > { %v2022_v5 = vmax.f32 %v1909_v3, 0.0  ;;  %v5206_v7 = vpop.f32.mrb[12].mxu1  ;;  %v5095_v8 = vpop.f32.mrb[13].mxu0 }
 0x35c   : > { %v5207_v9 = vpop.f32.mrb[13].mxu1  ;;  %v5096_v11 = vadd.f32 %v5095_v8, %v5094_v6  ;;  %v5097_v13 = vpop.f32.mrb[14].mxu0 }
 0x35d   : > { %v2051_v10 = vpack.c.bf16 %v2022_v5, %v2021_v4  ;;  %v5208_v12 = vadd.f32 %v5207_v9, %v5206_v7  ;;  %v5209_v14 = vpop.f32.mrb[14].mxu1  ;;  %v5098_v15 = vpop.f32.mrb[15].mxu0 }
 0x35e   : > { %v5210_v16 = vpop.f32.mrb[15].mxu1  ;;  %v5099_v19 = vadd.f32 %v5098_v15, %v5097_v13 }
 0x35f   : > { %2071 = vst [vmem:[%s7327_s22 + $0x10] sm:$0xff] %v2051_v10  ;;  %v1914_v18 = vadd.f32 %v5208_v12, %v5096_v11  ;;  %v5211_v20 = vadd.f32 %v5210_v16, %v5209_v14 }
 0x361   : > { %v1917_v21 = vadd.f32 %v5211_v20, %v5099_v19  ;;  %v2023_v22 = vmax.f32 %v1914_v18, 0.0 }
 0x362   : > { %v5100_v24 = vpop.f32.mrb[16].mxu0 }
 0x363   : > { %v2024_v23 = vmax.f32 %v1917_v21, 0.0  ;;  %v5212_v25 = vpop.f32.mrb[16].mxu1  ;;  %v5101_v26 = vpop.f32.mrb[17].mxu0 }
 0x364   : > { %v5213_v27 = vpop.f32.mrb[17].mxu1  ;;  %v5102_v29 = vadd.f32 %v5101_v26, %v5100_v24  ;;  %v5103_v31 = vpop.f32.mrb[18].mxu0 }
 0x365   : > { %v2052_v28 = vpack.c.bf16 %v2024_v23, %v2023_v22  ;;  %v5214_v30 = vadd.f32 %v5213_v27, %v5212_v25  ;;  %v5215_v32 = vpop.f32.mrb[18].mxu1  ;;  %v5104_v33 = vpop.f32.mrb[19].mxu0 }
 0x366   : > { %v5216_v34 = vpop.f32.mrb[19].mxu1  ;;  %v5105_v36 = vadd.f32 %v5104_v33, %v5103_v31 }
 0x367   : > { %2072 = vst [vmem:[%s7327_s22 + $0x18] sm:$0xff] %v2052_v28  ;;  %v1922_v35 = vadd.f32 %v5214_v30, %v5102_v29  ;;  %v5217_v37 = vadd.f32 %v5216_v34, %v5215_v32 }
 0x369   : > { %v1925_v38 = vadd.f32 %v5217_v37, %v5105_v36  ;;  %v2025_v39 = vmax.f32 %v1922_v35, 0.0 }
 0x36a   : > { %v5106_v41 = vpop.f32.mrb[20].mxu0 }
 0x36b   : > { %v2026_v40 = vmax.f32 %v1925_v38, 0.0  ;;  %v5218_v42 = vpop.f32.mrb[20].mxu1  ;;  %v5107_v43 = vpop.f32.mrb[21].mxu0 }
 0x36c   : > { %v5219_v44 = vpop.f32.mrb[21].mxu1  ;;  %v5108_v46 = vadd.f32 %v5107_v43, %v5106_v41  ;;  %v5109_v48 = vpop.f32.mrb[22].mxu0 }
 0x36d   : > { %v2053_v45 = vpack.c.bf16 %v2026_v40, %v2025_v39  ;;  %v5220_v47 = vadd.f32 %v5219_v44, %v5218_v42  ;;  %v5221_v49 = vpop.f32.mrb[22].mxu1  ;;  %v5110_v50 = vpop.f32.mrb[23].mxu0 }
 0x36e   : > { %v5222_v51 = vpop.f32.mrb[23].mxu1  ;;  %v5111_v53 = vadd.f32 %v5110_v50, %v5109_v48 }
 0x36f   : > { %2073 = vst [vmem:[%s7327_s22 + $0x20] sm:$0xff] %v2053_v45  ;;  %v1930_v52 = vadd.f32 %v5220_v47, %v5108_v46  ;;  %v5223_v54 = vadd.f32 %v5222_v51, %v5221_v49 }
 0x371   : > { %v1933_v55 = vadd.f32 %v5223_v54, %v5111_v53  ;;  %v2027_v56 = vmax.f32 %v1930_v52, 0.0 }
 0x372   : > { %v5112_v58 = vpop.f32.mrb[24].mxu0 }
 0x373   : > { %v2028_v57 = vmax.f32 %v1933_v55, 0.0  ;;  %v5224_v17 = vpop.f32.mrb[24].mxu1  ;;  %v5113_v59 = vpop.f32.mrb[25].mxu0 }
 0x374   : > { %v5225_v60 = vpop.f32.mrb[25].mxu1  ;;  %v5114_v62 = vadd.f32 %v5113_v59, %v5112_v58  ;;  %v5115_v0 = vpop.f32.mrb[26].mxu0 }
 0x375   : > { %v2054_v61 = vpack.c.bf16 %v2028_v57, %v2027_v56  ;;  %v5226_v63 = vadd.f32 %v5225_v60, %v5224_v17  ;;  %v5227_v1 = vpop.f32.mrb[26].mxu1  ;;  %v5116_v2 = vpop.f32.mrb[27].mxu0 }
 0x376   : > { %v5228_v3 = vpop.f32.mrb[27].mxu1  ;;  %v5117_v5 = vadd.f32 %v5116_v2, %v5115_v0 }
 0x377   : > { %2074 = vst [vmem:[%s7327_s22 + $0x28] sm:$0xff] %v2054_v61  ;;  %v1938_v4 = vadd.f32 %v5226_v63, %v5114_v62  ;;  %v5229_v6 = vadd.f32 %v5228_v3, %v5227_v1 }
 0x379   : > { %v1941_v7 = vadd.f32 %v5229_v6, %v5117_v5  ;;  %v2029_v8 = vmax.f32 %v1938_v4, 0.0 }
 0x37a   : > { %v5118_v10 = vpop.f32.mrb[28].mxu0 }
 0x37b   : > { %v2030_v9 = vmax.f32 %v1941_v7, 0.0  ;;  %v5230_v11 = vpop.f32.mrb[28].mxu1  ;;  %v5119_v12 = vpop.f32.mrb[29].mxu0 }
 0x37c   : > { %v5231_v13 = vpop.f32.mrb[29].mxu1  ;;  %v5120_v15 = vadd.f32 %v5119_v12, %v5118_v10  ;;  %v5121_v18 = vpop.f32.mrb[30].mxu0 }
 0x37d   : > { %v2055_v14 = vpack.c.bf16 %v2030_v9, %v2029_v8  ;;  %v5232_v16 = vadd.f32 %v5231_v13, %v5230_v11  ;;  %v5233_v19 = vpop.f32.mrb[30].mxu1  ;;  %v5122_v20 = vpop.f32.mrb[31].mxu0 }
 0x37e   : > { %v5234_v21 = vpop.f32.mrb[31].mxu1  ;;  %v5123_v23 = vadd.f32 %v5122_v20, %v5121_v18 }
 0x37f   : > { %2075 = vst [vmem:[%s7327_s22 + $0x30] sm:$0xff] %v2055_v14  ;;  %v1946_v22 = vadd.f32 %v5232_v16, %v5120_v15  ;;  %v5235_v24 = vadd.f32 %v5234_v21, %v5233_v19 }
 0x381   : > { %v1949_v25 = vadd.f32 %v5235_v24, %v5123_v23  ;;  %v2031_v26 = vmax.f32 %v1946_v22, 0.0 }
 0x382   : > { %v5124_v28 = vpop.f32.mrb[32].mxu0 }
 0x383   : > { %v2032_v27 = vmax.f32 %v1949_v25, 0.0  ;;  %v5236_v29 = vpop.f32.mrb[32].mxu1  ;;  %v5125_v30 = vpop.f32.mrb[33].mxu0 }
 0x384   : > { %v5237_v31 = vpop.f32.mrb[33].mxu1  ;;  %v5126_v33 = vadd.f32 %v5125_v30, %v5124_v28  ;;  %v5127_v35 = vpop.f32.mrb[34].mxu0 }
 0x385   : > { %v2056_v32 = vpack.c.bf16 %v2032_v27, %v2031_v26  ;;  %v5238_v34 = vadd.f32 %v5237_v31, %v5236_v29  ;;  %v5239_v36 = vpop.f32.mrb[34].mxu1  ;;  %v5128_v37 = vpop.f32.mrb[35].mxu0 }
 0x386   : > { %v5240_v38 = vpop.f32.mrb[35].mxu1  ;;  %v5129_v40 = vadd.f32 %v5128_v37, %v5127_v35 }
 0x387   : > { %2076 = vst [vmem:[%s7327_s22 + $0x38] sm:$0xff] %v2056_v32  ;;  %v1954_v39 = vadd.f32 %v5238_v34, %v5126_v33  ;;  %v5241_v41 = vadd.f32 %v5240_v38, %v5239_v36 }
 0x389   : > { %v1957_v42 = vadd.f32 %v5241_v41, %v5129_v40  ;;  %v2033_v43 = vmax.f32 %v1954_v39, 0.0 }
 0x38a   : > { %v5130_v45 = vpop.f32.mrb[36].mxu0 }
 0x38b   : > { %v2034_v44 = vmax.f32 %v1957_v42, 0.0  ;;  %v5242_v46 = vpop.f32.mrb[36].mxu1  ;;  %v5131_v47 = vpop.f32.mrb[37].mxu0 }
 0x38c   : > { %v5243_v48 = vpop.f32.mrb[37].mxu1  ;;  %v5132_v50 = vadd.f32 %v5131_v47, %v5130_v45  ;;  %v5133_v52 = vpop.f32.mrb[38].mxu0 }
 0x38d   : > { %v2057_v49 = vpack.c.bf16 %v2034_v44, %v2033_v43  ;;  %v5244_v51 = vadd.f32 %v5243_v48, %v5242_v46  ;;  %v5245_v53 = vpop.f32.mrb[38].mxu1  ;;  %v5134_v54 = vpop.f32.mrb[39].mxu0 }
 0x38e   : > { %v5246_v55 = vpop.f32.mrb[39].mxu1  ;;  %v5135_v57 = vadd.f32 %v5134_v54, %v5133_v52 }
 0x38f   : > { %2077 = vst [vmem:[%s7327_s22 + $0x40] sm:$0xff] %v2057_v49  ;;  %v1962_v56 = vadd.f32 %v5244_v51, %v5132_v50  ;;  %v5247_v58 = vadd.f32 %v5246_v55, %v5245_v53 }
 0x391   : > { %v1965_v17 = vadd.f32 %v5247_v58, %v5135_v57  ;;  %v2035_v59 = vmax.f32 %v1962_v56, 0.0 }
 0x392   : > { %v5136_v61 = vpop.f32.mrb[40].mxu0 }
 0x393   : > { %v2036_v60 = vmax.f32 %v1965_v17, 0.0  ;;  %v5248_v62 = vpop.f32.mrb[40].mxu1  ;;  %v5137_v63 = vpop.f32.mrb[41].mxu0 }
 0x394   : > { %v5249_v0 = vpop.f32.mrb[41].mxu1  ;;  %v5138_v2 = vadd.f32 %v5137_v63, %v5136_v61  ;;  %v5139_v4 = vpop.f32.mrb[42].mxu0 }
 0x395   : > { %v2058_v1 = vpack.c.bf16 %v2036_v60, %v2035_v59  ;;  %v5250_v3 = vadd.f32 %v5249_v0, %v5248_v62  ;;  %v5251_v5 = vpop.f32.mrb[42].mxu1  ;;  %v5140_v6 = vpop.f32.mrb[43].mxu0 }
 0x396   : > { %v5252_v7 = vpop.f32.mrb[43].mxu1  ;;  %v5141_v9 = vadd.f32 %v5140_v6, %v5139_v4 }
 0x397   : > { %2078 = vst [vmem:[%s7327_s22 + $0x48] sm:$0xff] %v2058_v1  ;;  %v1970_v8 = vadd.f32 %v5250_v3, %v5138_v2  ;;  %v5253_v10 = vadd.f32 %v5252_v7, %v5251_v5 }
 0x399   : > { %v1973_v11 = vadd.f32 %v5253_v10, %v5141_v9  ;;  %v2037_v12 = vmax.f32 %v1970_v8, 0.0 }
 0x39a   : > { %v5142_v14 = vpop.f32.mrb[44].mxu0 }
 0x39b   : > { %v2038_v13 = vmax.f32 %v1973_v11, 0.0  ;;  %v5254_v15 = vpop.f32.mrb[44].mxu1  ;;  %v5143_v16 = vpop.f32.mrb[45].mxu0 }
 0x39c   : > { %v5255_v18 = vpop.f32.mrb[45].mxu1  ;;  %v5144_v20 = vadd.f32 %v5143_v16, %v5142_v14  ;;  %v5145_v22 = vpop.f32.mrb[46].mxu0 }
 0x39d   : > { %v2059_v19 = vpack.c.bf16 %v2038_v13, %v2037_v12  ;;  %v5256_v21 = vadd.f32 %v5255_v18, %v5254_v15  ;;  %v5257_v23 = vpop.f32.mrb[46].mxu1  ;;  %v5146_v24 = vpop.f32.mrb[47].mxu0 }
 0x39e   : > { %v5258_v25 = vpop.f32.mrb[47].mxu1  ;;  %v5147_v27 = vadd.f32 %v5146_v24, %v5145_v22 }
 0x39f   : > { %2079 = vst [vmem:[%s7327_s22 + $0x50] sm:$0xff] %v2059_v19  ;;  %v1978_v26 = vadd.f32 %v5256_v21, %v5144_v20  ;;  %v5259_v28 = vadd.f32 %v5258_v25, %v5257_v23 }
 0x3a1   : > { %v1981_v29 = vadd.f32 %v5259_v28, %v5147_v27  ;;  %v2039_v30 = vmax.f32 %v1978_v26, 0.0 }
 0x3a2   : > { %v5148_v32 = vpop.f32.mrb[48].mxu0 }
 0x3a3   : > { %v2040_v31 = vmax.f32 %v1981_v29, 0.0  ;;  %v5260_v33 = vpop.f32.mrb[48].mxu1  ;;  %v5149_v34 = vpop.f32.mrb[49].mxu0 }
 0x3a4   : > { %v5261_v35 = vpop.f32.mrb[49].mxu1  ;;  %v5150_v37 = vadd.f32 %v5149_v34, %v5148_v32  ;;  %v5151_v39 = vpop.f32.mrb[50].mxu0 }
 0x3a5   : > { %v2060_v36 = vpack.c.bf16 %v2040_v31, %v2039_v30  ;;  %v5262_v38 = vadd.f32 %v5261_v35, %v5260_v33  ;;  %v5263_v40 = vpop.f32.mrb[50].mxu1  ;;  %v5152_v41 = vpop.f32.mrb[51].mxu0 }
 0x3a6   : > { %v5264_v42 = vpop.f32.mrb[51].mxu1  ;;  %v5153_v44 = vadd.f32 %v5152_v41, %v5151_v39 }
 0x3a7   : > { %2080 = vst [vmem:[%s7327_s22 + $0x58] sm:$0xff] %v2060_v36  ;;  %v1986_v43 = vadd.f32 %v5262_v38, %v5150_v37  ;;  %v5265_v45 = vadd.f32 %v5264_v42, %v5263_v40 }
 0x3a9   : > { %v1989_v46 = vadd.f32 %v5265_v45, %v5153_v44  ;;  %v2041_v47 = vmax.f32 %v1986_v43, 0.0 }
 0x3aa   : > { %v5154_v49 = vpop.f32.mrb[52].mxu0 }
 0x3ab   : > { %v2042_v48 = vmax.f32 %v1989_v46, 0.0  ;;  %v5266_v50 = vpop.f32.mrb[52].mxu1  ;;  %v5155_v51 = vpop.f32.mrb[53].mxu0 }
 0x3ac   : > { %v5267_v52 = vpop.f32.mrb[53].mxu1  ;;  %v5156_v54 = vadd.f32 %v5155_v51, %v5154_v49  ;;  %v5157_v56 = vpop.f32.mrb[54].mxu0 }
 0x3ad   : > { %v2061_v53 = vpack.c.bf16 %v2042_v48, %v2041_v47  ;;  %v5268_v55 = vadd.f32 %v5267_v52, %v5266_v50  ;;  %v5269_v57 = vpop.f32.mrb[54].mxu1  ;;  %v5158_v58 = vpop.f32.mrb[55].mxu0 }
 0x3ae   : > { %v5270_v17 = vpop.f32.mrb[55].mxu1  ;;  %v5159_v60 = vadd.f32 %v5158_v58, %v5157_v56 }
 0x3af   : > { %2081 = vst [vmem:[%s7327_s22 + $0x60] sm:$0xff] %v2061_v53  ;;  %v1994_v59 = vadd.f32 %v5268_v55, %v5156_v54  ;;  %v5271_v61 = vadd.f32 %v5270_v17, %v5269_v57 }
 0x3b1   : > { %v1997_v62 = vadd.f32 %v5271_v61, %v5159_v60  ;;  %v2043_v63 = vmax.f32 %v1994_v59, 0.0 }
 0x3b2   : > { %v5160_v1 = vpop.f32.mrb[56].mxu0 }
 0x3b3   : > { %v2044_v0 = vmax.f32 %v1997_v62, 0.0  ;;  %v5272_v2 = vpop.f32.mrb[56].mxu1  ;;  %v5161_v3 = vpop.f32.mrb[57].mxu0 }
 0x3b4   : > { %v5273_v4 = vpop.f32.mrb[57].mxu1  ;;  %v5162_v6 = vadd.f32 %v5161_v3, %v5160_v1  ;;  %v5163_v8 = vpop.f32.mrb[58].mxu0 }
 0x3b5   : > { %v2062_v5 = vpack.c.bf16 %v2044_v0, %v2043_v63  ;;  %v5274_v7 = vadd.f32 %v5273_v4, %v5272_v2  ;;  %v5275_v9 = vpop.f32.mrb[58].mxu1  ;;  %v5164_v10 = vpop.f32.mrb[59].mxu0 }
 0x3b6   : > { %v5276_v11 = vpop.f32.mrb[59].mxu1  ;;  %v5165_v13 = vadd.f32 %v5164_v10, %v5163_v8 }
 0x3b7   : > { %2082 = vst [vmem:[%s7327_s22 + $0x68] sm:$0xff] %v2062_v5  ;;  %v2002_v12 = vadd.f32 %v5274_v7, %v5162_v6  ;;  %v5277_v14 = vadd.f32 %v5276_v11, %v5275_v9 }
 0x3b9   : > { %v2005_v15 = vadd.f32 %v5277_v14, %v5165_v13  ;;  %v2045_v16 = vmax.f32 %v2002_v12, 0.0 }
 0x3ba   : > { %v5166_v19 = vpop.f32.mrb[60].mxu0 }
 0x3bb   : > { %v2046_v18 = vmax.f32 %v2005_v15, 0.0  ;;  %v5278_v20 = vpop.f32.mrb[60].mxu1  ;;  %v5167_v21 = vpop.f32.mrb[61].mxu0 }
 0x3bc   : > { %v5279_v22 = vpop.f32.mrb[61].mxu1  ;;  %v5168_v24 = vadd.f32 %v5167_v21, %v5166_v19  ;;  %v5169_v26 = vpop.f32.mrb[62].mxu0 }
 0x3bd   : > { %v2063_v23 = vpack.c.bf16 %v2046_v18, %v2045_v16  ;;  %v5280_v25 = vadd.f32 %v5279_v22, %v5278_v20  ;;  %v5281_v27 = vpop.f32.mrb[62].mxu1  ;;  %v5170_v28 = vpop.f32.mrb[63].mxu0 }
 0x3be   : > { %v5282_v29 = vpop.f32.mrb[63].mxu1  ;;  %v5171_v31 = vadd.f32 %v5170_v28, %v5169_v26 }
 0x3bf   : > { %2083 = vst [vmem:[%s7327_s22 + $0x70] sm:$0xff] %v2063_v23  ;;  %v2010_v30 = vadd.f32 %v5280_v25, %v5168_v24  ;;  %v5283_v32 = vadd.f32 %v5282_v29, %v5281_v27 }
 0x3c1   : > { %v2013_v33 = vadd.f32 %v5283_v32, %v5171_v31  ;;  %v2047_v34 = vmax.f32 %v2010_v30, 0.0 }
 0x3c3   : > { %v2048_v35 = vmax.f32 %v2013_v33, 0.0 }
 0x3c5   : > { %v2064_v36 = vpack.c.bf16 %v2048_v35, %v2047_v34 }
 0x3c7   : > { %2084 = vst [vmem:[%s7327_s22 + $0x78] sm:$0xff] %v2064_v36 }
 0x3c8 PF: > { %p4900_p12 = scmp.ne.s32.totalorder %s6820_s9, 1 }
 0x3c9   : > { %p4901_p1 = scmp.ne.s32.totalorder (!%p4900_p12), %s6816_s30, 0 }
 0x3ca   : > { %2088 = sbr.rel (%p4900_p12) target bundleno = 1665 (0x681), region = 84 }
 0x3d1   : > { %2092 = sbr.rel (%p4901_p1) target bundleno = 1286 (0x506), region = 88  ;;  %v6372_v37 = vld [vmem:[#allocation10] sm:$0xff] (!%p4901_p1)   ;;  %v6373_v38 = vld [vmem:[#allocation10 + $0x8] sm:$0xff] (!%p4901_p1)   ;;  %v6374_v39 = vld [vmem:[#allocation10 + $0x10] sm:$0xff] (!%p4901_p1)   ;;  %s7770_s27 = sld [smem:[#allocation22_spill]] (!%p4901_p1) }
 0x3d2   : > { %5812 = vmatprep.subr.bf16.mxu0 (!%p4901_p1), %v6372_v37  ;;  %6004 = vmatprep.subr.bf16.mxu1 (!%p4901_p1), %v6372_v37  ;;  %v6375_v40 = vld [vmem:[#allocation10 + $0x18] sm:$0xff] (!%p4901_p1)   ;;  %v2093_v41 = vld [vmem:[#allocation2] sm:$0xff] (!%p4901_p1)  ;;  %v6377_v44 = vld [vmem:[#allocation10 + $0x28] sm:$0xff] (!%p4901_p1)  }
 0x3d3   : > { %5813 = vmatpush3.bf16.msra.mxu0 (!%p4901_p1), %v6372_v37  ;;  %6012 = vmatpush3.bf16.msra.mxu1 (!%p4901_p1), %v6372_v37  ;;  %v2109_v42 = vld [vmem:[#allocation2 + $0x80] sm:$0xff] (!%p4901_p1)  ;;  %v6378_v45 = vld [vmem:[#allocation10 + $0x30] sm:$0xff] (!%p4901_p1)   ;;  %v6379_v46 = vld [vmem:[#allocation10 + $0x38] sm:$0xff] (!%p4901_p1)  }
 0x3d4   : > { %5814 = vmatprep.subr.bf16.mxu0 (!%p4901_p1), %v6373_v38  ;;  %6005 = vmatprep.subr.bf16.mxu1 (!%p4901_p1), %v6373_v38  ;;  %v6376_v43 = vld [vmem:[#allocation10 + $0x20] sm:$0xff] (!%p4901_p1)   ;;  %v2094_v47 = vld [vmem:[#allocation2 + $0x8] sm:$0xff] (!%p4901_p1)  ;;  %v2095_v49 = vld [vmem:[#allocation2 + $0x10] sm:$0xff] (!%p4901_p1) }
 0x3d5   : > { %5828 = vmatprep.mubr.bf16.mxu0 (!%p4901_p1), %v2093_v41  ;;  %5860 = vmatprep.mubr.bf16.mxu1 (!%p4901_p1), %v2109_v42  ;;  %v2110_v48 = vld [vmem:[#allocation2 + $0x88] sm:$0xff] (!%p4901_p1)  ;;  %v2111_v50 = vld [vmem:[#allocation2 + $0x90] sm:$0xff] (!%p4901_p1)  ;;  %v2096_v51 = vld [vmem:[#allocation2 + $0x18] sm:$0xff] (!%p4901_p1) }
 0x3d6   : > { %v2112_v52 = vld [vmem:[#allocation2 + $0x98] sm:$0xff] (!%p4901_p1)  ;;  %v2097_v53 = vld [vmem:[#allocation2 + $0x20] sm:$0xff] (!%p4901_p1)  ;;  %v2098_v55 = vld [vmem:[#allocation2 + $0x28] sm:$0xff] (!%p4901_p1) }
 0x3d7   : > { %5815 = vmatpush3.bf16.msra.mxu0 (!%p4901_p1), %v6373_v38  ;;  %6013 = vmatpush3.bf16.msra.mxu1 (!%p4901_p1), %v6373_v38  ;;  %v2113_v54 = vld [vmem:[#allocation2 + $0xa0] sm:$0xff] (!%p4901_p1)  ;;  %v2114_v56 = vld [vmem:[#allocation2 + $0xa8] sm:$0xff] (!%p4901_p1)  ;;  %v2099_v57 = vld [vmem:[#allocation2 + $0x30] sm:$0xff] (!%p4901_p1) }
 0x3d8   : > { %5816 = vmatprep.subr.bf16.mxu0 %v6374_v39  ;;  %6006 = vmatprep.subr.bf16.mxu1 %v6374_v39  ;;  %v2115_v58 = vld [vmem:[#allocation2 + $0xb0] sm:$0xff]  ;;  %v2100_v17 = vld [vmem:[#allocation2 + $0x38] sm:$0xff]  ;;  %v2101_v60 = vld [vmem:[#allocation2 + $0x40] sm:$0xff] }
 0x3d9   : > { %v2116_v59 = vld [vmem:[#allocation2 + $0xb8] sm:$0xff]  ;;  %v2117_v61 = vld [vmem:[#allocation2 + $0xc0] sm:$0xff]  ;;  %v2102_v62 = vld [vmem:[#allocation2 + $0x48] sm:$0xff] }
 0x3da   : > { %v2118_v63 = vld [vmem:[#allocation2 + $0xc8] sm:$0xff]  ;;  %v2103_v0 = vld [vmem:[#allocation2 + $0x50] sm:$0xff]  ;;  %v2104_v2 = vld [vmem:[#allocation2 + $0x58] sm:$0xff] }
 0x3db   : > { %5817 = vmatpush3.bf16.msra.mxu0 %v6374_v39  ;;  %6014 = vmatpush3.bf16.msra.mxu1 %v6374_v39  ;;  %v2119_v1 = vld [vmem:[#allocation2 + $0xd0] sm:$0xff]  ;;  %v2120_v3 = vld [vmem:[#allocation2 + $0xd8] sm:$0xff]  ;;  %v2105_v4 = vld [vmem:[#allocation2 + $0x60] sm:$0xff] }
 0x3dc   : > { %5818 = vmatprep.subr.bf16.mxu0 %v6375_v40  ;;  %6007 = vmatprep.subr.bf16.mxu1 %v6375_v40  ;;  %v2121_v5 = vld [vmem:[#allocation2 + $0xe0] sm:$0xff]  ;;  %v2106_v6 = vld [vmem:[#allocation2 + $0x68] sm:$0xff]  ;;  %v2107_v8 = vld [vmem:[#allocation2 + $0x70] sm:$0xff] }
 0x3dd   : > { %v2122_v7 = vld [vmem:[#allocation2 + $0xe8] sm:$0xff]  ;;  %v2123_v9 = vld [vmem:[#allocation2 + $0xf0] sm:$0xff]  ;;  %v2108_v10 = vld [vmem:[#allocation2 + $0x78] sm:$0xff] }
 0x3de   : > { %v2124_v11 = vld [vmem:[#allocation2 + $0xf8] sm:$0xff]  ;;  %v7350_v13 = vld [vmem:[%s7770_s27] ss:$0 sm:$0xff] }
 0x3df   : > { %5819 = vmatpush3.bf16.msra.mxu0 %v6375_v40  ;;  %6015 = vmatpush3.bf16.msra.mxu1 %v6375_v40 }
 0x3e0   : > { %5820 = vmatprep.subr.bf16.mxu0 %v6376_v43  ;;  %6008 = vmatprep.subr.bf16.mxu1 %v6376_v43 }
 0x3e3   : > { %5821 = vmatpush3.bf16.msra.mxu0 %v6376_v43  ;;  %6016 = vmatpush3.bf16.msra.mxu1 %v6376_v43 }
 0x3e4   : > { %5822 = vmatprep.subr.bf16.mxu0 %v6377_v44  ;;  %6009 = vmatprep.subr.bf16.mxu1 %v6377_v44 }
 0x3e7   : > { %5823 = vmatpush3.bf16.msra.mxu0 %v6377_v44  ;;  %6017 = vmatpush3.bf16.msra.mxu1 %v6377_v44 }
 0x3e8   : > { %5824 = vmatprep.subr.bf16.mxu0 %v6378_v45  ;;  %6010 = vmatprep.subr.bf16.mxu1 %v6378_v45 }
 0x3eb   : > { %5825 = vmatpush3.bf16.msra.mxu0 %v6378_v45  ;;  %6018 = vmatpush3.bf16.msra.mxu1 %v6378_v45 }
 0x3ec   : > { %5826 = vmatprep.subr.bf16.mxu0 %v6379_v46  ;;  %6011 = vmatprep.subr.bf16.mxu1 %v6379_v46 }
 0x3ef   : > { %5827 = vmatpush3.bf16.msra.mxu0 %v6379_v46  ;;  %6019 = vmatpush3.bf16.msra.mxu1 %v6379_v46 }
 0x3f2   : > { %5829 = vmatmul.mubr.bf16.vlgmr.msra.gmra.mrb[0].mxu0 %v2094_v47  ;;  %5861 = vmatmul.mubr.bf16.vlgmr.msra.gmra.mrb[0].mxu1 %v2110_v48 }
 0x3f3   : > { %5832 = vmatprep.mubr.bf16.mxu0 %v2095_v49  ;;  %5864 = vmatprep.mubr.bf16.mxu1 %v2111_v50 }
 0x3fa   : > { %5833 = vmatmul.mubr.bf16.gmra.mrb[4].mxu0 %v2096_v51  ;;  %5865 = vmatmul.mubr.bf16.gmra.mrb[4].mxu1 %v2112_v52 }
 0x3fb   : > { %5836 = vmatprep.mubr.bf16.mxu0 %v2097_v53  ;;  %5868 = vmatprep.mubr.bf16.mxu1 %v2113_v54 }
 0x402   : > { %5837 = vmatmul.mubr.bf16.gmra.mrb[8].mxu0 %v2098_v55  ;;  %5869 = vmatmul.mubr.bf16.gmra.mrb[8].mxu1 %v2114_v56 }
 0x403   : > { %5840 = vmatprep.mubr.bf16.mxu0 %v2099_v57  ;;  %5872 = vmatprep.mubr.bf16.mxu1 %v2115_v58 }
 0x40a   : > { %5841 = vmatmul.mubr.bf16.gmra.mrb[12].mxu0 %v2100_v17  ;;  %5873 = vmatmul.mubr.bf16.gmra.mrb[12].mxu1 %v2116_v59 }
 0x40b   : > { %5844 = vmatprep.mubr.bf16.mxu0 %v2101_v60  ;;  %5876 = vmatprep.mubr.bf16.mxu1 %v2117_v61 }
 0x412   : > { %5845 = vmatmul.mubr.bf16.gmra.mrb[16].mxu0 %v2102_v62  ;;  %5877 = vmatmul.mubr.bf16.gmra.mrb[16].mxu1 %v2118_v63 }
 0x413   : > { %5848 = vmatprep.mubr.bf16.mxu0 %v2103_v0  ;;  %5880 = vmatprep.mubr.bf16.mxu1 %v2119_v1 }
 0x41a   : > { %5849 = vmatmul.mubr.bf16.gmra.mrb[20].mxu0 %v2104_v2  ;;  %5881 = vmatmul.mubr.bf16.gmra.mrb[20].mxu1 %v2120_v3 }
 0x41b   : > { %5852 = vmatprep.mubr.bf16.mxu0 %v2105_v4  ;;  %5884 = vmatprep.mubr.bf16.mxu1 %v2121_v5 }
 0x422   : > { %5853 = vmatmul.mubr.bf16.gmra.mrb[24].mxu0 %v2106_v6  ;;  %5885 = vmatmul.mubr.bf16.gmra.mrb[24].mxu1 %v2122_v7 }
 0x423   : > { %5856 = vmatprep.mubr.bf16.mxu0 %v2107_v8  ;;  %5888 = vmatprep.mubr.bf16.mxu1 %v2123_v9 }
 0x42a   : > { %5857 = vmatmul.mubr.bf16.gmra.mrb[28].mxu0 %v2108_v10  ;;  %5889 = vmatmul.mubr.bf16.gmra.mrb[28].mxu1 %v2124_v11 }
 0x4c5   : > { %v5830_v12 = vpop.f32.mrb[0].mxu0  ;;  %v5862_v14 = vpop.f32.mrb[0].mxu1 }
 0x4c6   : > { %v2230_v15 = vpop.f32.mrb[1].mxu0  ;;  %v2358_v16 = vpop.f32.mrb[1].mxu1  ;;  %v2239_v20 = vadd.f32 %v5830_v12, %v7350_v13  ;;  %v2367_v21 = vadd.f32 %v5862_v14, %v7350_v13 }
 0x4c7   : > { %v5831_v18 = vpop.f32.mrb[2].mxu0  ;;  %v5863_v19 = vpop.f32.mrb[2].mxu1  ;;  %v2231_v26 = vadd.f32 %v7350_v13, %v2230_v15  ;;  %v2359_v27 = vadd.f32 %v7350_v13, %v2358_v16 }
 0x4c8   : > { %v2242_v22 = vadd.f32 %v5831_v18, %v7350_v13  ;;  %v2370_v23 = vadd.f32 %v5863_v19, %v7350_v13  ;;  %v2233_v24 = vpop.f32.mrb[3].mxu0  ;;  %v2361_v25 = vpop.f32.mrb[3].mxu1 }
 0x4c9   : > { %v2234_v28 = vadd.f32 %v7350_v13, %v2233_v24  ;;  %v2362_v29 = vadd.f32 %v7350_v13, %v2361_v25 }
 0x4ca   : > { %v2486_v30 = vpack.c.bf16 %v2242_v22, %v2239_v20  ;;  %v2502_v31 = vpack.c.bf16 %v2370_v23, %v2367_v21 }
 0x4cb   : > { %v2485_v32 = vpack.c.bf16 %v2234_v28, %v2231_v26  ;;  %v2501_v33 = vpack.c.bf16 %v2362_v29, %v2359_v27 }
 0x4cc   : > { %2518 = vst [vmem:[#allocation3 + $0x8] sm:$0xff] %v2486_v30  ;;  %2534 = vst [vmem:[#allocation3 + $0x88] sm:$0xff] %v2502_v31 }
 0x4cd   : > { %2517 = vst [vmem:[#allocation3] sm:$0xff] %v2485_v32  ;;  %2533 = vst [vmem:[#allocation3 + $0x80] sm:$0xff] %v2501_v33  ;;  %v5834_v34 = vpop.f32.mrb[4].mxu0  ;;  %v5866_v35 = vpop.f32.mrb[4].mxu1 }
 0x4ce   : > { %v2246_v36 = vpop.f32.mrb[5].mxu0  ;;  %v2374_v37 = vpop.f32.mrb[5].mxu1  ;;  %v2255_v40 = vadd.f32 %v5834_v34, %v7350_v13  ;;  %v2383_v41 = vadd.f32 %v5866_v35, %v7350_v13 }
 0x4cf   : > { %v5835_v38 = vpop.f32.mrb[6].mxu0  ;;  %v5867_v39 = vpop.f32.mrb[6].mxu1  ;;  %v2247_v46 = vadd.f32 %v7350_v13, %v2246_v36  ;;  %v2375_v47 = vadd.f32 %v7350_v13, %v2374_v37 }
 0x4d0   : > { %v2258_v42 = vadd.f32 %v5835_v38, %v7350_v13  ;;  %v2386_v43 = vadd.f32 %v5867_v39, %v7350_v13  ;;  %v2249_v44 = vpop.f32.mrb[7].mxu0  ;;  %v2377_v45 = vpop.f32.mrb[7].mxu1 }
 0x4d1   : > { %v2250_v48 = vadd.f32 %v7350_v13, %v2249_v44  ;;  %v2378_v49 = vadd.f32 %v7350_v13, %v2377_v45 }
 0x4d2   : > { %v2488_v50 = vpack.c.bf16 %v2258_v42, %v2255_v40  ;;  %v2504_v51 = vpack.c.bf16 %v2386_v43, %v2383_v41 }
 0x4d3   : > { %v2487_v52 = vpack.c.bf16 %v2250_v48, %v2247_v46  ;;  %v2503_v53 = vpack.c.bf16 %v2378_v49, %v2375_v47 }
 0x4d4   : > { %2520 = vst [vmem:[#allocation3 + $0x18] sm:$0xff] %v2488_v50  ;;  %2536 = vst [vmem:[#allocation3 + $0x98] sm:$0xff] %v2504_v51 }
 0x4d5   : > { %2519 = vst [vmem:[#allocation3 + $0x10] sm:$0xff] %v2487_v52  ;;  %2535 = vst [vmem:[#allocation3 + $0x90] sm:$0xff] %v2503_v53  ;;  %v5838_v54 = vpop.f32.mrb[8].mxu0  ;;  %v5870_v55 = vpop.f32.mrb[8].mxu1 }
 0x4d6   : > { %v2262_v56 = vpop.f32.mrb[9].mxu0  ;;  %v2390_v57 = vpop.f32.mrb[9].mxu1  ;;  %v2271_v59 = vadd.f32 %v5838_v54, %v7350_v13  ;;  %v2399_v60 = vadd.f32 %v5870_v55, %v7350_v13 }
 0x4d7   : > { %v5839_v58 = vpop.f32.mrb[10].mxu0  ;;  %v5871_v17 = vpop.f32.mrb[10].mxu1  ;;  %v2263_v1 = vadd.f32 %v7350_v13, %v2262_v56  ;;  %v2391_v2 = vadd.f32 %v7350_v13, %v2390_v57 }
 0x4d8   : > { %v2274_v61 = vadd.f32 %v5839_v58, %v7350_v13  ;;  %v2402_v62 = vadd.f32 %v5871_v17, %v7350_v13  ;;  %v2265_v63 = vpop.f32.mrb[11].mxu0  ;;  %v2393_v0 = vpop.f32.mrb[11].mxu1 }
 0x4d9   : > { %v2266_v3 = vadd.f32 %v7350_v13, %v2265_v63  ;;  %v2394_v4 = vadd.f32 %v7350_v13, %v2393_v0 }
 0x4da   : > { %v2490_v5 = vpack.c.bf16 %v2274_v61, %v2271_v59  ;;  %v2506_v6 = vpack.c.bf16 %v2402_v62, %v2399_v60 }
 0x4db   : > { %v2489_v7 = vpack.c.bf16 %v2266_v3, %v2263_v1  ;;  %v2505_v8 = vpack.c.bf16 %v2394_v4, %v2391_v2 }
 0x4dc   : > { %2522 = vst [vmem:[#allocation3 + $0x28] sm:$0xff] %v2490_v5  ;;  %2538 = vst [vmem:[#allocation3 + $0xa8] sm:$0xff] %v2506_v6 }
 0x4dd   : > { %2521 = vst [vmem:[#allocation3 + $0x20] sm:$0xff] %v2489_v7  ;;  %2537 = vst [vmem:[#allocation3 + $0xa0] sm:$0xff] %v2505_v8  ;;  %v5842_v9 = vpop.f32.mrb[12].mxu0  ;;  %v5874_v10 = vpop.f32.mrb[12].mxu1 }
 0x4de   : > { %v2278_v11 = vpop.f32.mrb[13].mxu0  ;;  %v2406_v12 = vpop.f32.mrb[13].mxu1  ;;  %v2287_v16 = vadd.f32 %v5842_v9, %v7350_v13  ;;  %v2415_v18 = vadd.f32 %v5874_v10, %v7350_v13 }
 0x4df   : > { %v5843_v14 = vpop.f32.mrb[14].mxu0  ;;  %v5875_v15 = vpop.f32.mrb[14].mxu1  ;;  %v2279_v23 = vadd.f32 %v7350_v13, %v2278_v11  ;;  %v2407_v24 = vadd.f32 %v7350_v13, %v2406_v12 }
 0x4e0   : > { %v2290_v19 = vadd.f32 %v5843_v14, %v7350_v13  ;;  %v2418_v20 = vadd.f32 %v5875_v15, %v7350_v13  ;;  %v2281_v21 = vpop.f32.mrb[15].mxu0  ;;  %v2409_v22 = vpop.f32.mrb[15].mxu1 }
 0x4e1   : > { %v2282_v25 = vadd.f32 %v7350_v13, %v2281_v21  ;;  %v2410_v26 = vadd.f32 %v7350_v13, %v2409_v22 }
 0x4e2   : > { %v2492_v27 = vpack.c.bf16 %v2290_v19, %v2287_v16  ;;  %v2508_v28 = vpack.c.bf16 %v2418_v20, %v2415_v18 }
 0x4e3   : > { %v2491_v29 = vpack.c.bf16 %v2282_v25, %v2279_v23  ;;  %v2507_v30 = vpack.c.bf16 %v2410_v26, %v2407_v24 }
 0x4e4   : > { %2524 = vst [vmem:[#allocation3 + $0x38] sm:$0xff] %v2492_v27  ;;  %2540 = vst [vmem:[#allocation3 + $0xb8] sm:$0xff] %v2508_v28 }
 0x4e5   : > { %2523 = vst [vmem:[#allocation3 + $0x30] sm:$0xff] %v2491_v29  ;;  %2539 = vst [vmem:[#allocation3 + $0xb0] sm:$0xff] %v2507_v30  ;;  %v5846_v31 = vpop.f32.mrb[16].mxu0  ;;  %v5878_v32 = vpop.f32.mrb[16].mxu1 }
 0x4e6   : > { %v2294_v33 = vpop.f32.mrb[17].mxu0  ;;  %v2422_v34 = vpop.f32.mrb[17].mxu1  ;;  %v2303_v37 = vadd.f32 %v5846_v31, %v7350_v13  ;;  %v2431_v38 = vadd.f32 %v5878_v32, %v7350_v13 }
 0x4e7   : > { %v5847_v35 = vpop.f32.mrb[18].mxu0  ;;  %v5879_v36 = vpop.f32.mrb[18].mxu1  ;;  %v2295_v43 = vadd.f32 %v7350_v13, %v2294_v33  ;;  %v2423_v44 = vadd.f32 %v7350_v13, %v2422_v34 }
 0x4e8   : > { %v2306_v39 = vadd.f32 %v5847_v35, %v7350_v13  ;;  %v2434_v40 = vadd.f32 %v5879_v36, %v7350_v13  ;;  %v2297_v41 = vpop.f32.mrb[19].mxu0  ;;  %v2425_v42 = vpop.f32.mrb[19].mxu1 }
 0x4e9   : > { %v2298_v45 = vadd.f32 %v7350_v13, %v2297_v41  ;;  %v2426_v46 = vadd.f32 %v7350_v13, %v2425_v42 }
 0x4ea   : > { %v2494_v47 = vpack.c.bf16 %v2306_v39, %v2303_v37  ;;  %v2510_v48 = vpack.c.bf16 %v2434_v40, %v2431_v38 }
 0x4eb   : > { %v2493_v49 = vpack.c.bf16 %v2298_v45, %v2295_v43  ;;  %v2509_v50 = vpack.c.bf16 %v2426_v46, %v2423_v44 }
 0x4ec   : > { %2526 = vst [vmem:[#allocation3 + $0x48] sm:$0xff] %v2494_v47  ;;  %2542 = vst [vmem:[#allocation3 + $0xc8] sm:$0xff] %v2510_v48 }
 0x4ed   : > { %2525 = vst [vmem:[#allocation3 + $0x40] sm:$0xff] %v2493_v49  ;;  %2541 = vst [vmem:[#allocation3 + $0xc0] sm:$0xff] %v2509_v50  ;;  %v5850_v51 = vpop.f32.mrb[20].mxu0  ;;  %v5882_v52 = vpop.f32.mrb[20].mxu1 }
 0x4ee   : > { %v2310_v53 = vpop.f32.mrb[21].mxu0  ;;  %v2438_v54 = vpop.f32.mrb[21].mxu1  ;;  %v2319_v57 = vadd.f32 %v5850_v51, %v7350_v13  ;;  %v2447_v58 = vadd.f32 %v5882_v52, %v7350_v13 }
 0x4ef   : > { %v5851_v55 = vpop.f32.mrb[22].mxu0  ;;  %v5883_v56 = vpop.f32.mrb[22].mxu1  ;;  %v2311_v62 = vadd.f32 %v7350_v13, %v2310_v53  ;;  %v2439_v63 = vadd.f32 %v7350_v13, %v2438_v54 }
 0x4f0   : > { %v2322_v17 = vadd.f32 %v5851_v55, %v7350_v13  ;;  %v2450_v59 = vadd.f32 %v5883_v56, %v7350_v13  ;;  %v2313_v60 = vpop.f32.mrb[23].mxu0  ;;  %v2441_v61 = vpop.f32.mrb[23].mxu1 }
 0x4f1   : > { %v2314_v0 = vadd.f32 %v7350_v13, %v2313_v60  ;;  %v2442_v1 = vadd.f32 %v7350_v13, %v2441_v61 }
 0x4f2   : > { %v2496_v2 = vpack.c.bf16 %v2322_v17, %v2319_v57  ;;  %v2512_v3 = vpack.c.bf16 %v2450_v59, %v2447_v58 }
 0x4f3   : > { %v2495_v4 = vpack.c.bf16 %v2314_v0, %v2311_v62  ;;  %v2511_v5 = vpack.c.bf16 %v2442_v1, %v2439_v63 }
 0x4f4   : > { %2528 = vst [vmem:[#allocation3 + $0x58] sm:$0xff] %v2496_v2  ;;  %2544 = vst [vmem:[#allocation3 + $0xd8] sm:$0xff] %v2512_v3 }
 0x4f5   : > { %2527 = vst [vmem:[#allocation3 + $0x50] sm:$0xff] %v2495_v4  ;;  %2543 = vst [vmem:[#allocation3 + $0xd0] sm:$0xff] %v2511_v5  ;;  %v5854_v6 = vpop.f32.mrb[24].mxu0  ;;  %v5886_v7 = vpop.f32.mrb[24].mxu1 }
 0x4f6   : > { %v2326_v8 = vpop.f32.mrb[25].mxu0  ;;  %v2454_v9 = vpop.f32.mrb[25].mxu1  ;;  %v2335_v12 = vadd.f32 %v5854_v6, %v7350_v13  ;;  %v2463_v14 = vadd.f32 %v5886_v7, %v7350_v13 }
 0x4f7   : > { %v5855_v10 = vpop.f32.mrb[26].mxu0  ;;  %v5887_v11 = vpop.f32.mrb[26].mxu1  ;;  %v2327_v20 = vadd.f32 %v7350_v13, %v2326_v8  ;;  %v2455_v21 = vadd.f32 %v7350_v13, %v2454_v9 }
 0x4f8   : > { %v2338_v15 = vadd.f32 %v5855_v10, %v7350_v13  ;;  %v2466_v16 = vadd.f32 %v5887_v11, %v7350_v13  ;;  %v2329_v18 = vpop.f32.mrb[27].mxu0  ;;  %v2457_v19 = vpop.f32.mrb[27].mxu1 }
 0x4f9   : > { %v2330_v22 = vadd.f32 %v7350_v13, %v2329_v18  ;;  %v2458_v23 = vadd.f32 %v7350_v13, %v2457_v19 }
 0x4fa   : > { %v2498_v24 = vpack.c.bf16 %v2338_v15, %v2335_v12  ;;  %v2514_v25 = vpack.c.bf16 %v2466_v16, %v2463_v14 }
 0x4fb   : > { %v2497_v26 = vpack.c.bf16 %v2330_v22, %v2327_v20  ;;  %v2513_v27 = vpack.c.bf16 %v2458_v23, %v2455_v21 }
 0x4fc   : > { %2530 = vst [vmem:[#allocation3 + $0x68] sm:$0xff] %v2498_v24  ;;  %2546 = vst [vmem:[#allocation3 + $0xe8] sm:$0xff] %v2514_v25 }
 0x4fd   : > { %2529 = vst [vmem:[#allocation3 + $0x60] sm:$0xff] %v2497_v26  ;;  %2545 = vst [vmem:[#allocation3 + $0xe0] sm:$0xff] %v2513_v27  ;;  %v5858_v28 = vpop.f32.mrb[28].mxu0  ;;  %v5890_v29 = vpop.f32.mrb[28].mxu1 }
 0x4fe   : > { %v2342_v30 = vpop.f32.mrb[29].mxu0  ;;  %v2470_v31 = vpop.f32.mrb[29].mxu1  ;;  %v2351_v34 = vadd.f32 %v5858_v28, %v7350_v13  ;;  %v2479_v35 = vadd.f32 %v5890_v29, %v7350_v13 }
 0x4ff   : > { %v5859_v32 = vpop.f32.mrb[30].mxu0  ;;  %v5891_v33 = vpop.f32.mrb[30].mxu1  ;;  %v2343_v40 = vadd.f32 %v7350_v13, %v2342_v30  ;;  %v2471_v41 = vadd.f32 %v7350_v13, %v2470_v31 }
 0x500   : > { %v2354_v36 = vadd.f32 %v5859_v32, %v7350_v13  ;;  %v2482_v37 = vadd.f32 %v5891_v33, %v7350_v13  ;;  %v2345_v38 = vpop.f32.mrb[31].mxu0  ;;  %v2473_v39 = vpop.f32.mrb[31].mxu1 }
 0x501   : > { %v2346_v42 = vadd.f32 %v7350_v13, %v2345_v38  ;;  %v2474_v43 = vadd.f32 %v7350_v13, %v2473_v39 }
 0x502   : > { %v2500_v44 = vpack.c.bf16 %v2354_v36, %v2351_v34  ;;  %v2516_v45 = vpack.c.bf16 %v2482_v37, %v2479_v35 }
 0x503   : > { %v2499_v46 = vpack.c.bf16 %v2346_v42, %v2343_v40  ;;  %v2515_v47 = vpack.c.bf16 %v2474_v43, %v2471_v41 }
 0x504   : > { %2532 = vst [vmem:[#allocation3 + $0x78] sm:$0xff] %v2500_v44  ;;  %2548 = vst [vmem:[#allocation3 + $0xf8] sm:$0xff] %v2516_v45 }
 0x505   : > { %2531 = vst [vmem:[#allocation3 + $0x70] sm:$0xff] %v2499_v46  ;;  %2547 = vst [vmem:[#allocation3 + $0xf0] sm:$0xff] %v2515_v47 }
 0x506 PF: > { %v2621_v48 = vld [vmem:[#allocation3 + $0x40] sm:$0xff]  ;;  %v2622_v52 = vld [vmem:[#allocation3 + $0x48] sm:$0xff]  ;;  %v2623_v55 = vld [vmem:[#allocation3 + $0x50] sm:$0xff]  ;;  %s4975_s21 = sshll.u32 %s6816_s30, 8 }
 0x507   : > { %v2637_v49 = vld [vmem:[#allocation3 + $0xc0] sm:$0xff]  ;;  %5324 = vmatprep.subr.bf16.mxu0 %v2621_v48  ;;  %v2638_v53 = vld [vmem:[#allocation3 + $0xc8] sm:$0xff]  ;;  %v2639_v56 = vld [vmem:[#allocation3 + $0xd0] sm:$0xff]  ;;  %s3336_s24 = sshra.s32 %s4975_s21, 4 }
 0x508   : > { %v2613_v50 = vld [vmem:[#allocation3] sm:$0xff]  ;;  %5436 = vmatprep.subr.bf16.mxu1 %v2637_v49  ;;  %v2614_v13 = vld [vmem:[#allocation3 + $0x8] sm:$0xff]  ;;  %v2615_v57 = vld [vmem:[#allocation3 + $0x10] sm:$0xff]  ;;  %s4976_s17 = sshll.u32 %s3336_s24, 3 }
 0x509   : > { %v2629_v51 = vld [vmem:[#allocation3 + $0x80] sm:$0xff]  ;;  %5325 = vmatpush3.bf16.msra.mxu0 %v2613_v50  ;;  %v2630_v54 = vld [vmem:[#allocation3 + $0x88] sm:$0xff]  ;;  %v2631_v58 = vld [vmem:[#allocation3 + $0x90] sm:$0xff]  ;;  %s7481_s13 = scalar_lea.vmem [#allocation2], %s4976_s17 }
 0x50a   : > { %5437 = vmatpush3.bf16.msra.mxu1 %v2629_v51  ;;  %5326 = vmatprep.subr.bf16.mxu0 %v2622_v52  ;;  %v2624_v17 = vld [vmem:[#allocation3 + $0x58] sm:$0xff]  ;;  %v2625_v62 = vld [vmem:[#allocation3 + $0x60] sm:$0xff]  ;;  %v2626_v4 = vld [vmem:[#allocation3 + $0x68] sm:$0xff] }
 0x50b   : > { %5438 = vmatprep.subr.bf16.mxu1 %v2638_v53  ;;  %v2640_v59 = vld [vmem:[#allocation3 + $0xd8] sm:$0xff]  ;;  %v6382_v63 = vld [vmem:[%s7142_s2 + $0x4] ss:$16 sps:$4 sm:$0xff]   ;;  %v2642_v5 = vld [vmem:[#allocation3 + $0xe8] sm:$0xff] }
 0x50c   : > { %v2616_v60 = vld [vmem:[#allocation3 + $0x18] sm:$0xff]  ;;  %v2641_v0 = vld [vmem:[#allocation3 + $0xe0] sm:$0xff]  ;;  %2997 = vmatprep.mubr.bf16.mxu0 %v6382_v63  ;;  %v2618_v6 = vld [vmem:[#allocation3 + $0x28] sm:$0xff] }
 0x50d   : > { %5327 = vmatpush3.bf16.msra.mxu0 %v2614_v13  ;;  %v2632_v61 = vld [vmem:[#allocation3 + $0x98] sm:$0xff]  ;;  %v2617_v2 = vld [vmem:[#allocation3 + $0x20] sm:$0xff]  ;;  %v2634_v7 = vld [vmem:[#allocation3 + $0xa8] sm:$0xff] }
 0x50e   : > { %5439 = vmatpush3.bf16.msra.mxu1 %v2630_v54  ;;  %5328 = vmatprep.subr.bf16.mxu0 %v2623_v55  ;;  %v6385_v1 = vld [vmem:[%s7142_s2 + $0xc] ss:$16 sps:$4 sm:$0xff]   ;;  %v2633_v3 = vld [vmem:[#allocation3 + $0xa0] sm:$0xff]  ;;  %v2627_v8 = vld [vmem:[#allocation3 + $0x70] sm:$0xff] }
 0x50f   : > { %5440 = vmatprep.subr.bf16.mxu1 %v2639_v56  ;;  %3158 = vmatprep.mubr.bf16.mxu1 %v6385_v1  ;;  %v2643_v9 = vld [vmem:[#allocation3 + $0xf0] sm:$0xff]  ;;  %v2628_v12 = vld [vmem:[#allocation3 + $0x78] sm:$0xff] }
 0x510   : > { %v2619_v10 = vld [vmem:[#allocation3 + $0x30] sm:$0xff]  ;;  %v2644_v14 = vld [vmem:[#allocation3 + $0xf8] sm:$0xff] }
 0x511   : > { %5329 = vmatpush3.bf16.msra.mxu0 %v2615_v57  ;;  %v2635_v11 = vld [vmem:[#allocation3 + $0xb0] sm:$0xff]  ;;  %v2620_v15 = vld [vmem:[#allocation3 + $0x38] sm:$0xff] }
 0x512   : > { %5441 = vmatpush3.bf16.msra.mxu1 %v2631_v58  ;;  %5330 = vmatprep.subr.bf16.mxu0 %v2624_v17  ;;  %v2636_v16 = vld [vmem:[#allocation3 + $0xb8] sm:$0xff]  ;;  %v6380_v18 = vld [vmem:[%s7142_s2] ss:$16 sps:$4 sm:$0xff]   ;;  %v6386_v20 = vld [vmem:[%s7142_s2 + $0x24] ss:$16 sps:$4 sm:$0xff]  }
 0x513   : > { %5442 = vmatprep.subr.bf16.mxu1 %v2640_v59  ;;  %v6383_v19 = vld [vmem:[%s7142_s2 + $0x8] ss:$16 sps:$4 sm:$0xff]   ;;  %v6388_v21 = vld [vmem:[%s7142_s2 + $0x2c] ss:$16 sps:$4 sm:$0xff]   ;;  %v6390_v22 = vld [vmem:[%s7142_s2 + $0x20] ss:$16 sps:$4 sm:$0xff]  }
 0x514   : > { %v6391_v23 = vld [vmem:[%s7142_s2 + $0x28] ss:$16 sps:$4 sm:$0xff]   ;;  %v6392_v24 = vld [vmem:[%s7142_s2 + $0x44] ss:$16 sps:$4 sm:$0xff]   ;;  %v6394_v25 = vld [vmem:[%s7142_s2 + $0x4c] ss:$16 sps:$4 sm:$0xff]  }
 0x515   : > { %5331 = vmatpush3.bf16.msra.mxu0 %v2616_v60  ;;  %v6396_v26 = vld [vmem:[%s7142_s2 + $0x40] ss:$16 sps:$4 sm:$0xff]   ;;  %v6397_v27 = vld [vmem:[%s7142_s2 + $0x48] ss:$16 sps:$4 sm:$0xff]   ;;  %v6398_v28 = vld [vmem:[%s7142_s2 + $0x64] ss:$16 sps:$4 sm:$0xff]  }
 0x516   : > { %5443 = vmatpush3.bf16.msra.mxu1 %v2632_v61  ;;  %5332 = vmatprep.subr.bf16.mxu0 %v2625_v62  ;;  %v6400_v29 = vld [vmem:[%s7142_s2 + $0x6c] ss:$16 sps:$4 sm:$0xff]   ;;  %v6402_v30 = vld [vmem:[%s7142_s2 + $0x60] ss:$16 sps:$4 sm:$0xff]   ;;  %v6403_v31 = vld [vmem:[%s7142_s2 + $0x68] ss:$16 sps:$4 sm:$0xff]  }
 0x517   : > { %5444 = vmatprep.subr.bf16.mxu1 %v2641_v0  ;;  %v6404_v32 = vld [vmem:[%s7142_s2 + $0x84] ss:$16 sps:$4 sm:$0xff]   ;;  %v6406_v33 = vld [vmem:[%s7142_s2 + $0x8c] ss:$16 sps:$4 sm:$0xff]   ;;  %v6408_v34 = vld [vmem:[%s7142_s2 + $0x80] ss:$16 sps:$4 sm:$0xff]  }
 0x518   : > { %v6409_v35 = vld [vmem:[%s7142_s2 + $0x88] ss:$16 sps:$4 sm:$0xff]   ;;  %v6410_v36 = vld [vmem:[%s7142_s2 + $0xa4] ss:$16 sps:$4 sm:$0xff]   ;;  %v6412_v37 = vld [vmem:[%s7142_s2 + $0xac] ss:$16 sps:$4 sm:$0xff]  }
 0x519   : > { %5333 = vmatpush3.bf16.msra.mxu0 %v2617_v2  ;;  %v6414_v38 = vld [vmem:[%s7142_s2 + $0xa0] ss:$16 sps:$4 sm:$0xff]   ;;  %v6415_v39 = vld [vmem:[%s7142_s2 + $0xa8] ss:$16 sps:$4 sm:$0xff]   ;;  %v6416_v40 = vld [vmem:[%s7142_s2 + $0xc4] ss:$16 sps:$4 sm:$0xff]  }
 0x51a   : > { %5445 = vmatpush3.bf16.msra.mxu1 %v2633_v3  ;;  %5334 = vmatprep.subr.bf16.mxu0 %v2626_v4  ;;  %v6418_v41 = vld [vmem:[%s7142_s2 + $0xcc] ss:$16 sps:$4 sm:$0xff]   ;;  %v6420_v42 = vld [vmem:[%s7142_s2 + $0xc0] ss:$16 sps:$4 sm:$0xff]   ;;  %v6421_v43 = vld [vmem:[%s7142_s2 + $0xc8] ss:$16 sps:$4 sm:$0xff]  }
 0x51b   : > { %5446 = vmatprep.subr.bf16.mxu1 %v2642_v5  ;;  %v6422_v44 = vld [vmem:[%s7142_s2 + $0xe4] ss:$16 sps:$4 sm:$0xff]   ;;  %v6424_v45 = vld [vmem:[%s7142_s2 + $0xec] ss:$16 sps:$4 sm:$0xff]   ;;  %v6426_v46 = vld [vmem:[%s7142_s2 + $0xe0] ss:$16 sps:$4 sm:$0xff]  }
 0x51c   : > { %v6427_v47 = vld [vmem:[%s7142_s2 + $0xe8] ss:$16 sps:$4 sm:$0xff]   ;;  %v6428_v48 = vld [vmem:[%s7142_s2 + $0x104] ss:$16 sps:$4 sm:$0xff]   ;;  %v6430_v49 = vld [vmem:[%s7142_s2 + $0x10c] ss:$16 sps:$4 sm:$0xff]  }
 0x51d   : > { %5335 = vmatpush3.bf16.msra.mxu0 %v2618_v6  ;;  %v6432_v50 = vld [vmem:[%s7142_s2 + $0x100] ss:$16 sps:$4 sm:$0xff]   ;;  %v6433_v51 = vld [vmem:[%s7142_s2 + $0x108] ss:$16 sps:$4 sm:$0xff]   ;;  %v6434_v52 = vld [vmem:[%s7142_s2 + $0x124] ss:$16 sps:$4 sm:$0xff]  }
 0x51e   : > { %5447 = vmatpush3.bf16.msra.mxu1 %v2634_v7  ;;  %5336 = vmatprep.subr.bf16.mxu0 %v2627_v8  ;;  %v6436_v53 = vld [vmem:[%s7142_s2 + $0x12c] ss:$16 sps:$4 sm:$0xff]   ;;  %v6438_v13 = vld [vmem:[%s7142_s2 + $0x120] ss:$16 sps:$4 sm:$0xff]   ;;  %v6439_v54 = vld [vmem:[%s7142_s2 + $0x128] ss:$16 sps:$4 sm:$0xff]  }
 0x51f   : > { %5448 = vmatprep.subr.bf16.mxu1 %v2643_v9  ;;  %v6440_v55 = vld [vmem:[%s7142_s2 + $0x144] ss:$16 sps:$4 sm:$0xff]   ;;  %v6442_v56 = vld [vmem:[%s7142_s2 + $0x14c] ss:$16 sps:$4 sm:$0xff]   ;;  %v6444_v57 = vld [vmem:[%s7142_s2 + $0x140] ss:$16 sps:$4 sm:$0xff]  }
 0x520   : > { %v6445_v58 = vld [vmem:[%s7142_s2 + $0x148] ss:$16 sps:$4 sm:$0xff]   ;;  %v6446_v17 = vld [vmem:[%s7142_s2 + $0x164] ss:$16 sps:$4 sm:$0xff]   ;;  %v6448_v59 = vld [vmem:[%s7142_s2 + $0x16c] ss:$16 sps:$4 sm:$0xff]  }
 0x521   : > { %5337 = vmatpush3.bf16.msra.mxu0 %v2619_v10  ;;  %v6450_v60 = vld [vmem:[%s7142_s2 + $0x160] ss:$16 sps:$4 sm:$0xff]   ;;  %v6451_v61 = vld [vmem:[%s7142_s2 + $0x168] ss:$16 sps:$4 sm:$0xff]   ;;  %v6452_v62 = vld [vmem:[%s7142_s2 + $0x184] ss:$16 sps:$4 sm:$0xff]  }
 0x522   : > { %5449 = vmatpush3.bf16.msra.mxu1 %v2635_v11  ;;  %5338 = vmatprep.subr.bf16.mxu0 %v2628_v12  ;;  %v6454_v63 = vld [vmem:[%s7142_s2 + $0x18c] ss:$16 sps:$4 sm:$0xff]   ;;  %v6456_v0 = vld [vmem:[%s7142_s2 + $0x180] ss:$16 sps:$4 sm:$0xff]   ;;  %v6457_v1 = vld [vmem:[%s7142_s2 + $0x188] ss:$16 sps:$4 sm:$0xff]  }
 0x523   : > { %5450 = vmatprep.subr.bf16.mxu1 %v2644_v14  ;;  %v6458_v2 = vld [vmem:[%s7142_s2 + $0x1a4] ss:$16 sps:$4 sm:$0xff]   ;;  %v6460_v3 = vld [vmem:[%s7142_s2 + $0x1ac] ss:$16 sps:$4 sm:$0xff]   ;;  %v6462_v4 = vld [vmem:[%s7142_s2 + $0x1a0] ss:$16 sps:$4 sm:$0xff]  }
 0x524   : > { %v6463_v5 = vld [vmem:[%s7142_s2 + $0x1a8] ss:$16 sps:$4 sm:$0xff]   ;;  %v6464_v6 = vld [vmem:[%s7142_s2 + $0x1c4] ss:$16 sps:$4 sm:$0xff]   ;;  %v6466_v7 = vld [vmem:[%s7142_s2 + $0x1cc] ss:$16 sps:$4 sm:$0xff]  }
 0x525   : > { %5339 = vmatpush3.bf16.msra.mxu0 %v2620_v15  ;;  %v6468_v8 = vld [vmem:[%s7142_s2 + $0x1c0] ss:$16 sps:$4 sm:$0xff]   ;;  %v6469_v9 = vld [vmem:[%s7142_s2 + $0x1c8] ss:$16 sps:$4 sm:$0xff]   ;;  %v6470_v10 = vld [vmem:[%s7142_s2 + $0x1e4] ss:$16 sps:$4 sm:$0xff]  }
 0x526   : > { %5451 = vmatpush3.bf16.msra.mxu1 %v2636_v16  ;;  %v6472_v11 = vld [vmem:[%s7142_s2 + $0x1ec] ss:$16 sps:$4 sm:$0xff]   ;;  %v6474_v12 = vld [vmem:[%s7142_s2 + $0x1e0] ss:$16 sps:$4 sm:$0xff]   ;;  %v6475_v14 = vld [vmem:[%s7142_s2 + $0x1e8] ss:$16 sps:$4 sm:$0xff]  }
 0x528   : > { %2998 = vmatmul.mubr.bf16.vlgmr.msra.gmra.mrb[0].mxu0 %v6380_v18 }
 0x529   : > { %3159 = vmatmul.mubr.bf16.vlgmr.msra.gmra.mrb[0].mxu1 %v6383_v19  ;;  %3005 = vmatprep.mubr.bf16.mxu0 %v6386_v20 }
 0x52a   : > { %3166 = vmatprep.mubr.bf16.mxu1 %v6388_v21 }
 0x530   : > { %3006 = vmatmul.mubr.bf16.gmra.mrb[4].mxu0 %v6390_v22 }
 0x531   : > { %3167 = vmatmul.mubr.bf16.gmra.mrb[4].mxu1 %v6391_v23  ;;  %3013 = vmatprep.mubr.bf16.mxu0 %v6392_v24 }
 0x532   : > { %3174 = vmatprep.mubr.bf16.mxu1 %v6394_v25 }
 0x538   : > { %3014 = vmatmul.mubr.bf16.gmra.mrb[8].mxu0 %v6396_v26 }
 0x539   : > { %3175 = vmatmul.mubr.bf16.gmra.mrb[8].mxu1 %v6397_v27  ;;  %3021 = vmatprep.mubr.bf16.mxu0 %v6398_v28 }
 0x53a   : > { %3182 = vmatprep.mubr.bf16.mxu1 %v6400_v29 }
 0x540   : > { %3022 = vmatmul.mubr.bf16.gmra.mrb[12].mxu0 %v6402_v30 }
 0x541   : > { %3183 = vmatmul.mubr.bf16.gmra.mrb[12].mxu1 %v6403_v31  ;;  %3029 = vmatprep.mubr.bf16.mxu0 %v6404_v32 }
 0x542   : > { %3190 = vmatprep.mubr.bf16.mxu1 %v6406_v33 }
 0x548   : > { %3030 = vmatmul.mubr.bf16.gmra.mrb[16].mxu0 %v6408_v34 }
 0x549   : > { %3191 = vmatmul.mubr.bf16.gmra.mrb[16].mxu1 %v6409_v35  ;;  %3037 = vmatprep.mubr.bf16.mxu0 %v6410_v36 }
 0x54a   : > { %3198 = vmatprep.mubr.bf16.mxu1 %v6412_v37 }
 0x550   : > { %3038 = vmatmul.mubr.bf16.gmra.mrb[20].mxu0 %v6414_v38 }
 0x551   : > { %3199 = vmatmul.mubr.bf16.gmra.mrb[20].mxu1 %v6415_v39  ;;  %3045 = vmatprep.mubr.bf16.mxu0 %v6416_v40 }
 0x552   : > { %3206 = vmatprep.mubr.bf16.mxu1 %v6418_v41 }
 0x558   : > { %3046 = vmatmul.mubr.bf16.gmra.mrb[24].mxu0 %v6420_v42 }
 0x559   : > { %3207 = vmatmul.mubr.bf16.gmra.mrb[24].mxu1 %v6421_v43  ;;  %3053 = vmatprep.mubr.bf16.mxu0 %v6422_v44 }
 0x55a   : > { %3214 = vmatprep.mubr.bf16.mxu1 %v6424_v45 }
 0x560   : > { %3054 = vmatmul.mubr.bf16.gmra.mrb[28].mxu0 %v6426_v46 }
 0x561   : > { %3215 = vmatmul.mubr.bf16.gmra.mrb[28].mxu1 %v6427_v47  ;;  %3061 = vmatprep.mubr.bf16.mxu0 %v6428_v48 }
 0x562   : > { %3222 = vmatprep.mubr.bf16.mxu1 %v6430_v49 }
 0x568   : > { %3062 = vmatmul.mubr.bf16.gmra.mrb[32].mxu0 %v6432_v50 }
 0x569   : > { %3223 = vmatmul.mubr.bf16.gmra.mrb[32].mxu1 %v6433_v51  ;;  %3069 = vmatprep.mubr.bf16.mxu0 %v6434_v52 }
 0x56a   : > { %3230 = vmatprep.mubr.bf16.mxu1 %v6436_v53 }
 0x570   : > { %3070 = vmatmul.mubr.bf16.gmra.mrb[36].mxu0 %v6438_v13 }
 0x571   : > { %3231 = vmatmul.mubr.bf16.gmra.mrb[36].mxu1 %v6439_v54  ;;  %3077 = vmatprep.mubr.bf16.mxu0 %v6440_v55 }
 0x572   : > { %3238 = vmatprep.mubr.bf16.mxu1 %v6442_v56 }
 0x578   : > { %3078 = vmatmul.mubr.bf16.gmra.mrb[40].mxu0 %v6444_v57 }
 0x579   : > { %3239 = vmatmul.mubr.bf16.gmra.mrb[40].mxu1 %v6445_v58  ;;  %3085 = vmatprep.mubr.bf16.mxu0 %v6446_v17 }
 0x57a   : > { %3246 = vmatprep.mubr.bf16.mxu1 %v6448_v59 }
 0x580   : > { %3086 = vmatmul.mubr.bf16.gmra.mrb[44].mxu0 %v6450_v60 }
 0x581   : > { %3247 = vmatmul.mubr.bf16.gmra.mrb[44].mxu1 %v6451_v61  ;;  %3093 = vmatprep.mubr.bf16.mxu0 %v6452_v62 }
 0x582   : > { %3254 = vmatprep.mubr.bf16.mxu1 %v6454_v63 }
 0x588   : > { %3094 = vmatmul.mubr.bf16.gmra.mrb[48].mxu0 %v6456_v0 }
 0x589   : > { %3255 = vmatmul.mubr.bf16.gmra.mrb[48].mxu1 %v6457_v1  ;;  %3101 = vmatprep.mubr.bf16.mxu0 %v6458_v2 }
 0x58a   : > { %3262 = vmatprep.mubr.bf16.mxu1 %v6460_v3 }
 0x590   : > { %3102 = vmatmul.mubr.bf16.gmra.mrb[52].mxu0 %v6462_v4 }
 0x591   : > { %3263 = vmatmul.mubr.bf16.gmra.mrb[52].mxu1 %v6463_v5  ;;  %3109 = vmatprep.mubr.bf16.mxu0 %v6464_v6 }
 0x592   : > { %3270 = vmatprep.mubr.bf16.mxu1 %v6466_v7 }
 0x598   : > { %3110 = vmatmul.mubr.bf16.gmra.mrb[56].mxu0 %v6468_v8 }
 0x599   : > { %3271 = vmatmul.mubr.bf16.gmra.mrb[56].mxu1 %v6469_v9  ;;  %3117 = vmatprep.mubr.bf16.mxu0 %v6470_v10 }
 0x59a   : > { %3278 = vmatprep.mubr.bf16.mxu1 %v6472_v11 }
 0x5a0   : > { %3118 = vmatmul.mubr.bf16.gmra.mrb[60].mxu0 %v6474_v12 }
 0x5a1   : > { %3279 = vmatmul.mubr.bf16.gmra.mrb[60].mxu1 %v6475_v14 }
 0x5fb   : > { %v5340_v15 = vpop.f32.mrb[0].mxu0 }
 0x5fc   : > { %v5452_v16 = vpop.f32.mrb[0].mxu1  ;;  %v5341_v18 = vpop.f32.mrb[1].mxu0 }
 0x5fd   : > { %v5453_v19 = vpop.f32.mrb[1].mxu1  ;;  %v5342_v20 = vadd.f32 %v5341_v18, %v5340_v15  ;;  %v5343_v22 = vpop.f32.mrb[2].mxu0 }
 0x5fe   : > { %v5454_v21 = vadd.f32 %v5453_v19, %v5452_v16  ;;  %v5455_v23 = vpop.f32.mrb[2].mxu1  ;;  %v5344_v24 = vpop.f32.mrb[3].mxu0 }
 0x5ff   : > { %v5456_v25 = vpop.f32.mrb[3].mxu1  ;;  %v5345_v27 = vadd.f32 %v5344_v24, %v5343_v22 }
 0x600   : > { %v3161_v26 = vadd.f32 %v5454_v21, %v5342_v20  ;;  %v5457_v28 = vadd.f32 %v5456_v25, %v5455_v23 }
 0x602   : > { %v3164_v29 = vadd.f32 %v5457_v28, %v5345_v27  ;;  %v3288_v30 = vmax.f32 %v3161_v26, 0.0 }
 0x603   : > { %v5346_v32 = vpop.f32.mrb[4].mxu0 }
 0x604   : > { %v3289_v31 = vmax.f32 %v3164_v29, 0.0  ;;  %v5458_v33 = vpop.f32.mrb[4].mxu1  ;;  %v5347_v34 = vpop.f32.mrb[5].mxu0 }
 0x605   : > { %v5459_v35 = vpop.f32.mrb[5].mxu1  ;;  %v5348_v37 = vadd.f32 %v5347_v34, %v5346_v32  ;;  %v5349_v39 = vpop.f32.mrb[6].mxu0 }
 0x606   : > { %v3320_v36 = vpack.c.bf16 %v3289_v31, %v3288_v30  ;;  %v5460_v38 = vadd.f32 %v5459_v35, %v5458_v33  ;;  %v5461_v40 = vpop.f32.mrb[6].mxu1  ;;  %v5350_v41 = vpop.f32.mrb[7].mxu0 }
 0x607   : > { %v5462_v42 = vpop.f32.mrb[7].mxu1  ;;  %v5351_v44 = vadd.f32 %v5350_v41, %v5349_v39 }
 0x608   : > { %3340 = vst [vmem:[%s7481_s13] sm:$0xff] %v3320_v36  ;;  %v3169_v43 = vadd.f32 %v5460_v38, %v5348_v37  ;;  %v5463_v45 = vadd.f32 %v5462_v42, %v5461_v40 }
 0x60a   : > { %v3172_v46 = vadd.f32 %v5463_v45, %v5351_v44  ;;  %v3290_v47 = vmax.f32 %v3169_v43, 0.0 }
 0x60b   : > { %v5352_v49 = vpop.f32.mrb[8].mxu0 }
 0x60c   : > { %v3291_v48 = vmax.f32 %v3172_v46, 0.0  ;;  %v5464_v50 = vpop.f32.mrb[8].mxu1  ;;  %v5353_v51 = vpop.f32.mrb[9].mxu0 }
 0x60d   : > { %v5465_v52 = vpop.f32.mrb[9].mxu1  ;;  %v5354_v13 = vadd.f32 %v5353_v51, %v5352_v49  ;;  %v5355_v55 = vpop.f32.mrb[10].mxu0 }
 0x60e   : > { %v3321_v53 = vpack.c.bf16 %v3291_v48, %v3290_v47  ;;  %v5466_v54 = vadd.f32 %v5465_v52, %v5464_v50  ;;  %v5467_v56 = vpop.f32.mrb[10].mxu1  ;;  %v5356_v57 = vpop.f32.mrb[11].mxu0 }
 0x60f   : > { %v5468_v58 = vpop.f32.mrb[11].mxu1  ;;  %v5357_v59 = vadd.f32 %v5356_v57, %v5355_v55 }
 0x610   : > { %3341 = vst [vmem:[%s7481_s13 + $0x8] sm:$0xff] %v3321_v53  ;;  %v3177_v17 = vadd.f32 %v5466_v54, %v5354_v13  ;;  %v5469_v60 = vadd.f32 %v5468_v58, %v5467_v56 }
 0x612   : > { %v3180_v61 = vadd.f32 %v5469_v60, %v5357_v59  ;;  %v3292_v62 = vmax.f32 %v3177_v17, 0.0 }
 0x613   : > { %v5358_v0 = vpop.f32.mrb[12].mxu0 }
 0x614   : > { %v3293_v63 = vmax.f32 %v3180_v61, 0.0  ;;  %v5470_v1 = vpop.f32.mrb[12].mxu1  ;;  %v5359_v2 = vpop.f32.mrb[13].mxu0 }
 0x615   : > { %v5471_v3 = vpop.f32.mrb[13].mxu1  ;;  %v5360_v5 = vadd.f32 %v5359_v2, %v5358_v0  ;;  %v5361_v7 = vpop.f32.mrb[14].mxu0 }
 0x616   : > { %v3322_v4 = vpack.c.bf16 %v3293_v63, %v3292_v62  ;;  %v5472_v6 = vadd.f32 %v5471_v3, %v5470_v1  ;;  %v5473_v8 = vpop.f32.mrb[14].mxu1  ;;  %v5362_v9 = vpop.f32.mrb[15].mxu0 }
 0x617   : > { %v5474_v10 = vpop.f32.mrb[15].mxu1  ;;  %v5363_v12 = vadd.f32 %v5362_v9, %v5361_v7 }
 0x618   : > { %3342 = vst [vmem:[%s7481_s13 + $0x10] sm:$0xff] %v3322_v4  ;;  %v3185_v11 = vadd.f32 %v5472_v6, %v5360_v5  ;;  %v5475_v14 = vadd.f32 %v5474_v10, %v5473_v8 }
 0x61a   : > { %v3188_v15 = vadd.f32 %v5475_v14, %v5363_v12  ;;  %v3294_v16 = vmax.f32 %v3185_v11, 0.0 }
 0x61b   : > { %v5364_v19 = vpop.f32.mrb[16].mxu0 }
 0x61c   : > { %v3295_v18 = vmax.f32 %v3188_v15, 0.0  ;;  %v5476_v20 = vpop.f32.mrb[16].mxu1  ;;  %v5365_v21 = vpop.f32.mrb[17].mxu0 }
 0x61d   : > { %v5477_v22 = vpop.f32.mrb[17].mxu1  ;;  %v5366_v24 = vadd.f32 %v5365_v21, %v5364_v19  ;;  %v5367_v26 = vpop.f32.mrb[18].mxu0 }
 0x61e   : > { %v3323_v23 = vpack.c.bf16 %v3295_v18, %v3294_v16  ;;  %v5478_v25 = vadd.f32 %v5477_v22, %v5476_v20  ;;  %v5479_v27 = vpop.f32.mrb[18].mxu1  ;;  %v5368_v28 = vpop.f32.mrb[19].mxu0 }
 0x61f   : > { %v5480_v29 = vpop.f32.mrb[19].mxu1  ;;  %v5369_v31 = vadd.f32 %v5368_v28, %v5367_v26 }
 0x620   : > { %3343 = vst [vmem:[%s7481_s13 + $0x18] sm:$0xff] %v3323_v23  ;;  %v3193_v30 = vadd.f32 %v5478_v25, %v5366_v24  ;;  %v5481_v32 = vadd.f32 %v5480_v29, %v5479_v27 }
 0x622   : > { %v3196_v33 = vadd.f32 %v5481_v32, %v5369_v31  ;;  %v3296_v34 = vmax.f32 %v3193_v30, 0.0 }
 0x623   : > { %v5370_v36 = vpop.f32.mrb[20].mxu0 }
 0x624   : > { %v3297_v35 = vmax.f32 %v3196_v33, 0.0  ;;  %v5482_v37 = vpop.f32.mrb[20].mxu1  ;;  %v5371_v38 = vpop.f32.mrb[21].mxu0 }
 0x625   : > { %v5483_v39 = vpop.f32.mrb[21].mxu1  ;;  %v5372_v41 = vadd.f32 %v5371_v38, %v5370_v36  ;;  %v5373_v43 = vpop.f32.mrb[22].mxu0 }
 0x626   : > { %v3324_v40 = vpack.c.bf16 %v3297_v35, %v3296_v34  ;;  %v5484_v42 = vadd.f32 %v5483_v39, %v5482_v37  ;;  %v5485_v44 = vpop.f32.mrb[22].mxu1  ;;  %v5374_v45 = vpop.f32.mrb[23].mxu0 }
 0x627   : > { %v5486_v46 = vpop.f32.mrb[23].mxu1  ;;  %v5375_v48 = vadd.f32 %v5374_v45, %v5373_v43 }
 0x628   : > { %3344 = vst [vmem:[%s7481_s13 + $0x20] sm:$0xff] %v3324_v40  ;;  %v3201_v47 = vadd.f32 %v5484_v42, %v5372_v41  ;;  %v5487_v49 = vadd.f32 %v5486_v46, %v5485_v44 }
 0x62a   : > { %v3204_v50 = vadd.f32 %v5487_v49, %v5375_v48  ;;  %v3298_v51 = vmax.f32 %v3201_v47, 0.0 }
 0x62b   : > { %v5376_v53 = vpop.f32.mrb[24].mxu0 }
 0x62c   : > { %v3299_v52 = vmax.f32 %v3204_v50, 0.0  ;;  %v5488_v13 = vpop.f32.mrb[24].mxu1  ;;  %v5377_v54 = vpop.f32.mrb[25].mxu0 }
 0x62d   : > { %v5489_v55 = vpop.f32.mrb[25].mxu1  ;;  %v5378_v57 = vadd.f32 %v5377_v54, %v5376_v53  ;;  %v5379_v17 = vpop.f32.mrb[26].mxu0 }
 0x62e   : > { %v3325_v56 = vpack.c.bf16 %v3299_v52, %v3298_v51  ;;  %v5490_v58 = vadd.f32 %v5489_v55, %v5488_v13  ;;  %v5491_v59 = vpop.f32.mrb[26].mxu1  ;;  %v5380_v60 = vpop.f32.mrb[27].mxu0 }
 0x62f   : > { %v5492_v61 = vpop.f32.mrb[27].mxu1  ;;  %v5381_v63 = vadd.f32 %v5380_v60, %v5379_v17 }
 0x630   : > { %3345 = vst [vmem:[%s7481_s13 + $0x28] sm:$0xff] %v3325_v56  ;;  %v3209_v62 = vadd.f32 %v5490_v58, %v5378_v57  ;;  %v5493_v0 = vadd.f32 %v5492_v61, %v5491_v59 }
 0x632   : > { %v3212_v1 = vadd.f32 %v5493_v0, %v5381_v63  ;;  %v3300_v2 = vmax.f32 %v3209_v62, 0.0 }
 0x633   : > { %v5382_v4 = vpop.f32.mrb[28].mxu0 }
 0x634   : > { %v3301_v3 = vmax.f32 %v3212_v1, 0.0  ;;  %v5494_v5 = vpop.f32.mrb[28].mxu1  ;;  %v5383_v6 = vpop.f32.mrb[29].mxu0 }
 0x635   : > { %v5495_v7 = vpop.f32.mrb[29].mxu1  ;;  %v5384_v9 = vadd.f32 %v5383_v6, %v5382_v4  ;;  %v5385_v11 = vpop.f32.mrb[30].mxu0 }
 0x636   : > { %v3326_v8 = vpack.c.bf16 %v3301_v3, %v3300_v2  ;;  %v5496_v10 = vadd.f32 %v5495_v7, %v5494_v5  ;;  %v5497_v12 = vpop.f32.mrb[30].mxu1  ;;  %v5386_v14 = vpop.f32.mrb[31].mxu0 }
 0x637   : > { %v5498_v15 = vpop.f32.mrb[31].mxu1  ;;  %v5387_v18 = vadd.f32 %v5386_v14, %v5385_v11 }
 0x638   : > { %3346 = vst [vmem:[%s7481_s13 + $0x30] sm:$0xff] %v3326_v8  ;;  %v3217_v16 = vadd.f32 %v5496_v10, %v5384_v9  ;;  %v5499_v19 = vadd.f32 %v5498_v15, %v5497_v12 }
 0x63a   : > { %v3220_v20 = vadd.f32 %v5499_v19, %v5387_v18  ;;  %v3302_v21 = vmax.f32 %v3217_v16, 0.0 }
 0x63b   : > { %v5388_v23 = vpop.f32.mrb[32].mxu0 }
 0x63c   : > { %v3303_v22 = vmax.f32 %v3220_v20, 0.0  ;;  %v5500_v24 = vpop.f32.mrb[32].mxu1  ;;  %v5389_v25 = vpop.f32.mrb[33].mxu0 }
 0x63d   : > { %v5501_v26 = vpop.f32.mrb[33].mxu1  ;;  %v5390_v28 = vadd.f32 %v5389_v25, %v5388_v23  ;;  %v5391_v30 = vpop.f32.mrb[34].mxu0 }
 0x63e   : > { %v3327_v27 = vpack.c.bf16 %v3303_v22, %v3302_v21  ;;  %v5502_v29 = vadd.f32 %v5501_v26, %v5500_v24  ;;  %v5503_v31 = vpop.f32.mrb[34].mxu1  ;;  %v5392_v32 = vpop.f32.mrb[35].mxu0 }
 0x63f   : > { %v5504_v33 = vpop.f32.mrb[35].mxu1  ;;  %v5393_v35 = vadd.f32 %v5392_v32, %v5391_v30 }
 0x640   : > { %3347 = vst [vmem:[%s7481_s13 + $0x38] sm:$0xff] %v3327_v27  ;;  %v3225_v34 = vadd.f32 %v5502_v29, %v5390_v28  ;;  %v5505_v36 = vadd.f32 %v5504_v33, %v5503_v31 }
 0x642   : > { %v3228_v37 = vadd.f32 %v5505_v36, %v5393_v35  ;;  %v3304_v38 = vmax.f32 %v3225_v34, 0.0 }
 0x643   : > { %v5394_v40 = vpop.f32.mrb[36].mxu0 }
 0x644   : > { %v3305_v39 = vmax.f32 %v3228_v37, 0.0  ;;  %v5506_v41 = vpop.f32.mrb[36].mxu1  ;;  %v5395_v42 = vpop.f32.mrb[37].mxu0 }
 0x645   : > { %v5507_v43 = vpop.f32.mrb[37].mxu1  ;;  %v5396_v45 = vadd.f32 %v5395_v42, %v5394_v40  ;;  %v5397_v47 = vpop.f32.mrb[38].mxu0 }
 0x646   : > { %v3328_v44 = vpack.c.bf16 %v3305_v39, %v3304_v38  ;;  %v5508_v46 = vadd.f32 %v5507_v43, %v5506_v41  ;;  %v5509_v48 = vpop.f32.mrb[38].mxu1  ;;  %v5398_v49 = vpop.f32.mrb[39].mxu0 }
 0x647   : > { %v5510_v50 = vpop.f32.mrb[39].mxu1  ;;  %v5399_v52 = vadd.f32 %v5398_v49, %v5397_v47 }
 0x648   : > { %3348 = vst [vmem:[%s7481_s13 + $0x40] sm:$0xff] %v3328_v44  ;;  %v3233_v51 = vadd.f32 %v5508_v46, %v5396_v45  ;;  %v5511_v53 = vadd.f32 %v5510_v50, %v5509_v48 }
 0x64a   : > { %v3236_v13 = vadd.f32 %v5511_v53, %v5399_v52  ;;  %v3306_v54 = vmax.f32 %v3233_v51, 0.0 }
 0x64b   : > { %v5400_v56 = vpop.f32.mrb[40].mxu0 }
 0x64c   : > { %v3307_v55 = vmax.f32 %v3236_v13, 0.0  ;;  %v5512_v57 = vpop.f32.mrb[40].mxu1  ;;  %v5401_v58 = vpop.f32.mrb[41].mxu0 }
 0x64d   : > { %v5513_v17 = vpop.f32.mrb[41].mxu1  ;;  %v5402_v60 = vadd.f32 %v5401_v58, %v5400_v56  ;;  %v5403_v62 = vpop.f32.mrb[42].mxu0 }
 0x64e   : > { %v3329_v59 = vpack.c.bf16 %v3307_v55, %v3306_v54  ;;  %v5514_v61 = vadd.f32 %v5513_v17, %v5512_v57  ;;  %v5515_v63 = vpop.f32.mrb[42].mxu1  ;;  %v5404_v0 = vpop.f32.mrb[43].mxu0 }
 0x64f   : > { %v5516_v1 = vpop.f32.mrb[43].mxu1  ;;  %v5405_v3 = vadd.f32 %v5404_v0, %v5403_v62 }
 0x650   : > { %3349 = vst [vmem:[%s7481_s13 + $0x48] sm:$0xff] %v3329_v59  ;;  %v3241_v2 = vadd.f32 %v5514_v61, %v5402_v60  ;;  %v5517_v4 = vadd.f32 %v5516_v1, %v5515_v63 }
 0x652   : > { %v3244_v5 = vadd.f32 %v5517_v4, %v5405_v3  ;;  %v3308_v6 = vmax.f32 %v3241_v2, 0.0 }
 0x653   : > { %v5406_v8 = vpop.f32.mrb[44].mxu0 }
 0x654   : > { %v3309_v7 = vmax.f32 %v3244_v5, 0.0  ;;  %v5518_v9 = vpop.f32.mrb[44].mxu1  ;;  %v5407_v10 = vpop.f32.mrb[45].mxu0 }
 0x655   : > { %v5519_v11 = vpop.f32.mrb[45].mxu1  ;;  %v5408_v14 = vadd.f32 %v5407_v10, %v5406_v8  ;;  %v5409_v16 = vpop.f32.mrb[46].mxu0 }
 0x656   : > { %v3330_v12 = vpack.c.bf16 %v3309_v7, %v3308_v6  ;;  %v5520_v15 = vadd.f32 %v5519_v11, %v5518_v9  ;;  %v5521_v18 = vpop.f32.mrb[46].mxu1  ;;  %v5410_v19 = vpop.f32.mrb[47].mxu0 }
 0x657   : > { %v5522_v20 = vpop.f32.mrb[47].mxu1  ;;  %v5411_v22 = vadd.f32 %v5410_v19, %v5409_v16 }
 0x658   : > { %3350 = vst [vmem:[%s7481_s13 + $0x50] sm:$0xff] %v3330_v12  ;;  %v3249_v21 = vadd.f32 %v5520_v15, %v5408_v14  ;;  %v5523_v23 = vadd.f32 %v5522_v20, %v5521_v18 }
 0x65a   : > { %v3252_v24 = vadd.f32 %v5523_v23, %v5411_v22  ;;  %v3310_v25 = vmax.f32 %v3249_v21, 0.0 }
 0x65b   : > { %v5412_v27 = vpop.f32.mrb[48].mxu0 }
 0x65c   : > { %v3311_v26 = vmax.f32 %v3252_v24, 0.0  ;;  %v5524_v28 = vpop.f32.mrb[48].mxu1  ;;  %v5413_v29 = vpop.f32.mrb[49].mxu0 }
 0x65d   : > { %v5525_v30 = vpop.f32.mrb[49].mxu1  ;;  %v5414_v32 = vadd.f32 %v5413_v29, %v5412_v27  ;;  %v5415_v34 = vpop.f32.mrb[50].mxu0 }
 0x65e   : > { %v3331_v31 = vpack.c.bf16 %v3311_v26, %v3310_v25  ;;  %v5526_v33 = vadd.f32 %v5525_v30, %v5524_v28  ;;  %v5527_v35 = vpop.f32.mrb[50].mxu1  ;;  %v5416_v36 = vpop.f32.mrb[51].mxu0 }
 0x65f   : > { %v5528_v37 = vpop.f32.mrb[51].mxu1  ;;  %v5417_v39 = vadd.f32 %v5416_v36, %v5415_v34 }
 0x660   : > { %3351 = vst [vmem:[%s7481_s13 + $0x58] sm:$0xff] %v3331_v31  ;;  %v3257_v38 = vadd.f32 %v5526_v33, %v5414_v32  ;;  %v5529_v40 = vadd.f32 %v5528_v37, %v5527_v35 }
 0x662   : > { %v3260_v41 = vadd.f32 %v5529_v40, %v5417_v39  ;;  %v3312_v42 = vmax.f32 %v3257_v38, 0.0 }
 0x663   : > { %v5418_v44 = vpop.f32.mrb[52].mxu0 }
 0x664   : > { %v3313_v43 = vmax.f32 %v3260_v41, 0.0  ;;  %v5530_v45 = vpop.f32.mrb[52].mxu1  ;;  %v5419_v46 = vpop.f32.mrb[53].mxu0 }
 0x665   : > { %v5531_v47 = vpop.f32.mrb[53].mxu1  ;;  %v5420_v49 = vadd.f32 %v5419_v46, %v5418_v44  ;;  %v5421_v51 = vpop.f32.mrb[54].mxu0 }
 0x666   : > { %v3332_v48 = vpack.c.bf16 %v3313_v43, %v3312_v42  ;;  %v5532_v50 = vadd.f32 %v5531_v47, %v5530_v45  ;;  %v5533_v52 = vpop.f32.mrb[54].mxu1  ;;  %v5422_v53 = vpop.f32.mrb[55].mxu0 }
 0x667   : > { %v5534_v13 = vpop.f32.mrb[55].mxu1  ;;  %v5423_v55 = vadd.f32 %v5422_v53, %v5421_v51 }
 0x668   : > { %3352 = vst [vmem:[%s7481_s13 + $0x60] sm:$0xff] %v3332_v48  ;;  %v3265_v54 = vadd.f32 %v5532_v50, %v5420_v49  ;;  %v5535_v56 = vadd.f32 %v5534_v13, %v5533_v52 }
 0x66a   : > { %v3268_v57 = vadd.f32 %v5535_v56, %v5423_v55  ;;  %v3314_v58 = vmax.f32 %v3265_v54, 0.0 }
 0x66b   : > { %v5424_v59 = vpop.f32.mrb[56].mxu0 }
 0x66c   : > { %v3315_v17 = vmax.f32 %v3268_v57, 0.0  ;;  %v5536_v60 = vpop.f32.mrb[56].mxu1  ;;  %v5425_v61 = vpop.f32.mrb[57].mxu0 }
 0x66d   : > { %v5537_v62 = vpop.f32.mrb[57].mxu1  ;;  %v5426_v0 = vadd.f32 %v5425_v61, %v5424_v59  ;;  %v5427_v2 = vpop.f32.mrb[58].mxu0 }
 0x66e   : > { %v3333_v63 = vpack.c.bf16 %v3315_v17, %v3314_v58  ;;  %v5538_v1 = vadd.f32 %v5537_v62, %v5536_v60  ;;  %v5539_v3 = vpop.f32.mrb[58].mxu1  ;;  %v5428_v4 = vpop.f32.mrb[59].mxu0 }
 0x66f   : > { %v5540_v5 = vpop.f32.mrb[59].mxu1  ;;  %v5429_v7 = vadd.f32 %v5428_v4, %v5427_v2 }
 0x670   : > { %3353 = vst [vmem:[%s7481_s13 + $0x68] sm:$0xff] %v3333_v63  ;;  %v3273_v6 = vadd.f32 %v5538_v1, %v5426_v0  ;;  %v5541_v8 = vadd.f32 %v5540_v5, %v5539_v3 }
 0x672   : > { %v3276_v9 = vadd.f32 %v5541_v8, %v5429_v7  ;;  %v3316_v10 = vmax.f32 %v3273_v6, 0.0 }
 0x673   : > { %v5430_v12 = vpop.f32.mrb[60].mxu0 }
 0x674   : > { %v3317_v11 = vmax.f32 %v3276_v9, 0.0  ;;  %v5542_v14 = vpop.f32.mrb[60].mxu1  ;;  %v5431_v15 = vpop.f32.mrb[61].mxu0 }
 0x675   : > { %v5543_v16 = vpop.f32.mrb[61].mxu1  ;;  %v5432_v19 = vadd.f32 %v5431_v15, %v5430_v12  ;;  %v5433_v21 = vpop.f32.mrb[62].mxu0 }
 0x676   : > { %v3334_v18 = vpack.c.bf16 %v3317_v11, %v3316_v10  ;;  %v5544_v20 = vadd.f32 %v5543_v16, %v5542_v14  ;;  %v5545_v22 = vpop.f32.mrb[62].mxu1  ;;  %v5434_v23 = vpop.f32.mrb[63].mxu0 }
 0x677   : > { %v5546_v24 = vpop.f32.mrb[63].mxu1  ;;  %v5435_v26 = vadd.f32 %v5434_v23, %v5433_v21 }
 0x678   : > { %3354 = vst [vmem:[%s7481_s13 + $0x70] sm:$0xff] %v3334_v18  ;;  %v3281_v25 = vadd.f32 %v5544_v20, %v5432_v19  ;;  %v5547_v27 = vadd.f32 %v5546_v24, %v5545_v22 }
 0x67a   : > { %v3284_v28 = vadd.f32 %v5547_v27, %v5435_v26  ;;  %v3318_v29 = vmax.f32 %v3281_v25, 0.0 }
 0x67c   : > { %v3319_v30 = vmax.f32 %v3284_v28, 0.0 }
 0x67e   : > { %v3335_v31 = vpack.c.bf16 %v3319_v30, %v3318_v29 }
 0x680   : > { %3355 = vst [vmem:[%s7481_s13 + $0x78] sm:$0xff] %v3335_v31 }
 0x681 PF: > { %p4977_p2 = scmp.ne.s32.totalorder %s6820_s9, 2 }
 0x682   : > { %p4978_p5 = scmp.ne.s32.totalorder (!%p4977_p2), %s6816_s30, 0 }
 0x683   : > { %3359 = sbr.rel (%p4977_p2) target bundleno = 2358 (0x936), region = 92 }
 0x68a   : > { %3363 = sbr.rel (%p4978_p5) target bundleno = 1983 (0x7bf), region = 96  ;;  %v6476_v32 = vld [vmem:[#allocation12] sm:$0xff] (!%p4978_p5)   ;;  %v6477_v33 = vld [vmem:[#allocation12 + $0x8] sm:$0xff] (!%p4978_p5)   ;;  %v6478_v34 = vld [vmem:[#allocation12 + $0x10] sm:$0xff] (!%p4978_p5)   ;;  %s7771_s26 = sld [smem:[#allocation23_spill]] (!%p4978_p5) }
 0x68b   : > { %5892 = vmatprep.subr.bf16.mxu0 (!%p4978_p5), %v6476_v32  ;;  %6020 = vmatprep.subr.bf16.mxu1 (!%p4978_p5), %v6476_v32  ;;  %v6479_v35 = vld [vmem:[#allocation12 + $0x18] sm:$0xff] (!%p4978_p5)   ;;  %v3364_v36 = vld [vmem:[#allocation2] sm:$0xff] (!%p4978_p5)  ;;  %v6481_v39 = vld [vmem:[#allocation12 + $0x28] sm:$0xff] (!%p4978_p5)  }
 0x68c   : > { %5893 = vmatpush3.bf16.msra.mxu0 (!%p4978_p5), %v6476_v32  ;;  %6028 = vmatpush3.bf16.msra.mxu1 (!%p4978_p5), %v6476_v32  ;;  %v3380_v37 = vld [vmem:[#allocation2 + $0x80] sm:$0xff] (!%p4978_p5)  ;;  %v6482_v40 = vld [vmem:[#allocation12 + $0x30] sm:$0xff] (!%p4978_p5)   ;;  %v6483_v41 = vld [vmem:[#allocation12 + $0x38] sm:$0xff] (!%p4978_p5)  }
 0x68d   : > { %5894 = vmatprep.subr.bf16.mxu0 (!%p4978_p5), %v6477_v33  ;;  %6021 = vmatprep.subr.bf16.mxu1 (!%p4978_p5), %v6477_v33  ;;  %v6480_v38 = vld [vmem:[#allocation12 + $0x20] sm:$0xff] (!%p4978_p5)   ;;  %v3365_v42 = vld [vmem:[#allocation2 + $0x8] sm:$0xff] (!%p4978_p5)  ;;  %v3366_v44 = vld [vmem:[#allocation2 + $0x10] sm:$0xff] (!%p4978_p5) }
 0x68e   : > { %5908 = vmatprep.mubr.bf16.mxu0 (!%p4978_p5), %v3364_v36  ;;  %5940 = vmatprep.mubr.bf16.mxu1 (!%p4978_p5), %v3380_v37  ;;  %v3381_v43 = vld [vmem:[#allocation2 + $0x88] sm:$0xff] (!%p4978_p5)  ;;  %v3382_v45 = vld [vmem:[#allocation2 + $0x90] sm:$0xff] (!%p4978_p5)  ;;  %v3367_v46 = vld [vmem:[#allocation2 + $0x18] sm:$0xff] (!%p4978_p5) }
 0x68f   : > { %v3383_v47 = vld [vmem:[#allocation2 + $0x98] sm:$0xff] (!%p4978_p5)  ;;  %v3368_v48 = vld [vmem:[#allocation2 + $0x20] sm:$0xff] (!%p4978_p5)  ;;  %v3369_v50 = vld [vmem:[#allocation2 + $0x28] sm:$0xff] (!%p4978_p5) }
 0x690   : > { %5895 = vmatpush3.bf16.msra.mxu0 (!%p4978_p5), %v6477_v33  ;;  %6029 = vmatpush3.bf16.msra.mxu1 (!%p4978_p5), %v6477_v33  ;;  %v3384_v49 = vld [vmem:[#allocation2 + $0xa0] sm:$0xff] (!%p4978_p5)  ;;  %v3385_v51 = vld [vmem:[#allocation2 + $0xa8] sm:$0xff] (!%p4978_p5)  ;;  %v3370_v52 = vld [vmem:[#allocation2 + $0x30] sm:$0xff] (!%p4978_p5) }
 0x691   : > { %5896 = vmatprep.subr.bf16.mxu0 %v6478_v34  ;;  %6022 = vmatprep.subr.bf16.mxu1 %v6478_v34  ;;  %v3386_v53 = vld [vmem:[#allocation2 + $0xb0] sm:$0xff]  ;;  %v3371_v13 = vld [vmem:[#allocation2 + $0x38] sm:$0xff]  ;;  %v3372_v55 = vld [vmem:[#allocation2 + $0x40] sm:$0xff] }
 0x692   : > { %v3387_v54 = vld [vmem:[#allocation2 + $0xb8] sm:$0xff]  ;;  %v3388_v56 = vld [vmem:[#allocation2 + $0xc0] sm:$0xff]  ;;  %v3373_v57 = vld [vmem:[#allocation2 + $0x48] sm:$0xff] }
 0x693   : > { %v3389_v58 = vld [vmem:[#allocation2 + $0xc8] sm:$0xff]  ;;  %v3374_v17 = vld [vmem:[#allocation2 + $0x50] sm:$0xff]  ;;  %v3375_v60 = vld [vmem:[#allocation2 + $0x58] sm:$0xff] }
 0x694   : > { %5897 = vmatpush3.bf16.msra.mxu0 %v6478_v34  ;;  %6030 = vmatpush3.bf16.msra.mxu1 %v6478_v34  ;;  %v3390_v59 = vld [vmem:[#allocation2 + $0xd0] sm:$0xff]  ;;  %v3391_v61 = vld [vmem:[#allocation2 + $0xd8] sm:$0xff]  ;;  %v3376_v62 = vld [vmem:[#allocation2 + $0x60] sm:$0xff] }
 0x695   : > { %5898 = vmatprep.subr.bf16.mxu0 %v6479_v35  ;;  %6023 = vmatprep.subr.bf16.mxu1 %v6479_v35  ;;  %v3392_v63 = vld [vmem:[#allocation2 + $0xe0] sm:$0xff]  ;;  %v3377_v0 = vld [vmem:[#allocation2 + $0x68] sm:$0xff]  ;;  %v3378_v2 = vld [vmem:[#allocation2 + $0x70] sm:$0xff] }
 0x696   : > { %v3393_v1 = vld [vmem:[#allocation2 + $0xe8] sm:$0xff]  ;;  %v3394_v3 = vld [vmem:[#allocation2 + $0xf0] sm:$0xff]  ;;  %v3379_v4 = vld [vmem:[#allocation2 + $0x78] sm:$0xff] }
 0x697   : > { %v3395_v5 = vld [vmem:[#allocation2 + $0xf8] sm:$0xff]  ;;  %v7504_v7 = vld [vmem:[%s7771_s26] ss:$0 sm:$0xff] }
 0x698   : > { %5899 = vmatpush3.bf16.msra.mxu0 %v6479_v35  ;;  %6031 = vmatpush3.bf16.msra.mxu1 %v6479_v35 }
 0x699   : > { %5900 = vmatprep.subr.bf16.mxu0 %v6480_v38  ;;  %6024 = vmatprep.subr.bf16.mxu1 %v6480_v38 }
 0x69c   : > { %5901 = vmatpush3.bf16.msra.mxu0 %v6480_v38  ;;  %6032 = vmatpush3.bf16.msra.mxu1 %v6480_v38 }
 0x69d   : > { %5902 = vmatprep.subr.bf16.mxu0 %v6481_v39  ;;  %6025 = vmatprep.subr.bf16.mxu1 %v6481_v39 }
 0x6a0   : > { %5903 = vmatpush3.bf16.msra.mxu0 %v6481_v39  ;;  %6033 = vmatpush3.bf16.msra.mxu1 %v6481_v39 }
 0x6a1   : > { %5904 = vmatprep.subr.bf16.mxu0 %v6482_v40  ;;  %6026 = vmatprep.subr.bf16.mxu1 %v6482_v40 }
 0x6a4   : > { %5905 = vmatpush3.bf16.msra.mxu0 %v6482_v40  ;;  %6034 = vmatpush3.bf16.msra.mxu1 %v6482_v40 }
 0x6a5   : > { %5906 = vmatprep.subr.bf16.mxu0 %v6483_v41  ;;  %6027 = vmatprep.subr.bf16.mxu1 %v6483_v41 }
 0x6a8   : > { %5907 = vmatpush3.bf16.msra.mxu0 %v6483_v41  ;;  %6035 = vmatpush3.bf16.msra.mxu1 %v6483_v41 }
 0x6ab   : > { %5909 = vmatmul.mubr.bf16.vlgmr.msra.gmra.mrb[0].mxu0 %v3365_v42  ;;  %5941 = vmatmul.mubr.bf16.vlgmr.msra.gmra.mrb[0].mxu1 %v3381_v43 }
 0x6ac   : > { %5912 = vmatprep.mubr.bf16.mxu0 %v3366_v44  ;;  %5944 = vmatprep.mubr.bf16.mxu1 %v3382_v45 }
 0x6b3   : > { %5913 = vmatmul.mubr.bf16.gmra.mrb[4].mxu0 %v3367_v46  ;;  %5945 = vmatmul.mubr.bf16.gmra.mrb[4].mxu1 %v3383_v47 }
 0x6b4   : > { %5916 = vmatprep.mubr.bf16.mxu0 %v3368_v48  ;;  %5948 = vmatprep.mubr.bf16.mxu1 %v3384_v49 }
 0x6bb   : > { %5917 = vmatmul.mubr.bf16.gmra.mrb[8].mxu0 %v3369_v50  ;;  %5949 = vmatmul.mubr.bf16.gmra.mrb[8].mxu1 %v3385_v51 }
 0x6bc   : > { %5920 = vmatprep.mubr.bf16.mxu0 %v3370_v52  ;;  %5952 = vmatprep.mubr.bf16.mxu1 %v3386_v53 }
 0x6c3   : > { %5921 = vmatmul.mubr.bf16.gmra.mrb[12].mxu0 %v3371_v13  ;;  %5953 = vmatmul.mubr.bf16.gmra.mrb[12].mxu1 %v3387_v54 }
 0x6c4   : > { %5924 = vmatprep.mubr.bf16.mxu0 %v3372_v55  ;;  %5956 = vmatprep.mubr.bf16.mxu1 %v3388_v56 }
 0x6cb   : > { %5925 = vmatmul.mubr.bf16.gmra.mrb[16].mxu0 %v3373_v57  ;;  %5957 = vmatmul.mubr.bf16.gmra.mrb[16].mxu1 %v3389_v58 }
 0x6cc   : > { %5928 = vmatprep.mubr.bf16.mxu0 %v3374_v17  ;;  %5960 = vmatprep.mubr.bf16.mxu1 %v3390_v59 }
 0x6d3   : > { %5929 = vmatmul.mubr.bf16.gmra.mrb[20].mxu0 %v3375_v60  ;;  %5961 = vmatmul.mubr.bf16.gmra.mrb[20].mxu1 %v3391_v61 }
 0x6d4   : > { %5932 = vmatprep.mubr.bf16.mxu0 %v3376_v62  ;;  %5964 = vmatprep.mubr.bf16.mxu1 %v3392_v63 }
 0x6db   : > { %5933 = vmatmul.mubr.bf16.gmra.mrb[24].mxu0 %v3377_v0  ;;  %5965 = vmatmul.mubr.bf16.gmra.mrb[24].mxu1 %v3393_v1 }
 0x6dc   : > { %5936 = vmatprep.mubr.bf16.mxu0 %v3378_v2  ;;  %5968 = vmatprep.mubr.bf16.mxu1 %v3394_v3 }
 0x6e3   : > { %5937 = vmatmul.mubr.bf16.gmra.mrb[28].mxu0 %v3379_v4  ;;  %5969 = vmatmul.mubr.bf16.gmra.mrb[28].mxu1 %v3395_v5 }
 0x77e   : > { %v5910_v6 = vpop.f32.mrb[0].mxu0  ;;  %v5942_v8 = vpop.f32.mrb[0].mxu1 }
 0x77f   : > { %v3501_v9 = vpop.f32.mrb[1].mxu0  ;;  %v3629_v10 = vpop.f32.mrb[1].mxu1  ;;  %v3510_v14 = vadd.f32 %v5910_v6, %v7504_v7  ;;  %v3638_v15 = vadd.f32 %v5942_v8, %v7504_v7 }
 0x780   : > { %v5911_v11 = vpop.f32.mrb[2].mxu0  ;;  %v5943_v12 = vpop.f32.mrb[2].mxu1  ;;  %v3502_v21 = vadd.f32 %v7504_v7, %v3501_v9  ;;  %v3630_v22 = vadd.f32 %v7504_v7, %v3629_v10 }
 0x781   : > { %v3513_v16 = vadd.f32 %v5911_v11, %v7504_v7  ;;  %v3641_v18 = vadd.f32 %v5943_v12, %v7504_v7  ;;  %v3504_v19 = vpop.f32.mrb[3].mxu0  ;;  %v3632_v20 = vpop.f32.mrb[3].mxu1 }
 0x782   : > { %v3505_v23 = vadd.f32 %v7504_v7, %v3504_v19  ;;  %v3633_v24 = vadd.f32 %v7504_v7, %v3632_v20 }
 0x783   : > { %v3757_v25 = vpack.c.bf16 %v3513_v16, %v3510_v14  ;;  %v3773_v26 = vpack.c.bf16 %v3641_v18, %v3638_v15 }
 0x784   : > { %v3756_v27 = vpack.c.bf16 %v3505_v23, %v3502_v21  ;;  %v3772_v28 = vpack.c.bf16 %v3633_v24, %v3630_v22 }
 0x785   : > { %3789 = vst [vmem:[#allocation3 + $0x8] sm:$0xff] %v3757_v25  ;;  %3805 = vst [vmem:[#allocation3 + $0x88] sm:$0xff] %v3773_v26 }
 0x786   : > { %3788 = vst [vmem:[#allocation3] sm:$0xff] %v3756_v27  ;;  %3804 = vst [vmem:[#allocation3 + $0x80] sm:$0xff] %v3772_v28  ;;  %v5914_v29 = vpop.f32.mrb[4].mxu0  ;;  %v5946_v30 = vpop.f32.mrb[4].mxu1 }
 0x787   : > { %v3517_v31 = vpop.f32.mrb[5].mxu0  ;;  %v3645_v32 = vpop.f32.mrb[5].mxu1  ;;  %v3526_v35 = vadd.f32 %v5914_v29, %v7504_v7  ;;  %v3654_v36 = vadd.f32 %v5946_v30, %v7504_v7 }
 0x788   : > { %v5915_v33 = vpop.f32.mrb[6].mxu0  ;;  %v5947_v34 = vpop.f32.mrb[6].mxu1  ;;  %v3518_v41 = vadd.f32 %v7504_v7, %v3517_v31  ;;  %v3646_v42 = vadd.f32 %v7504_v7, %v3645_v32 }
 0x789   : > { %v3529_v37 = vadd.f32 %v5915_v33, %v7504_v7  ;;  %v3657_v38 = vadd.f32 %v5947_v34, %v7504_v7  ;;  %v3520_v39 = vpop.f32.mrb[7].mxu0  ;;  %v3648_v40 = vpop.f32.mrb[7].mxu1 }
 0x78a   : > { %v3521_v43 = vadd.f32 %v7504_v7, %v3520_v39  ;;  %v3649_v44 = vadd.f32 %v7504_v7, %v3648_v40 }
 0x78b   : > { %v3759_v45 = vpack.c.bf16 %v3529_v37, %v3526_v35  ;;  %v3775_v46 = vpack.c.bf16 %v3657_v38, %v3654_v36 }
 0x78c   : > { %v3758_v47 = vpack.c.bf16 %v3521_v43, %v3518_v41  ;;  %v3774_v48 = vpack.c.bf16 %v3649_v44, %v3646_v42 }
 0x78d   : > { %3791 = vst [vmem:[#allocation3 + $0x18] sm:$0xff] %v3759_v45  ;;  %3807 = vst [vmem:[#allocation3 + $0x98] sm:$0xff] %v3775_v46 }
 0x78e   : > { %3790 = vst [vmem:[#allocation3 + $0x10] sm:$0xff] %v3758_v47  ;;  %3806 = vst [vmem:[#allocation3 + $0x90] sm:$0xff] %v3774_v48  ;;  %v5918_v49 = vpop.f32.mrb[8].mxu0  ;;  %v5950_v50 = vpop.f32.mrb[8].mxu1 }
 0x78f   : > { %v3533_v51 = vpop.f32.mrb[9].mxu0  ;;  %v3661_v52 = vpop.f32.mrb[9].mxu1  ;;  %v3542_v54 = vadd.f32 %v5918_v49, %v7504_v7  ;;  %v3670_v55 = vadd.f32 %v5950_v50, %v7504_v7 }
 0x790   : > { %v5919_v53 = vpop.f32.mrb[10].mxu0  ;;  %v5951_v13 = vpop.f32.mrb[10].mxu1  ;;  %v3534_v59 = vadd.f32 %v7504_v7, %v3533_v51  ;;  %v3662_v60 = vadd.f32 %v7504_v7, %v3661_v52 }
 0x791   : > { %v3545_v56 = vadd.f32 %v5919_v53, %v7504_v7  ;;  %v3673_v57 = vadd.f32 %v5951_v13, %v7504_v7  ;;  %v3536_v58 = vpop.f32.mrb[11].mxu0  ;;  %v3664_v17 = vpop.f32.mrb[11].mxu1 }
 0x792   : > { %v3537_v61 = vadd.f32 %v7504_v7, %v3536_v58  ;;  %v3665_v62 = vadd.f32 %v7504_v7, %v3664_v17 }
 0x793   : > { %v3761_v63 = vpack.c.bf16 %v3545_v56, %v3542_v54  ;;  %v3777_v0 = vpack.c.bf16 %v3673_v57, %v3670_v55 }
 0x794   : > { %v3760_v1 = vpack.c.bf16 %v3537_v61, %v3534_v59  ;;  %v3776_v2 = vpack.c.bf16 %v3665_v62, %v3662_v60 }
 0x795   : > { %3793 = vst [vmem:[#allocation3 + $0x28] sm:$0xff] %v3761_v63  ;;  %3809 = vst [vmem:[#allocation3 + $0xa8] sm:$0xff] %v3777_v0 }
 0x796   : > { %3792 = vst [vmem:[#allocation3 + $0x20] sm:$0xff] %v3760_v1  ;;  %3808 = vst [vmem:[#allocation3 + $0xa0] sm:$0xff] %v3776_v2  ;;  %v5922_v3 = vpop.f32.mrb[12].mxu0  ;;  %v5954_v4 = vpop.f32.mrb[12].mxu1 }
 0x797   : > { %v3549_v5 = vpop.f32.mrb[13].mxu0  ;;  %v3677_v6 = vpop.f32.mrb[13].mxu1  ;;  %v3558_v10 = vadd.f32 %v5922_v3, %v7504_v7  ;;  %v3686_v11 = vadd.f32 %v5954_v4, %v7504_v7 }
 0x798   : > { %v5923_v8 = vpop.f32.mrb[14].mxu0  ;;  %v5955_v9 = vpop.f32.mrb[14].mxu1  ;;  %v3550_v18 = vadd.f32 %v7504_v7, %v3549_v5  ;;  %v3678_v19 = vadd.f32 %v7504_v7, %v3677_v6 }
 0x799   : > { %v3561_v12 = vadd.f32 %v5923_v8, %v7504_v7  ;;  %v3689_v14 = vadd.f32 %v5955_v9, %v7504_v7  ;;  %v3552_v15 = vpop.f32.mrb[15].mxu0  ;;  %v3680_v16 = vpop.f32.mrb[15].mxu1 }
 0x79a   : > { %v3553_v20 = vadd.f32 %v7504_v7, %v3552_v15  ;;  %v3681_v21 = vadd.f32 %v7504_v7, %v3680_v16 }
 0x79b   : > { %v3763_v22 = vpack.c.bf16 %v3561_v12, %v3558_v10  ;;  %v3779_v23 = vpack.c.bf16 %v3689_v14, %v3686_v11 }
 0x79c   : > { %v3762_v24 = vpack.c.bf16 %v3553_v20, %v3550_v18  ;;  %v3778_v25 = vpack.c.bf16 %v3681_v21, %v3678_v19 }
 0x79d   : > { %3795 = vst [vmem:[#allocation3 + $0x38] sm:$0xff] %v3763_v22  ;;  %3811 = vst [vmem:[#allocation3 + $0xb8] sm:$0xff] %v3779_v23 }
 0x79e   : > { %3794 = vst [vmem:[#allocation3 + $0x30] sm:$0xff] %v3762_v24  ;;  %3810 = vst [vmem:[#allocation3 + $0xb0] sm:$0xff] %v3778_v25  ;;  %v5926_v26 = vpop.f32.mrb[16].mxu0  ;;  %v5958_v27 = vpop.f32.mrb[16].mxu1 }
 0x79f   : > { %v3565_v28 = vpop.f32.mrb[17].mxu0  ;;  %v3693_v29 = vpop.f32.mrb[17].mxu1  ;;  %v3574_v32 = vadd.f32 %v5926_v26, %v7504_v7  ;;  %v3702_v33 = vadd.f32 %v5958_v27, %v7504_v7 }
 0x7a0   : > { %v5927_v30 = vpop.f32.mrb[18].mxu0  ;;  %v5959_v31 = vpop.f32.mrb[18].mxu1  ;;  %v3566_v38 = vadd.f32 %v7504_v7, %v3565_v28  ;;  %v3694_v39 = vadd.f32 %v7504_v7, %v3693_v29 }
 0x7a1   : > { %v3577_v34 = vadd.f32 %v5927_v30, %v7504_v7  ;;  %v3705_v35 = vadd.f32 %v5959_v31, %v7504_v7  ;;  %v3568_v36 = vpop.f32.mrb[19].mxu0  ;;  %v3696_v37 = vpop.f32.mrb[19].mxu1 }
 0x7a2   : > { %v3569_v40 = vadd.f32 %v7504_v7, %v3568_v36  ;;  %v3697_v41 = vadd.f32 %v7504_v7, %v3696_v37 }
 0x7a3   : > { %v3765_v42 = vpack.c.bf16 %v3577_v34, %v3574_v32  ;;  %v3781_v43 = vpack.c.bf16 %v3705_v35, %v3702_v33 }
 0x7a4   : > { %v3764_v44 = vpack.c.bf16 %v3569_v40, %v3566_v38  ;;  %v3780_v45 = vpack.c.bf16 %v3697_v41, %v3694_v39 }
 0x7a5   : > { %3797 = vst [vmem:[#allocation3 + $0x48] sm:$0xff] %v3765_v42  ;;  %3813 = vst [vmem:[#allocation3 + $0xc8] sm:$0xff] %v3781_v43 }
 0x7a6   : > { %3796 = vst [vmem:[#allocation3 + $0x40] sm:$0xff] %v3764_v44  ;;  %3812 = vst [vmem:[#allocation3 + $0xc0] sm:$0xff] %v3780_v45  ;;  %v5930_v46 = vpop.f32.mrb[20].mxu0  ;;  %v5962_v47 = vpop.f32.mrb[20].mxu1 }
 0x7a7   : > { %v3581_v48 = vpop.f32.mrb[21].mxu0  ;;  %v3709_v49 = vpop.f32.mrb[21].mxu1  ;;  %v3590_v52 = vadd.f32 %v5930_v46, %v7504_v7  ;;  %v3718_v53 = vadd.f32 %v5962_v47, %v7504_v7 }
 0x7a8   : > { %v5931_v50 = vpop.f32.mrb[22].mxu0  ;;  %v5963_v51 = vpop.f32.mrb[22].mxu1  ;;  %v3582_v57 = vadd.f32 %v7504_v7, %v3581_v48  ;;  %v3710_v58 = vadd.f32 %v7504_v7, %v3709_v49 }
 0x7a9   : > { %v3593_v13 = vadd.f32 %v5931_v50, %v7504_v7  ;;  %v3721_v54 = vadd.f32 %v5963_v51, %v7504_v7  ;;  %v3584_v55 = vpop.f32.mrb[23].mxu0  ;;  %v3712_v56 = vpop.f32.mrb[23].mxu1 }
 0x7aa   : > { %v3585_v17 = vadd.f32 %v7504_v7, %v3584_v55  ;;  %v3713_v59 = vadd.f32 %v7504_v7, %v3712_v56 }
 0x7ab   : > { %v3767_v60 = vpack.c.bf16 %v3593_v13, %v3590_v52  ;;  %v3783_v61 = vpack.c.bf16 %v3721_v54, %v3718_v53 }
 0x7ac   : > { %v3766_v62 = vpack.c.bf16 %v3585_v17, %v3582_v57  ;;  %v3782_v63 = vpack.c.bf16 %v3713_v59, %v3710_v58 }
 0x7ad   : > { %3799 = vst [vmem:[#allocation3 + $0x58] sm:$0xff] %v3767_v60  ;;  %3815 = vst [vmem:[#allocation3 + $0xd8] sm:$0xff] %v3783_v61 }
 0x7ae   : > { %3798 = vst [vmem:[#allocation3 + $0x50] sm:$0xff] %v3766_v62  ;;  %3814 = vst [vmem:[#allocation3 + $0xd0] sm:$0xff] %v3782_v63  ;;  %v5934_v0 = vpop.f32.mrb[24].mxu0  ;;  %v5966_v1 = vpop.f32.mrb[24].mxu1 }
 0x7af   : > { %v3597_v2 = vpop.f32.mrb[25].mxu0  ;;  %v3725_v3 = vpop.f32.mrb[25].mxu1  ;;  %v3606_v6 = vadd.f32 %v5934_v0, %v7504_v7  ;;  %v3734_v8 = vadd.f32 %v5966_v1, %v7504_v7 }
 0x7b0   : > { %v5935_v4 = vpop.f32.mrb[26].mxu0  ;;  %v5967_v5 = vpop.f32.mrb[26].mxu1  ;;  %v3598_v14 = vadd.f32 %v7504_v7, %v3597_v2  ;;  %v3726_v15 = vadd.f32 %v7504_v7, %v3725_v3 }
 0x7b1   : > { %v3609_v9 = vadd.f32 %v5935_v4, %v7504_v7  ;;  %v3737_v10 = vadd.f32 %v5967_v5, %v7504_v7  ;;  %v3600_v11 = vpop.f32.mrb[27].mxu0  ;;  %v3728_v12 = vpop.f32.mrb[27].mxu1 }
 0x7b2   : > { %v3601_v16 = vadd.f32 %v7504_v7, %v3600_v11  ;;  %v3729_v18 = vadd.f32 %v7504_v7, %v3728_v12 }
 0x7b3   : > { %v3769_v19 = vpack.c.bf16 %v3609_v9, %v3606_v6  ;;  %v3785_v20 = vpack.c.bf16 %v3737_v10, %v3734_v8 }
 0x7b4   : > { %v3768_v21 = vpack.c.bf16 %v3601_v16, %v3598_v14  ;;  %v3784_v22 = vpack.c.bf16 %v3729_v18, %v3726_v15 }
 0x7b5   : > { %3801 = vst [vmem:[#allocation3 + $0x68] sm:$0xff] %v3769_v19  ;;  %3817 = vst [vmem:[#allocation3 + $0xe8] sm:$0xff] %v3785_v20 }
 0x7b6   : > { %3800 = vst [vmem:[#allocation3 + $0x60] sm:$0xff] %v3768_v21  ;;  %3816 = vst [vmem:[#allocation3 + $0xe0] sm:$0xff] %v3784_v22  ;;  %v5938_v23 = vpop.f32.mrb[28].mxu0  ;;  %v5970_v24 = vpop.f32.mrb[28].mxu1 }
 0x7b7   : > { %v3613_v25 = vpop.f32.mrb[29].mxu0  ;;  %v3741_v26 = vpop.f32.mrb[29].mxu1  ;;  %v3622_v29 = vadd.f32 %v5938_v23, %v7504_v7  ;;  %v3750_v30 = vadd.f32 %v5970_v24, %v7504_v7 }
 0x7b8   : > { %v5939_v27 = vpop.f32.mrb[30].mxu0  ;;  %v5971_v28 = vpop.f32.mrb[30].mxu1  ;;  %v3614_v35 = vadd.f32 %v7504_v7, %v3613_v25  ;;  %v3742_v36 = vadd.f32 %v7504_v7, %v3741_v26 }
 0x7b9   : > { %v3625_v31 = vadd.f32 %v5939_v27, %v7504_v7  ;;  %v3753_v32 = vadd.f32 %v5971_v28, %v7504_v7  ;;  %v3616_v33 = vpop.f32.mrb[31].mxu0  ;;  %v3744_v34 = vpop.f32.mrb[31].mxu1 }
 0x7ba   : > { %v3617_v37 = vadd.f32 %v7504_v7, %v3616_v33  ;;  %v3745_v38 = vadd.f32 %v7504_v7, %v3744_v34 }
 0x7bb   : > { %v3771_v39 = vpack.c.bf16 %v3625_v31, %v3622_v29  ;;  %v3787_v40 = vpack.c.bf16 %v3753_v32, %v3750_v30 }
 0x7bc   : > { %v3770_v41 = vpack.c.bf16 %v3617_v37, %v3614_v35  ;;  %v3786_v42 = vpack.c.bf16 %v3745_v38, %v3742_v36 }
 0x7bd   : > { %3803 = vst [vmem:[#allocation3 + $0x78] sm:$0xff] %v3771_v39  ;;  %3819 = vst [vmem:[#allocation3 + $0xf8] sm:$0xff] %v3787_v40 }
 0x7be   : > { %3802 = vst [vmem:[#allocation3 + $0x70] sm:$0xff] %v3770_v41  ;;  %3818 = vst [vmem:[#allocation3 + $0xf0] sm:$0xff] %v3786_v42 }
 0x7bf PF: > { %v3892_v43 = vld [vmem:[#allocation3 + $0x40] sm:$0xff]  ;;  %v3893_v47 = vld [vmem:[#allocation3 + $0x48] sm:$0xff]  ;;  %v3894_v50 = vld [vmem:[#allocation3 + $0x50] sm:$0xff] }
 0x7c0   : > { %v3908_v44 = vld [vmem:[#allocation3 + $0xc0] sm:$0xff]  ;;  %5588 = vmatprep.subr.bf16.mxu0 %v3892_v43  ;;  %v3909_v48 = vld [vmem:[#allocation3 + $0xc8] sm:$0xff]  ;;  %v3910_v51 = vld [vmem:[#allocation3 + $0xd0] sm:$0xff] }
 0x7c1   : > { %v3884_v45 = vld [vmem:[#allocation3] sm:$0xff]  ;;  %5700 = vmatprep.subr.bf16.mxu1 %v3908_v44  ;;  %v3885_v7 = vld [vmem:[#allocation3 + $0x8] sm:$0xff]  ;;  %v3886_v52 = vld [vmem:[#allocation3 + $0x10] sm:$0xff] }
 0x7c2   : > { %v3900_v46 = vld [vmem:[#allocation3 + $0x80] sm:$0xff]  ;;  %5589 = vmatpush3.bf16.msra.mxu0 %v3884_v45  ;;  %v3901_v49 = vld [vmem:[#allocation3 + $0x88] sm:$0xff]  ;;  %v3902_v53 = vld [vmem:[#allocation3 + $0x90] sm:$0xff] }
 0x7c3   : > { %5701 = vmatpush3.bf16.msra.mxu1 %v3900_v46  ;;  %5590 = vmatprep.subr.bf16.mxu0 %v3893_v47  ;;  %v3895_v13 = vld [vmem:[#allocation3 + $0x58] sm:$0xff]  ;;  %v3896_v57 = vld [vmem:[#allocation3 + $0x60] sm:$0xff]  ;;  %v3897_v62 = vld [vmem:[#allocation3 + $0x68] sm:$0xff] }
 0x7c4   : > { %5702 = vmatprep.subr.bf16.mxu1 %v3909_v48  ;;  %v3911_v54 = vld [vmem:[#allocation3 + $0xd8] sm:$0xff]  ;;  %v6486_v58 = vld [vmem:[%s7142_s2 + $0x4] ss:$16 sps:$4 sm:$0xff]   ;;  %v3913_v63 = vld [vmem:[#allocation3 + $0xe8] sm:$0xff] }
 0x7c5   : > { %v3887_v55 = vld [vmem:[#allocation3 + $0x18] sm:$0xff]  ;;  %v3912_v17 = vld [vmem:[#allocation3 + $0xe0] sm:$0xff]  ;;  %4268 = vmatprep.mubr.bf16.mxu0 %v6486_v58  ;;  %v3889_v0 = vld [vmem:[#allocation3 + $0x28] sm:$0xff] }
 0x7c6   : > { %5591 = vmatpush3.bf16.msra.mxu0 %v3885_v7  ;;  %v3903_v56 = vld [vmem:[#allocation3 + $0x98] sm:$0xff]  ;;  %v3888_v60 = vld [vmem:[#allocation3 + $0x20] sm:$0xff]  ;;  %v3905_v1 = vld [vmem:[#allocation3 + $0xa8] sm:$0xff] }
 0x7c7   : > { %5703 = vmatpush3.bf16.msra.mxu1 %v3901_v49  ;;  %5592 = vmatprep.subr.bf16.mxu0 %v3894_v50  ;;  %v6489_v59 = vld [vmem:[%s7142_s2 + $0xc] ss:$16 sps:$4 sm:$0xff]   ;;  %v3904_v61 = vld [vmem:[#allocation3 + $0xa0] sm:$0xff]  ;;  %v3898_v2 = vld [vmem:[#allocation3 + $0x70] sm:$0xff] }
 0x7c8   : > { %5704 = vmatprep.subr.bf16.mxu1 %v3910_v51  ;;  %4429 = vmatprep.mubr.bf16.mxu1 %v6489_v59  ;;  %v3914_v3 = vld [vmem:[#allocation3 + $0xf0] sm:$0xff]  ;;  %v3899_v6 = vld [vmem:[#allocation3 + $0x78] sm:$0xff] }
 0x7c9   : > { %v3890_v4 = vld [vmem:[#allocation3 + $0x30] sm:$0xff]  ;;  %v3915_v8 = vld [vmem:[#allocation3 + $0xf8] sm:$0xff] }
 0x7ca   : > { %5593 = vmatpush3.bf16.msra.mxu0 %v3886_v52  ;;  %v3906_v5 = vld [vmem:[#allocation3 + $0xb0] sm:$0xff]  ;;  %v3891_v9 = vld [vmem:[#allocation3 + $0x38] sm:$0xff] }
 0x7cb   : > { %5705 = vmatpush3.bf16.msra.mxu1 %v3902_v53  ;;  %5594 = vmatprep.subr.bf16.mxu0 %v3895_v13  ;;  %v3907_v10 = vld [vmem:[#allocation3 + $0xb8] sm:$0xff]  ;;  %v6484_v11 = vld [vmem:[%s7142_s2] ss:$16 sps:$4 sm:$0xff]   ;;  %v6490_v14 = vld [vmem:[%s7142_s2 + $0x24] ss:$16 sps:$4 sm:$0xff]  }
 0x7cc   : > { %5706 = vmatprep.subr.bf16.mxu1 %v3911_v54  ;;  %v6487_v12 = vld [vmem:[%s7142_s2 + $0x8] ss:$16 sps:$4 sm:$0xff]   ;;  %v6492_v15 = vld [vmem:[%s7142_s2 + $0x2c] ss:$16 sps:$4 sm:$0xff]   ;;  %v6494_v16 = vld [vmem:[%s7142_s2 + $0x20] ss:$16 sps:$4 sm:$0xff]  }
 0x7cd   : > { %v6495_v18 = vld [vmem:[%s7142_s2 + $0x28] ss:$16 sps:$4 sm:$0xff]   ;;  %v6496_v19 = vld [vmem:[%s7142_s2 + $0x44] ss:$16 sps:$4 sm:$0xff]   ;;  %v6498_v20 = vld [vmem:[%s7142_s2 + $0x4c] ss:$16 sps:$4 sm:$0xff]  }
 0x7ce   : > { %5595 = vmatpush3.bf16.msra.mxu0 %v3887_v55  ;;  %v6500_v21 = vld [vmem:[%s7142_s2 + $0x40] ss:$16 sps:$4 sm:$0xff]   ;;  %v6501_v22 = vld [vmem:[%s7142_s2 + $0x48] ss:$16 sps:$4 sm:$0xff]   ;;  %v6502_v23 = vld [vmem:[%s7142_s2 + $0x64] ss:$16 sps:$4 sm:$0xff]  }
 0x7cf   : > { %5707 = vmatpush3.bf16.msra.mxu1 %v3903_v56  ;;  %5596 = vmatprep.subr.bf16.mxu0 %v3896_v57  ;;  %v6504_v24 = vld [vmem:[%s7142_s2 + $0x6c] ss:$16 sps:$4 sm:$0xff]   ;;  %v6506_v25 = vld [vmem:[%s7142_s2 + $0x60] ss:$16 sps:$4 sm:$0xff]   ;;  %v6507_v26 = vld [vmem:[%s7142_s2 + $0x68] ss:$16 sps:$4 sm:$0xff]  }
 0x7d0   : > { %5708 = vmatprep.subr.bf16.mxu1 %v3912_v17  ;;  %v6508_v27 = vld [vmem:[%s7142_s2 + $0x84] ss:$16 sps:$4 sm:$0xff]   ;;  %v6510_v28 = vld [vmem:[%s7142_s2 + $0x8c] ss:$16 sps:$4 sm:$0xff]   ;;  %v6512_v29 = vld [vmem:[%s7142_s2 + $0x80] ss:$16 sps:$4 sm:$0xff]  }
 0x7d1   : > { %v6513_v30 = vld [vmem:[%s7142_s2 + $0x88] ss:$16 sps:$4 sm:$0xff]   ;;  %v6514_v31 = vld [vmem:[%s7142_s2 + $0xa4] ss:$16 sps:$4 sm:$0xff]   ;;  %v6516_v32 = vld [vmem:[%s7142_s2 + $0xac] ss:$16 sps:$4 sm:$0xff]  }
 0x7d2   : > { %5597 = vmatpush3.bf16.msra.mxu0 %v3888_v60  ;;  %v6518_v33 = vld [vmem:[%s7142_s2 + $0xa0] ss:$16 sps:$4 sm:$0xff]   ;;  %v6519_v34 = vld [vmem:[%s7142_s2 + $0xa8] ss:$16 sps:$4 sm:$0xff]   ;;  %v6520_v35 = vld [vmem:[%s7142_s2 + $0xc4] ss:$16 sps:$4 sm:$0xff]  }
 0x7d3   : > { %5709 = vmatpush3.bf16.msra.mxu1 %v3904_v61  ;;  %5598 = vmatprep.subr.bf16.mxu0 %v3897_v62  ;;  %v6522_v36 = vld [vmem:[%s7142_s2 + $0xcc] ss:$16 sps:$4 sm:$0xff]   ;;  %v6524_v37 = vld [vmem:[%s7142_s2 + $0xc0] ss:$16 sps:$4 sm:$0xff]   ;;  %v6525_v38 = vld [vmem:[%s7142_s2 + $0xc8] ss:$16 sps:$4 sm:$0xff]  }
 0x7d4   : > { %5710 = vmatprep.subr.bf16.mxu1 %v3913_v63  ;;  %v6526_v39 = vld [vmem:[%s7142_s2 + $0xe4] ss:$16 sps:$4 sm:$0xff]   ;;  %v6528_v40 = vld [vmem:[%s7142_s2 + $0xec] ss:$16 sps:$4 sm:$0xff]   ;;  %v6530_v41 = vld [vmem:[%s7142_s2 + $0xe0] ss:$16 sps:$4 sm:$0xff]  }
 0x7d5   : > { %v6531_v42 = vld [vmem:[%s7142_s2 + $0xe8] ss:$16 sps:$4 sm:$0xff]   ;;  %v6532_v43 = vld [vmem:[%s7142_s2 + $0x104] ss:$16 sps:$4 sm:$0xff]   ;;  %v6534_v44 = vld [vmem:[%s7142_s2 + $0x10c] ss:$16 sps:$4 sm:$0xff]  }
 0x7d6   : > { %5599 = vmatpush3.bf16.msra.mxu0 %v3889_v0  ;;  %v6536_v45 = vld [vmem:[%s7142_s2 + $0x100] ss:$16 sps:$4 sm:$0xff]   ;;  %v6537_v46 = vld [vmem:[%s7142_s2 + $0x108] ss:$16 sps:$4 sm:$0xff]   ;;  %v6538_v47 = vld [vmem:[%s7142_s2 + $0x124] ss:$16 sps:$4 sm:$0xff]  }
 0x7d7   : > { %5711 = vmatpush3.bf16.msra.mxu1 %v3905_v1  ;;  %5600 = vmatprep.subr.bf16.mxu0 %v3898_v2  ;;  %v6540_v48 = vld [vmem:[%s7142_s2 + $0x12c] ss:$16 sps:$4 sm:$0xff]   ;;  %v6542_v7 = vld [vmem:[%s7142_s2 + $0x120] ss:$16 sps:$4 sm:$0xff]   ;;  %v6543_v49 = vld [vmem:[%s7142_s2 + $0x128] ss:$16 sps:$4 sm:$0xff]  }
 0x7d8   : > { %5712 = vmatprep.subr.bf16.mxu1 %v3914_v3  ;;  %v6544_v50 = vld [vmem:[%s7142_s2 + $0x144] ss:$16 sps:$4 sm:$0xff]   ;;  %v6546_v51 = vld [vmem:[%s7142_s2 + $0x14c] ss:$16 sps:$4 sm:$0xff]   ;;  %v6548_v52 = vld [vmem:[%s7142_s2 + $0x140] ss:$16 sps:$4 sm:$0xff]  }
 0x7d9   : > { %v6549_v53 = vld [vmem:[%s7142_s2 + $0x148] ss:$16 sps:$4 sm:$0xff]   ;;  %v6550_v13 = vld [vmem:[%s7142_s2 + $0x164] ss:$16 sps:$4 sm:$0xff]   ;;  %v6552_v54 = vld [vmem:[%s7142_s2 + $0x16c] ss:$16 sps:$4 sm:$0xff]  }
 0x7da   : > { %5601 = vmatpush3.bf16.msra.mxu0 %v3890_v4  ;;  %v6554_v55 = vld [vmem:[%s7142_s2 + $0x160] ss:$16 sps:$4 sm:$0xff]   ;;  %v6555_v56 = vld [vmem:[%s7142_s2 + $0x168] ss:$16 sps:$4 sm:$0xff]   ;;  %v6556_v57 = vld [vmem:[%s7142_s2 + $0x184] ss:$16 sps:$4 sm:$0xff]  }
 0x7db   : > { %5713 = vmatpush3.bf16.msra.mxu1 %v3906_v5  ;;  %5602 = vmatprep.subr.bf16.mxu0 %v3899_v6  ;;  %v6558_v58 = vld [vmem:[%s7142_s2 + $0x18c] ss:$16 sps:$4 sm:$0xff]   ;;  %v6560_v17 = vld [vmem:[%s7142_s2 + $0x180] ss:$16 sps:$4 sm:$0xff]   ;;  %v6561_v59 = vld [vmem:[%s7142_s2 + $0x188] ss:$16 sps:$4 sm:$0xff]  }
 0x7dc   : > { %5714 = vmatprep.subr.bf16.mxu1 %v3915_v8  ;;  %v6562_v60 = vld [vmem:[%s7142_s2 + $0x1a4] ss:$16 sps:$4 sm:$0xff]   ;;  %v6564_v61 = vld [vmem:[%s7142_s2 + $0x1ac] ss:$16 sps:$4 sm:$0xff]   ;;  %v6566_v62 = vld [vmem:[%s7142_s2 + $0x1a0] ss:$16 sps:$4 sm:$0xff]  }
 0x7dd   : > { %v6567_v63 = vld [vmem:[%s7142_s2 + $0x1a8] ss:$16 sps:$4 sm:$0xff]   ;;  %v6568_v0 = vld [vmem:[%s7142_s2 + $0x1c4] ss:$16 sps:$4 sm:$0xff]   ;;  %v6570_v1 = vld [vmem:[%s7142_s2 + $0x1cc] ss:$16 sps:$4 sm:$0xff]  }
 0x7de   : > { %5603 = vmatpush3.bf16.msra.mxu0 %v3891_v9  ;;  %v6572_v2 = vld [vmem:[%s7142_s2 + $0x1c0] ss:$16 sps:$4 sm:$0xff]   ;;  %v6573_v3 = vld [vmem:[%s7142_s2 + $0x1c8] ss:$16 sps:$4 sm:$0xff]   ;;  %v6574_v4 = vld [vmem:[%s7142_s2 + $0x1e4] ss:$16 sps:$4 sm:$0xff]  }
 0x7df   : > { %5715 = vmatpush3.bf16.msra.mxu1 %v3907_v10  ;;  %v6576_v5 = vld [vmem:[%s7142_s2 + $0x1ec] ss:$16 sps:$4 sm:$0xff]   ;;  %v6578_v6 = vld [vmem:[%s7142_s2 + $0x1e0] ss:$16 sps:$4 sm:$0xff]   ;;  %v6579_v8 = vld [vmem:[%s7142_s2 + $0x1e8] ss:$16 sps:$4 sm:$0xff]  }
 0x7e1   : > { %4269 = vmatmul.mubr.bf16.vlgmr.msra.gmra.mrb[0].mxu0 %v6484_v11 }
 0x7e2   : > { %4430 = vmatmul.mubr.bf16.vlgmr.msra.gmra.mrb[0].mxu1 %v6487_v12  ;;  %4276 = vmatprep.mubr.bf16.mxu0 %v6490_v14 }
 0x7e3   : > { %4437 = vmatprep.mubr.bf16.mxu1 %v6492_v15 }
 0x7e9   : > { %4277 = vmatmul.mubr.bf16.gmra.mrb[4].mxu0 %v6494_v16 }
 0x7ea   : > { %4438 = vmatmul.mubr.bf16.gmra.mrb[4].mxu1 %v6495_v18  ;;  %4284 = vmatprep.mubr.bf16.mxu0 %v6496_v19 }
 0x7eb   : > { %4445 = vmatprep.mubr.bf16.mxu1 %v6498_v20 }
 0x7f1   : > { %4285 = vmatmul.mubr.bf16.gmra.mrb[8].mxu0 %v6500_v21 }
 0x7f2   : > { %4446 = vmatmul.mubr.bf16.gmra.mrb[8].mxu1 %v6501_v22  ;;  %4292 = vmatprep.mubr.bf16.mxu0 %v6502_v23 }
 0x7f3   : > { %4453 = vmatprep.mubr.bf16.mxu1 %v6504_v24 }
 0x7f9   : > { %4293 = vmatmul.mubr.bf16.gmra.mrb[12].mxu0 %v6506_v25 }
 0x7fa   : > { %4454 = vmatmul.mubr.bf16.gmra.mrb[12].mxu1 %v6507_v26  ;;  %4300 = vmatprep.mubr.bf16.mxu0 %v6508_v27 }
 0x7fb   : > { %4461 = vmatprep.mubr.bf16.mxu1 %v6510_v28 }
 0x801   : > { %4301 = vmatmul.mubr.bf16.gmra.mrb[16].mxu0 %v6512_v29 }
 0x802   : > { %4462 = vmatmul.mubr.bf16.gmra.mrb[16].mxu1 %v6513_v30  ;;  %4308 = vmatprep.mubr.bf16.mxu0 %v6514_v31 }
 0x803   : > { %4469 = vmatprep.mubr.bf16.mxu1 %v6516_v32 }
 0x809   : > { %4309 = vmatmul.mubr.bf16.gmra.mrb[20].mxu0 %v6518_v33 }
 0x80a   : > { %4470 = vmatmul.mubr.bf16.gmra.mrb[20].mxu1 %v6519_v34  ;;  %4316 = vmatprep.mubr.bf16.mxu0 %v6520_v35 }
 0x80b   : > { %4477 = vmatprep.mubr.bf16.mxu1 %v6522_v36 }
 0x811   : > { %4317 = vmatmul.mubr.bf16.gmra.mrb[24].mxu0 %v6524_v37 }
 0x812   : > { %4478 = vmatmul.mubr.bf16.gmra.mrb[24].mxu1 %v6525_v38  ;;  %4324 = vmatprep.mubr.bf16.mxu0 %v6526_v39 }
 0x813   : > { %4485 = vmatprep.mubr.bf16.mxu1 %v6528_v40 }
 0x819   : > { %4325 = vmatmul.mubr.bf16.gmra.mrb[28].mxu0 %v6530_v41 }
 0x81a   : > { %4486 = vmatmul.mubr.bf16.gmra.mrb[28].mxu1 %v6531_v42  ;;  %4332 = vmatprep.mubr.bf16.mxu0 %v6532_v43 }
 0x81b   : > { %4493 = vmatprep.mubr.bf16.mxu1 %v6534_v44 }
 0x821   : > { %4333 = vmatmul.mubr.bf16.gmra.mrb[32].mxu0 %v6536_v45 }
 0x822   : > { %4494 = vmatmul.mubr.bf16.gmra.mrb[32].mxu1 %v6537_v46  ;;  %4340 = vmatprep.mubr.bf16.mxu0 %v6538_v47 }
 0x823   : > { %4501 = vmatprep.mubr.bf16.mxu1 %v6540_v48 }
 0x829   : > { %4341 = vmatmul.mubr.bf16.gmra.mrb[36].mxu0 %v6542_v7 }
 0x82a   : > { %4502 = vmatmul.mubr.bf16.gmra.mrb[36].mxu1 %v6543_v49  ;;  %4348 = vmatprep.mubr.bf16.mxu0 %v6544_v50 }
 0x82b   : > { %4509 = vmatprep.mubr.bf16.mxu1 %v6546_v51 }
 0x831   : > { %4349 = vmatmul.mubr.bf16.gmra.mrb[40].mxu0 %v6548_v52 }
 0x832   : > { %4510 = vmatmul.mubr.bf16.gmra.mrb[40].mxu1 %v6549_v53  ;;  %4356 = vmatprep.mubr.bf16.mxu0 %v6550_v13 }
 0x833   : > { %4517 = vmatprep.mubr.bf16.mxu1 %v6552_v54 }
 0x839   : > { %4357 = vmatmul.mubr.bf16.gmra.mrb[44].mxu0 %v6554_v55 }
 0x83a   : > { %4518 = vmatmul.mubr.bf16.gmra.mrb[44].mxu1 %v6555_v56  ;;  %4364 = vmatprep.mubr.bf16.mxu0 %v6556_v57 }
 0x83b   : > { %4525 = vmatprep.mubr.bf16.mxu1 %v6558_v58 }
 0x841   : > { %4365 = vmatmul.mubr.bf16.gmra.mrb[48].mxu0 %v6560_v17 }
 0x842   : > { %4526 = vmatmul.mubr.bf16.gmra.mrb[48].mxu1 %v6561_v59  ;;  %4372 = vmatprep.mubr.bf16.mxu0 %v6562_v60 }
 0x843   : > { %4533 = vmatprep.mubr.bf16.mxu1 %v6564_v61 }
 0x849   : > { %4373 = vmatmul.mubr.bf16.gmra.mrb[52].mxu0 %v6566_v62 }
 0x84a   : > { %4534 = vmatmul.mubr.bf16.gmra.mrb[52].mxu1 %v6567_v63  ;;  %4380 = vmatprep.mubr.bf16.mxu0 %v6568_v0 }
 0x84b   : > { %4541 = vmatprep.mubr.bf16.mxu1 %v6570_v1 }
 0x851   : > { %4381 = vmatmul.mubr.bf16.gmra.mrb[56].mxu0 %v6572_v2 }
 0x852   : > { %4542 = vmatmul.mubr.bf16.gmra.mrb[56].mxu1 %v6573_v3  ;;  %4388 = vmatprep.mubr.bf16.mxu0 %v6574_v4 }
 0x853   : > { %4549 = vmatprep.mubr.bf16.mxu1 %v6576_v5 }
 0x859   : > { %4389 = vmatmul.mubr.bf16.gmra.mrb[60].mxu0 %v6578_v6 }
 0x85a   : > { %4550 = vmatmul.mubr.bf16.gmra.mrb[60].mxu1 %v6579_v8 }
 0x8b4   : > { %v5604_v9 = vpop.f32.mrb[0].mxu0 }
 0x8b5   : > { %v5716_v10 = vpop.f32.mrb[0].mxu1  ;;  %v5605_v11 = vpop.f32.mrb[1].mxu0 }
 0x8b6   : > { %v5717_v12 = vpop.f32.mrb[1].mxu1  ;;  %v5606_v14 = vadd.f32 %v5605_v11, %v5604_v9  ;;  %v5607_v16 = vpop.f32.mrb[2].mxu0 }
 0x8b7   : > { %v5718_v15 = vadd.f32 %v5717_v12, %v5716_v10  ;;  %v5719_v18 = vpop.f32.mrb[2].mxu1  ;;  %v5608_v19 = vpop.f32.mrb[3].mxu0 }
 0x8b8   : > { %v5720_v20 = vpop.f32.mrb[3].mxu1  ;;  %v5609_v22 = vadd.f32 %v5608_v19, %v5607_v16 }
 0x8b9   : > { %v4432_v21 = vadd.f32 %v5718_v15, %v5606_v14  ;;  %v5721_v23 = vadd.f32 %v5720_v20, %v5719_v18 }
 0x8bb   : > { %4558 = vst [vmem:[%s7157_s7] sm:$0xff] %v4432_v21  ;;  %v4435_v24 = vadd.f32 %v5721_v23, %v5609_v22 }
 0x8bc   : > { %v5610_v25 = vpop.f32.mrb[4].mxu0 }
 0x8bd   : > { %4559 = vst [vmem:[%s7157_s7 + $0x8] sm:$0xff] %v4435_v24  ;;  %v5722_v26 = vpop.f32.mrb[4].mxu1  ;;  %v5611_v27 = vpop.f32.mrb[5].mxu0 }
 0x8be   : > { %v5723_v28 = vpop.f32.mrb[5].mxu1  ;;  %v5612_v29 = vadd.f32 %v5611_v27, %v5610_v25  ;;  %v5613_v31 = vpop.f32.mrb[6].mxu0 }
 0x8bf   : > { %v5724_v30 = vadd.f32 %v5723_v28, %v5722_v26  ;;  %v5725_v32 = vpop.f32.mrb[6].mxu1  ;;  %v5614_v33 = vpop.f32.mrb[7].mxu0 }
 0x8c0   : > { %v5726_v34 = vpop.f32.mrb[7].mxu1  ;;  %v5615_v36 = vadd.f32 %v5614_v33, %v5613_v31 }
 0x8c1   : > { %v4440_v35 = vadd.f32 %v5724_v30, %v5612_v29  ;;  %v5727_v37 = vadd.f32 %v5726_v34, %v5725_v32 }
 0x8c3   : > { %4560 = vst [vmem:[%s7157_s7 + $0x10] sm:$0xff] %v4440_v35  ;;  %v4443_v38 = vadd.f32 %v5727_v37, %v5615_v36 }
 0x8c4   : > { %v5616_v39 = vpop.f32.mrb[8].mxu0 }
 0x8c5   : > { %4561 = vst [vmem:[%s7157_s7 + $0x18] sm:$0xff] %v4443_v38  ;;  %v5728_v40 = vpop.f32.mrb[8].mxu1  ;;  %v5617_v41 = vpop.f32.mrb[9].mxu0 }
 0x8c6   : > { %v5729_v42 = vpop.f32.mrb[9].mxu1  ;;  %v5618_v43 = vadd.f32 %v5617_v41, %v5616_v39  ;;  %v5619_v45 = vpop.f32.mrb[10].mxu0 }
 0x8c7   : > { %v5730_v44 = vadd.f32 %v5729_v42, %v5728_v40  ;;  %v5731_v46 = vpop.f32.mrb[10].mxu1  ;;  %v5620_v47 = vpop.f32.mrb[11].mxu0 }
 0x8c8   : > { %v5732_v48 = vpop.f32.mrb[11].mxu1  ;;  %v5621_v49 = vadd.f32 %v5620_v47, %v5619_v45 }
 0x8c9   : > { %v4448_v7 = vadd.f32 %v5730_v44, %v5618_v43  ;;  %v5733_v50 = vadd.f32 %v5732_v48, %v5731_v46 }
 0x8cb   : > { %4562 = vst [vmem:[%s7157_s7 + $0x20] sm:$0xff] %v4448_v7  ;;  %v4451_v51 = vadd.f32 %v5733_v50, %v5621_v49 }
 0x8cc   : > { %v5622_v52 = vpop.f32.mrb[12].mxu0 }
 0x8cd   : > { %4563 = vst [vmem:[%s7157_s7 + $0x28] sm:$0xff] %v4451_v51  ;;  %v5734_v53 = vpop.f32.mrb[12].mxu1  ;;  %v5623_v13 = vpop.f32.mrb[13].mxu0 }
 0x8ce   : > { %v5735_v54 = vpop.f32.mrb[13].mxu1  ;;  %v5624_v55 = vadd.f32 %v5623_v13, %v5622_v52  ;;  %v5625_v57 = vpop.f32.mrb[14].mxu0 }
 0x8cf   : > { %v5736_v56 = vadd.f32 %v5735_v54, %v5734_v53  ;;  %v5737_v58 = vpop.f32.mrb[14].mxu1  ;;  %v5626_v17 = vpop.f32.mrb[15].mxu0 }
 0x8d0   : > { %v5738_v59 = vpop.f32.mrb[15].mxu1  ;;  %v5627_v61 = vadd.f32 %v5626_v17, %v5625_v57 }
 0x8d1   : > { %v4456_v60 = vadd.f32 %v5736_v56, %v5624_v55  ;;  %v5739_v62 = vadd.f32 %v5738_v59, %v5737_v58 }
 0x8d3   : > { %4564 = vst [vmem:[%s7157_s7 + $0x30] sm:$0xff] %v4456_v60  ;;  %v4459_v63 = vadd.f32 %v5739_v62, %v5627_v61 }
 0x8d4   : > { %v5628_v0 = vpop.f32.mrb[16].mxu0 }
 0x8d5   : > { %4565 = vst [vmem:[%s7157_s7 + $0x38] sm:$0xff] %v4459_v63  ;;  %v5740_v1 = vpop.f32.mrb[16].mxu1  ;;  %v5629_v2 = vpop.f32.mrb[17].mxu0 }
 0x8d6   : > { %v5741_v3 = vpop.f32.mrb[17].mxu1  ;;  %v5630_v4 = vadd.f32 %v5629_v2, %v5628_v0  ;;  %v5631_v6 = vpop.f32.mrb[18].mxu0 }
 0x8d7   : > { %v5742_v5 = vadd.f32 %v5741_v3, %v5740_v1  ;;  %v5743_v8 = vpop.f32.mrb[18].mxu1  ;;  %v5632_v9 = vpop.f32.mrb[19].mxu0 }
 0x8d8   : > { %v5744_v10 = vpop.f32.mrb[19].mxu1  ;;  %v5633_v12 = vadd.f32 %v5632_v9, %v5631_v6 }
 0x8d9   : > { %v4464_v11 = vadd.f32 %v5742_v5, %v5630_v4  ;;  %v5745_v14 = vadd.f32 %v5744_v10, %v5743_v8 }
 0x8db   : > { %4566 = vst [vmem:[%s7157_s7 + $0x40] sm:$0xff] %v4464_v11  ;;  %v4467_v15 = vadd.f32 %v5745_v14, %v5633_v12 }
 0x8dc   : > { %v5634_v16 = vpop.f32.mrb[20].mxu0 }
 0x8dd   : > { %4567 = vst [vmem:[%s7157_s7 + $0x48] sm:$0xff] %v4467_v15  ;;  %v5746_v18 = vpop.f32.mrb[20].mxu1  ;;  %v5635_v19 = vpop.f32.mrb[21].mxu0 }
 0x8de   : > { %v5747_v20 = vpop.f32.mrb[21].mxu1  ;;  %v5636_v21 = vadd.f32 %v5635_v19, %v5634_v16  ;;  %v5637_v23 = vpop.f32.mrb[22].mxu0 }
 0x8df   : > { %v5748_v22 = vadd.f32 %v5747_v20, %v5746_v18  ;;  %v5749_v24 = vpop.f32.mrb[22].mxu1  ;;  %v5638_v25 = vpop.f32.mrb[23].mxu0 }
 0x8e0   : > { %v5750_v26 = vpop.f32.mrb[23].mxu1  ;;  %v5639_v28 = vadd.f32 %v5638_v25, %v5637_v23 }
 0x8e1   : > { %v4472_v27 = vadd.f32 %v5748_v22, %v5636_v21  ;;  %v5751_v29 = vadd.f32 %v5750_v26, %v5749_v24 }
 0x8e3   : > { %4568 = vst [vmem:[%s7157_s7 + $0x50] sm:$0xff] %v4472_v27  ;;  %v4475_v30 = vadd.f32 %v5751_v29, %v5639_v28 }
 0x8e4   : > { %v5640_v31 = vpop.f32.mrb[24].mxu0 }
 0x8e5   : > { %4569 = vst [vmem:[%s7157_s7 + $0x58] sm:$0xff] %v4475_v30  ;;  %v5752_v32 = vpop.f32.mrb[24].mxu1  ;;  %v5641_v33 = vpop.f32.mrb[25].mxu0 }
 0x8e6   : > { %v5753_v34 = vpop.f32.mrb[25].mxu1  ;;  %v5642_v35 = vadd.f32 %v5641_v33, %v5640_v31  ;;  %v5643_v37 = vpop.f32.mrb[26].mxu0 }
 0x8e7   : > { %v5754_v36 = vadd.f32 %v5753_v34, %v5752_v32  ;;  %v5755_v38 = vpop.f32.mrb[26].mxu1  ;;  %v5644_v39 = vpop.f32.mrb[27].mxu0 }
 0x8e8   : > { %v5756_v40 = vpop.f32.mrb[27].mxu1  ;;  %v5645_v42 = vadd.f32 %v5644_v39, %v5643_v37 }
 0x8e9   : > { %v4480_v41 = vadd.f32 %v5754_v36, %v5642_v35  ;;  %v5757_v43 = vadd.f32 %v5756_v40, %v5755_v38 }
 0x8eb   : > { %4570 = vst [vmem:[%s7157_s7 + $0x60] sm:$0xff] %v4480_v41  ;;  %v4483_v44 = vadd.f32 %v5757_v43, %v5645_v42 }
 0x8ec   : > { %v5646_v45 = vpop.f32.mrb[28].mxu0 }
 0x8ed   : > { %4571 = vst [vmem:[%s7157_s7 + $0x68] sm:$0xff] %v4483_v44  ;;  %v5758_v46 = vpop.f32.mrb[28].mxu1  ;;  %v5647_v47 = vpop.f32.mrb[29].mxu0 }
 0x8ee   : > { %v5759_v48 = vpop.f32.mrb[29].mxu1  ;;  %v5648_v7 = vadd.f32 %v5647_v47, %v5646_v45  ;;  %v5649_v50 = vpop.f32.mrb[30].mxu0 }
 0x8ef   : > { %v5760_v49 = vadd.f32 %v5759_v48, %v5758_v46  ;;  %v5761_v51 = vpop.f32.mrb[30].mxu1  ;;  %v5650_v52 = vpop.f32.mrb[31].mxu0 }
 0x8f0   : > { %v5762_v53 = vpop.f32.mrb[31].mxu1  ;;  %v5651_v54 = vadd.f32 %v5650_v52, %v5649_v50 }
 0x8f1   : > { %v4488_v13 = vadd.f32 %v5760_v49, %v5648_v7  ;;  %v5763_v55 = vadd.f32 %v5762_v53, %v5761_v51 }
 0x8f3   : > { %4572 = vst [vmem:[%s7157_s7 + $0x70] sm:$0xff] %v4488_v13  ;;  %v4491_v56 = vadd.f32 %v5763_v55, %v5651_v54 }
 0x8f4   : > { %v5652_v57 = vpop.f32.mrb[32].mxu0 }
 0x8f5   : > { %4573 = vst [vmem:[%s7157_s7 + $0x78] sm:$0xff] %v4491_v56  ;;  %v5764_v58 = vpop.f32.mrb[32].mxu1  ;;  %v5653_v17 = vpop.f32.mrb[33].mxu0 }
 0x8f6   : > { %v5765_v59 = vpop.f32.mrb[33].mxu1  ;;  %v5654_v60 = vadd.f32 %v5653_v17, %v5652_v57  ;;  %v5655_v62 = vpop.f32.mrb[34].mxu0 }
 0x8f7   : > { %v5766_v61 = vadd.f32 %v5765_v59, %v5764_v58  ;;  %v5767_v63 = vpop.f32.mrb[34].mxu1  ;;  %v5656_v0 = vpop.f32.mrb[35].mxu0 }
 0x8f8   : > { %v5768_v1 = vpop.f32.mrb[35].mxu1  ;;  %v5657_v3 = vadd.f32 %v5656_v0, %v5655_v62 }
 0x8f9   : > { %v4496_v2 = vadd.f32 %v5766_v61, %v5654_v60  ;;  %v5769_v4 = vadd.f32 %v5768_v1, %v5767_v63 }
 0x8fb   : > { %4574 = vst [vmem:[%s7157_s7 + $0x80] sm:$0xff] %v4496_v2  ;;  %v4499_v5 = vadd.f32 %v5769_v4, %v5657_v3 }
 0x8fc   : > { %v5658_v6 = vpop.f32.mrb[36].mxu0 }
 0x8fd   : > { %4575 = vst [vmem:[%s7157_s7 + $0x88] sm:$0xff] %v4499_v5  ;;  %v5770_v8 = vpop.f32.mrb[36].mxu1  ;;  %v5659_v9 = vpop.f32.mrb[37].mxu0 }
 0x8fe   : > { %v5771_v10 = vpop.f32.mrb[37].mxu1  ;;  %v5660_v11 = vadd.f32 %v5659_v9, %v5658_v6  ;;  %v5661_v14 = vpop.f32.mrb[38].mxu0 }
 0x8ff   : > { %v5772_v12 = vadd.f32 %v5771_v10, %v5770_v8  ;;  %v5773_v15 = vpop.f32.mrb[38].mxu1  ;;  %v5662_v16 = vpop.f32.mrb[39].mxu0 }
 0x900   : > { %v5774_v18 = vpop.f32.mrb[39].mxu1  ;;  %v5663_v20 = vadd.f32 %v5662_v16, %v5661_v14 }
 0x901   : > { %v4504_v19 = vadd.f32 %v5772_v12, %v5660_v11  ;;  %v5775_v21 = vadd.f32 %v5774_v18, %v5773_v15 }
 0x903   : > { %4576 = vst [vmem:[%s7157_s7 + $0x90] sm:$0xff] %v4504_v19  ;;  %v4507_v22 = vadd.f32 %v5775_v21, %v5663_v20 }
 0x904   : > { %v5664_v23 = vpop.f32.mrb[40].mxu0 }
 0x905   : > { %4577 = vst [vmem:[%s7157_s7 + $0x98] sm:$0xff] %v4507_v22  ;;  %v5776_v24 = vpop.f32.mrb[40].mxu1  ;;  %v5665_v25 = vpop.f32.mrb[41].mxu0 }
 0x906   : > { %v5777_v26 = vpop.f32.mrb[41].mxu1  ;;  %v5666_v27 = vadd.f32 %v5665_v25, %v5664_v23  ;;  %v5667_v29 = vpop.f32.mrb[42].mxu0 }
 0x907   : > { %v5778_v28 = vadd.f32 %v5777_v26, %v5776_v24  ;;  %v5779_v30 = vpop.f32.mrb[42].mxu1  ;;  %v5668_v31 = vpop.f32.mrb[43].mxu0 }
 0x908   : > { %v5780_v32 = vpop.f32.mrb[43].mxu1  ;;  %v5669_v34 = vadd.f32 %v5668_v31, %v5667_v29 }
 0x909   : > { %v4512_v33 = vadd.f32 %v5778_v28, %v5666_v27  ;;  %v5781_v35 = vadd.f32 %v5780_v32, %v5779_v30 }
 0x90b   : > { %4578 = vst [vmem:[%s7157_s7 + $0xa0] sm:$0xff] %v4512_v33  ;;  %v4515_v36 = vadd.f32 %v5781_v35, %v5669_v34 }
 0x90c   : > { %v5670_v37 = vpop.f32.mrb[44].mxu0 }
 0x90d   : > { %4579 = vst [vmem:[%s7157_s7 + $0xa8] sm:$0xff] %v4515_v36  ;;  %v5782_v38 = vpop.f32.mrb[44].mxu1  ;;  %v5671_v39 = vpop.f32.mrb[45].mxu0 }
 0x90e   : > { %v5783_v40 = vpop.f32.mrb[45].mxu1  ;;  %v5672_v41 = vadd.f32 %v5671_v39, %v5670_v37  ;;  %v5673_v43 = vpop.f32.mrb[46].mxu0 }
 0x90f   : > { %v5784_v42 = vadd.f32 %v5783_v40, %v5782_v38  ;;  %v5785_v44 = vpop.f32.mrb[46].mxu1  ;;  %v5674_v45 = vpop.f32.mrb[47].mxu0 }
 0x910   : > { %v5786_v46 = vpop.f32.mrb[47].mxu1  ;;  %v5675_v48 = vadd.f32 %v5674_v45, %v5673_v43 }
 0x911   : > { %v4520_v47 = vadd.f32 %v5784_v42, %v5672_v41  ;;  %v5787_v7 = vadd.f32 %v5786_v46, %v5785_v44 }
 0x913   : > { %4580 = vst [vmem:[%s7157_s7 + $0xb0] sm:$0xff] %v4520_v47  ;;  %v4523_v49 = vadd.f32 %v5787_v7, %v5675_v48 }
 0x914   : > { %v5676_v50 = vpop.f32.mrb[48].mxu0 }
 0x915   : > { %4581 = vst [vmem:[%s7157_s7 + $0xb8] sm:$0xff] %v4523_v49  ;;  %v5788_v51 = vpop.f32.mrb[48].mxu1  ;;  %v5677_v52 = vpop.f32.mrb[49].mxu0 }
 0x916   : > { %v5789_v53 = vpop.f32.mrb[49].mxu1  ;;  %v5678_v13 = vadd.f32 %v5677_v52, %v5676_v50  ;;  %v5679_v55 = vpop.f32.mrb[50].mxu0 }
 0x917   : > { %v5790_v54 = vadd.f32 %v5789_v53, %v5788_v51  ;;  %v5791_v56 = vpop.f32.mrb[50].mxu1  ;;  %v5680_v57 = vpop.f32.mrb[51].mxu0 }
 0x918   : > { %v5792_v58 = vpop.f32.mrb[51].mxu1  ;;  %v5681_v59 = vadd.f32 %v5680_v57, %v5679_v55 }
 0x919   : > { %v4528_v17 = vadd.f32 %v5790_v54, %v5678_v13  ;;  %v5793_v60 = vadd.f32 %v5792_v58, %v5791_v56 }
 0x91b   : > { %4582 = vst [vmem:[%s7157_s7 + $0xc0] sm:$0xff] %v4528_v17  ;;  %v4531_v61 = vadd.f32 %v5793_v60, %v5681_v59 }
 0x91c   : > { %v5682_v62 = vpop.f32.mrb[52].mxu0 }
 0x91d   : > { %4583 = vst [vmem:[%s7157_s7 + $0xc8] sm:$0xff] %v4531_v61  ;;  %v5794_v63 = vpop.f32.mrb[52].mxu1  ;;  %v5683_v0 = vpop.f32.mrb[53].mxu0 }
 0x91e   : > { %v5795_v1 = vpop.f32.mrb[53].mxu1  ;;  %v5684_v2 = vadd.f32 %v5683_v0, %v5682_v62  ;;  %v5685_v4 = vpop.f32.mrb[54].mxu0 }
 0x91f   : > { %v5796_v3 = vadd.f32 %v5795_v1, %v5794_v63  ;;  %v5797_v5 = vpop.f32.mrb[54].mxu1  ;;  %v5686_v6 = vpop.f32.mrb[55].mxu0 }
 0x920   : > { %v5798_v8 = vpop.f32.mrb[55].mxu1  ;;  %v5687_v10 = vadd.f32 %v5686_v6, %v5685_v4 }
 0x921   : > { %v4536_v9 = vadd.f32 %v5796_v3, %v5684_v2  ;;  %v5799_v11 = vadd.f32 %v5798_v8, %v5797_v5 }
 0x923   : > { %4584 = vst [vmem:[%s7157_s7 + $0xd0] sm:$0xff] %v4536_v9  ;;  %v4539_v12 = vadd.f32 %v5799_v11, %v5687_v10 }
 0x924   : > { %v5688_v14 = vpop.f32.mrb[56].mxu0 }
 0x925   : > { %4585 = vst [vmem:[%s7157_s7 + $0xd8] sm:$0xff] %v4539_v12  ;;  %v5800_v15 = vpop.f32.mrb[56].mxu1  ;;  %v5689_v16 = vpop.f32.mrb[57].mxu0 }
 0x926   : > { %v5801_v18 = vpop.f32.mrb[57].mxu1  ;;  %v5690_v19 = vadd.f32 %v5689_v16, %v5688_v14  ;;  %v5691_v21 = vpop.f32.mrb[58].mxu0 }
 0x927   : > { %v5802_v20 = vadd.f32 %v5801_v18, %v5800_v15  ;;  %v5803_v22 = vpop.f32.mrb[58].mxu1  ;;  %v5692_v23 = vpop.f32.mrb[59].mxu0 }
 0x928   : > { %v5804_v24 = vpop.f32.mrb[59].mxu1  ;;  %v5693_v26 = vadd.f32 %v5692_v23, %v5691_v21 }
 0x929   : > { %v4544_v25 = vadd.f32 %v5802_v20, %v5690_v19  ;;  %v5805_v27 = vadd.f32 %v5804_v24, %v5803_v22 }
 0x92b   : > { %4586 = vst [vmem:[%s7157_s7 + $0xe0] sm:$0xff] %v4544_v25  ;;  %v4547_v28 = vadd.f32 %v5805_v27, %v5693_v26 }
 0x92c   : > { %v5694_v29 = vpop.f32.mrb[60].mxu0 }
 0x92d   : > { %4587 = vst [vmem:[%s7157_s7 + $0xe8] sm:$0xff] %v4547_v28  ;;  %v5806_v30 = vpop.f32.mrb[60].mxu1  ;;  %v5695_v31 = vpop.f32.mrb[61].mxu0 }
 0x92e   : > { %v5807_v32 = vpop.f32.mrb[61].mxu1  ;;  %v5696_v33 = vadd.f32 %v5695_v31, %v5694_v29  ;;  %v5697_v35 = vpop.f32.mrb[62].mxu0 }
 0x92f   : > { %v5808_v34 = vadd.f32 %v5807_v32, %v5806_v30  ;;  %v5809_v36 = vpop.f32.mrb[62].mxu1  ;;  %v5698_v37 = vpop.f32.mrb[63].mxu0 }
 0x930   : > { %v5810_v38 = vpop.f32.mrb[63].mxu1  ;;  %v5699_v40 = vadd.f32 %v5698_v37, %v5697_v35 }
 0x931   : > { %v4552_v39 = vadd.f32 %v5808_v34, %v5696_v33  ;;  %v5811_v41 = vadd.f32 %v5810_v38, %v5809_v36 }
 0x933   : > { %4588 = vst [vmem:[%s7157_s7 + $0xf0] sm:$0xff] %v4552_v39  ;;  %v4555_v42 = vadd.f32 %v5811_v41, %v5699_v40 }
 0x935   : > { %4589 = vst [vmem:[%s7157_s7 + $0xf8] sm:$0xff] %v4555_v42 }
 0x936 PF: > { %s5059_s2 = sshll.u32 %s6816_s30, 12  ;;  %s7772_s22 = sld [smem:[#allocation24_spill]] }
 0x937   : > { %s4604_s16 = sshll.u32 %s7157_s7, 4  ;;  %s4591_s27 = scalar_lea.sflag [#allocation6], %s7139_s6  ;;  %s7673_s16 = int_to_ptr.vmem [resolvable:$true] %s4604_s16 }
 0x938   : > { %s6722_s21 = scalar_lea.vmem %s7673_s16, 4096  ;;  %s6846_s24 = smov [#allocation13]  }
 0x939   : > { %p6723_p9 = scmp.ne.s32.totalorder %s7673_s16, %s6722_s21  ;;  %s6726_s17 = sshll.u32 %s6846_s24, 4  ;;  %s6727_s17 = int_to_ptr.vmem [resolvable:$false] %s6726_s17 }
 0x93a   : > { %s6728_s30 = scalar_lea.vmem %s6727_s17, 8192  ;;  %p6729_p10 = scmp.lt.s32.totalorder %s7673_s16, %s6727_s17 }
 0x93b   : > { %p6724_p4 = pnand %p6723_p9, %p7077_p11  ;;  %p6730_p6 = scmp.lt.s32.totalorder %s6728_s30, %s6722_s21 }
 0x93c   : > { %s7670_s23 = scalar_lea.hbm %s7772_s22, %s5059_s2 }
 0x93d   : > { %p6725_p0 = pneg %p6724_p4  ;;  %p6731_p8 = por %p6730_p6, %p6729_p10 }
 0x93f   : > { %p6732_p13 = pnand %p6731_p8, %p6725_p0 }
 0x941   : > { %6735 = shalt.err (!%p6732_p13)
}
 0x942   : > { %s6736_s7 = scalar_lea.hbm %s7670_s23, 4096  ;;  %s6740_s15 = scalar_lea.hbm %s7772_s22, 8192 }
 0x943   : > { %p6737_p3 = scmp.ne.s32.totalorder %s7670_s23, %s6736_s7  ;;  %p6741_p1 = scmp.lt.u32.totalorder %s7670_s23, %s7772_s22 }
 0x944   : > { %p6742_p2 = scmp.lt.u32.totalorder %s6740_s15, %s6736_s7  ;;  %p6744_p9 = scmp.lt.u32.totalorder %s6736_s7, %s7670_s23 }
 0x945   : > { %p6738_p7 = pnand %p6737_p3, %p7077_p11 }
 0x946   : > { %p6743_p5 = por %p6742_p2, %p6741_p1 }
 0x947   : > { %p6739_p12 = pneg %p6738_p7 }
 0x948   : > { %p6745_p4 = por %p6744_p9, %p6743_p5 }
 0x94a   : > { %p6746_p0 = pnand %p6745_p4, %p6739_p12 }
 0x94c   : > { %6749 = shalt.err (!%p6746_p0)
}
 0x94d   : > { %s6847_s8 = smov 128   ;;  %s6848_s19 = smov 8  }
 0x94e   : > { %6054 = dma.vmem_to_hbm [thread:$0]  (%p7077_p11), %s7673_s16, 4096, %s7670_s23, %s4591_s27, %s6847_s8, %s6847_s8, %s6848_s19  }
 0x94f PF: > { %s7773_s21 = sld [smem:[#allocation19_spill]]  ;;  %s7774_s24 = sld [smem:[#allocation20_spill]] }
 0x950   : > { %p6086_p10 = scmp.ge.s32.totalorder %s6832_s12, 2 }
 0x955   : > { %s4619_s17 = sand.u32 1, %s7773_s21   ;;  %p7775_p6 = scmp.ne.s32.totalorder %s7774_s24, 0 }
 0x956   : > { %s4620_s30 = scalar_lea.sflag [#allocation6], %s4619_s17 }
 0x957   : > { %p6074_p8 = pnand %p6086_p10, %p7775_p6 }
 0x959   : > { %6799 = dma.done.wait (!%p6074_p8), %s4620_s30, 4096  }
 0x95a   : > { %6801 = vsyncadd (!%p6074_p8), %s4620_s30, 4294963200  ;;  %s26_s12 = sadd.s32 1, %s6832_s12   ;;  %s7776_s27 = smov %s6808_s28 }
 0x95b   : > { %p23_p13 = scmp.ge.s32.totalorder %s26_s12, 8   ;;  %s7777_s28 = smov %s6812_s29 }
 0x95c   : > { %s7778_s29 = smov %s7085_s14  ;;  %s7779_s30 = smov %s6824_s10 }
 0x95d   : > { %s7780_s9 = smov %s6828_s11  ;;  %s7781_s10 = smov %s7784_s18 }
 0x95e   : > { %s7782_s11 = smov %s7788_s20  ;;  %25 = sbr.rel (!%p23_p13) target bundleno = 14 (0xe), region = 140 }
 0x965   :  { %4625 = vsyncpa [#allocation5], 1 }
 0x966   :  { %4627 = vsyncpa [#allocation5 + $0x1], 1 }
 0x967   :  { %4628 = vsyncpa [#allocation8], 1 }
 0x968   :  { %4630 = vsyncpa [#allocation8 + $0x1], 1 }
 0x969   :  { %4631 = vsyncpa [#allocation11], 1 }
 0x96a   :  { %4632 = vsyncpa [#allocation6], 1 }
 0x96b   :  { %4634 = vsyncpa [#allocation6 + $0x1], 1 }

</bundles_post_ra>
